<compile_context>
chip_gen: v5e
topology: v5e:2x2
jax: 0.10.0
libtpu: 0.0.40
codegen_flags: <defaults>
</compile_context>

<pallas_src>
import functools
import itertools as it

import numpy as np
import jax
import jax.numpy as jnp
from jax.experimental import pallas as pl
from jax.experimental.pallas import tpu as pltpu

LN_EPS = 1e-5                 # nn.LayerNorm default
NEG_INF = jnp.float32(-1e30)  # finite "-inf": each row keeps its own window unmasked


# ----------------------------------------------------------------------------
# small math helpers usable inside kernels
# ----------------------------------------------------------------------------
def _erf_approx(x):
    # Abramowitz & Stegun 7.1.26 rational approximation (|err| < 1.5e-7).
    # TODO(synk): exact torch.erf replaced by this rational approx + approx reciprocal.
    a1, a2, a3, a4, a5 = 0.254829592, -0.284496736, 1.421413741, -1.453152027, 1.061405429
    p = 0.3275911
    sgn = jnp.where(x >= 0, 1.0, -1.0).astype(x.dtype)
    ax = jnp.abs(x)
    t = pl.reciprocal(1.0 + p * ax, approx=True)
    poly = ((((a5 * t + a4) * t + a3) * t + a2) * t + a1) * t
    return sgn * (1.0 - poly * jnp.exp(-ax * ax))


def _gelu(x):
    # nn.GELU() default = erf GELU
    return 0.5 * x * (1.0 + _erf_approx(x * jnp.float32(0.7071067811865476)))


def _layernorm(x, gamma, beta):
    mu = jnp.mean(x, axis=-1, keepdims=True)
    var = jnp.mean((x - mu) ** 2, axis=-1, keepdims=True)
    return (x - mu) * jax.lax.rsqrt(var + LN_EPS) * gamma + beta


# ----------------------------------------------------------------------------
# fused Swin-block Pallas kernel (whole block per 128-token window sub-group)
# ----------------------------------------------------------------------------
def _swin_block_kernel(x_ref, bias_ref, wqkv_ref, bqkv_ref, wproj_ref, bproj_ref,
                       g1_ref, be1_ref, g2_ref, be2_ref,
                       w1_ref, b1_ref, w2_ref, b2_ref, o_ref, *, num_heads):
    """One window sub-group (SG whole windows, SGL = SG*L tokens) per grid step.

    x_ref:    (1, SGL, C)        sub-group tokens (pre-norm1), f32
    bias_ref: (1, nh, SGL, SGL)  bf16 block-diag bias: rel-pos (+shift mask)
                                 within a window, -1e30 across windows
    o_ref:    (1, SGL, C)        full Swin block output (both residuals fused)
    """
    x = x_ref[0]                                    # (SGL, C) f32
    T, C = x.shape
    hd = C // num_heads

    # ---- attention: LN1 + fused QKV + block-diag attention + proj + residual-1
    xn = _layernorm(x, g1_ref[0], be1_ref[0])
    qkv = jnp.dot(xn.astype(jnp.bfloat16), wqkv_ref[...],
                  preferred_element_type=jnp.float32) + bqkv_ref[0]        # (SGL, 3C)
    qkv_bf = qkv.astype(jnp.bfloat16)               # one cast; scale folded into Wq/bq

    attn = jnp.zeros((T, C), jnp.float32)
    for h in range(num_heads):                      # nh small; static unroll
        q = qkv_bf[:, h * hd:(h + 1) * hd]                                 # (SGL, hd)
        k = qkv_bf[:, C + h * hd:C + (h + 1) * hd]
        v = qkv_bf[:, 2 * C + h * hd:2 * C + (h + 1) * hd]
        # lane-dense sub-group scores; cross-window pairs killed by -1e30 bias
        s = jax.lax.dot_general(q, k, (((1,), (1,)), ((), ())),
                                preferred_element_type=jnp.float32)        # (SGL, SGL)
        s = s + bias_ref[0, h].astype(jnp.float32)
        s = s - jnp.max(s, axis=-1, keepdims=True)  # f32 softmax (v5e: no bf16 VALU/EUP)
        p = jnp.exp(s)
        p = p * pl.reciprocal(jnp.sum(p, axis=-1, keepdims=True), approx=True)
        pv = jnp.dot(p.astype(jnp.bfloat16), v,
                     preferred_element_type=jnp.float32)                   # (SGL, hd)
        # per-head output-projection accumulate: no head concat / lane merge
        attn = attn + jnp.dot(pv.astype(jnp.bfloat16),
                              wproj_ref[h * hd:(h + 1) * hd, :],
                              preferred_element_type=jnp.float32)          # (SGL, C)
    y = x + attn + bproj_ref[0]                     # residual-1 (+ proj bias once)

    # ---- MLP: LN2 + FC1 + GELU + FC2 + residual-2 (per-token -> fuse, no HBM trip)
    yn = _layernorm(y, g2_ref[0], be2_ref[0])
    hmid = jnp.dot(yn.astype(jnp.bfloat16), w1_ref[...],
                   preferred_element_type=jnp.float32) + b1_ref[0]         # (SGL, M)
    hmid = _gelu(hmid)
    y2 = jnp.dot(hmid.astype(jnp.bfloat16), w2_ref[...],
                 preferred_element_type=jnp.float32) + b2_ref[0]           # (SGL, C)
    o_ref[0] = y + y2                               # residual-2 fused


def fused_block_pallas(parted, bias, wqkv, bqkv, wproj, bproj,
                       g1, be1, g2, be2, w1, b1, w2, b2, *, num_heads, sgl):
    N, T, C = parted.shape
    nsg, nh = int(bias.shape[0]), int(bias.shape[1])
    M = int(w1.shape[1])
    wmap = lambda i, j: (0, 0)                      # resident weights
    kernel = functools.partial(_swin_block_kernel, num_heads=num_heads)
    return pl.pallas_call(
        kernel,
        out_shape=jax.ShapeDtypeStruct((N, T, C), jnp.float32),
        grid=(N, nsg),                              # >=2 parallel steps per core on v7x
        in_specs=[
            pl.BlockSpec((1, sgl, C), lambda i, j: (i, j, 0)),
            pl.BlockSpec((1, nh, sgl, sgl), lambda i, j: (j, 0, 0, 0)),   # bf16 bias
            pl.BlockSpec((C, 3 * C), wmap),
            pl.BlockSpec((1, 3 * C), wmap),
            pl.BlockSpec((C, C), wmap),
            pl.BlockSpec((1, C), wmap),
            pl.BlockSpec((1, C), wmap),
            pl.BlockSpec((1, C), wmap),
            pl.BlockSpec((1, C), wmap),
            pl.BlockSpec((1, C), wmap),
            pl.BlockSpec((C, M), wmap),
            pl.BlockSpec((1, M), wmap),
            pl.BlockSpec((M, C), wmap),
            pl.BlockSpec((1, C), wmap),
        ],
        out_specs=pl.BlockSpec((1, sgl, C), lambda i, j: (i, j, 0)),
        compiler_params=pltpu.CompilerParams(
            dimension_semantics=("parallel", "parallel"),
            vmem_limit_bytes=32 * 1024 * 1024),     # explicit budget (v7x/v5e safe)
    )(parted, bias, wqkv, bqkv, wproj, bproj, g1, be1, g2, be2, w1, b1, w2, b2)


# ----------------------------------------------------------------------------
# JAX / numpy glue reproducing the module's index math exactly
# ----------------------------------------------------------------------------
def window_partition_grouped(x, window_size):
    # 'n (n0 w0) (n1 w1) (n2 w2) c -> n (n0 n1 n2 w0 w1 w2) c'
    N, D, H, W, C = x.shape
    w0, w1, w2 = window_size
    n0, n1, n2 = D // w0, H // w1, W // w2
    x = x.reshape(N, n0, w0, n1, w1, n2, w2, C)
    x = jnp.transpose(x, (0, 1, 3, 5, 2, 4, 6, 7))
    return x.reshape(N, n0 * n1 * n2 * w0 * w1 * w2, C)


def window_reverse_grouped(x, window_size, out_shape):
    N, D, H, W, C = out_shape
    w0, w1, w2 = window_size
    n0, n1, n2 = D // w0, H // w1, W // w2
    x = x.reshape(N, n0, n1, n2, w0, w1, w2, C)
    x = jnp.transpose(x, (0, 1, 4, 2, 5, 3, 6, 7))
    return x.reshape(N, D, H, W, C)


def compute_relative_position_index(window_size):
    ws = np.asarray(window_size, dtype=np.int64)
    grids = np.meshgrid(*[np.arange(w) for w in ws], indexing="ij")
    coords = np.stack([g.reshape(-1) for g in grids], axis=-1)        # (L, 3)
    rel = coords[:, None, :] - coords[None, :, :] + (ws - 1)          # (L, L, 3)
    mult = np.flip(np.cumprod(np.flip(2 * ws[1:] - 1)))               # [(2w1-1)(2w2-1), (2w2-1)]
    rel = rel.astype(np.int64)
    rel[..., :-1] *= mult
    return rel.sum(-1).reshape(-1)                                    # (L*L,)


def compute_shift_attn_mask(spatial_shape, window_size, shift_size):
    img_mask = np.zeros(spatial_shape, dtype=np.int8)
    slices_per_dim = [[slice(s, None), slice(s)] if s else [slice(None)]
                      for s in shift_size]
    for i, slc in enumerate(it.product(*slices_per_dim)):
        img_mask[slc] = i
    w0, w1, w2 = window_size
    D, H, W = spatial_shape
    n0, n1, n2 = D // w0, H // w1, W // w2
    m = img_mask.reshape(n0, w0, n1, w1, n2, w2)
    m = m.transpose(0, 2, 4, 1, 3, 5).reshape(n0 * n1 * n2, w0 * w1 * w2)
    return m[:, None, :] == m[:, :, None]                             # (nw, L, L) bool


def _choose_windows_per_group(nw, L, N):
    """Windows per sub-group: keep score tile ~<=128 tokens (16 live vregs/head)
    and >=4 total grid steps when possible (2 TensorCores on v7x + pipeline)."""
    candidates = [sg for sg in range(nw, 0, -1) if nw % sg == 0]
    tok_cap = max(L, 128)
    for sg in candidates:
        if sg * L <= tok_cap and N * (nw // sg) >= 4:
            return sg
    for sg in candidates:
        if sg * L <= tok_cap:
            return sg
    return 1


def build_allow_mask(shift_mask, nw, L, sg):
    """Block-diagonal boolean allow-mask per sub-group: (nsg, SG*L, SG*L)."""
    nsg = nw // sg
    per_win = (np.ones((nw, L, L), dtype=bool) if shift_mask is None
               else np.asarray(shift_mask, dtype=bool))
    per_win = per_win.reshape(nsg, sg, L, L)
    allow = np.zeros((nsg, sg, L, sg, L), dtype=bool)
    for w in range(sg):
        allow[:, w, :, w, :] = per_win[:, w]
    return allow.reshape(nsg, sg * L, sg * L)


def build_tiled_rel_index(rel_index, L, sg):
    """(SG*L, SG*L) gather indices: rel-pos index tiled on the diagonal blocks."""
    ri = np.asarray(rel_index).reshape(L, L)
    tiled = np.zeros((sg * L, sg * L), dtype=np.int32)
    for w in range(sg):
        tiled[w * L:(w + 1) * L, w * L:(w + 1) * L] = ri
    return tiled


def build_block_bias(rpb_table, tiled_idx, allow):
    """bf16 (nsg, nh, SGL, SGL) bias: rel-pos where allowed, -1e30 elsewhere."""
    rpb_tiled = rpb_table[:, jnp.asarray(tiled_idx)]                  # (nh, SGL, SGL)
    bias = jnp.where(jnp.asarray(allow)[:, None], rpb_tiled[None], NEG_INF)
    return bias.astype(jnp.bfloat16)                                  # (nsg, nh, SGL, SGL)


def swin_block_forward(x, p, window_size, shift_size, allow, tiled_idx, num_heads, sg):
    N, D, H, W, C = x.shape
    w0, w1, w2 = (int(v) for v in window_size)
    L = w0 * w1 * w2
    sgl = sg * L
    scale = float((C // num_heads) ** -0.5)

    # roll + partition (permutations; LN1/MLP/residuals are per-token -> commute)
    if shift_size.any():
        xs = jnp.roll(x, tuple(int(s) for s in shift_size), axis=(1, 2, 3))
    else:
        xs = x
    parted = window_partition_grouped(xs, (w0, w1, w2))               # (N, T, C)

    bias = build_block_bias(p["rpb_table"], tiled_idx, allow)         # bf16 resident

    # fold the attention scale into the Q projection (trace-time, tiny)
    wqkv_s = p["wqkv"].at[:, :C].multiply(scale).astype(jnp.bfloat16)
    bqkv_s = p["bqkv"].at[:, :C].multiply(scale)

    y = fused_block_pallas(
        parted, bias, wqkv_s, bqkv_s,
        p["wproj"].astype(jnp.bfloat16), p["bproj"],
        p["gamma1"], p["beta1"], p["gamma2"], p["beta2"],
        p["w1"].astype(jnp.bfloat16), p["b1"],
        p["w2"].astype(jnp.bfloat16), p["b2"],
        num_heads=num_heads, sgl=sgl)

    z = window_reverse_grouped(y, (w0, w1, w2), (N, D, H, W, C))
    if shift_size.any():
        z = jnp.roll(z, tuple(-int(s) for s in shift_size), axis=(1, 2, 3))
    return z


@functools.partial(jax.jit, static_argnames=("num_heads", "max_window_size", "slide",
                                              "num_pending_hw_downsamples"))
def swin_layer_forward(x, params, *, num_heads, max_window_size, slide=True,
                       num_pending_hw_downsamples=0):
    # x: (N, C, D, H, W) channel-first float32
    N, C, D, H, W = x.shape
    spatial = np.array([D, H, W])
    window_size = np.array(max_window_size).copy()
    window_size[0] = min(max(int(window_size[0]) >> num_pending_hw_downsamples, 1), D)
    assert (spatial % window_size == 0).all(), "padding not supported"
    w0, w1, w2 = (int(v) for v in window_size)
    L = w0 * w1 * w2
    nw = (D // w0) * (H // w1) * (W // w2)
    sg = _choose_windows_per_group(nw, L, N)

    # hoisted once per layer (numpy, trace time): gather indices + allow masks
    rel_index = compute_relative_position_index((w0, w1, w2))
    tiled_idx = build_tiled_rel_index(rel_index, L, sg)

    if slide:
        shift_size = window_size >> 1
        shift_size[spatial == window_size] = 0
    else:
        shift_size = np.zeros_like(window_size)

    allow_noshift = build_allow_mask(None, nw, L, sg)
    if slide and shift_size.any():
        sm = compute_shift_attn_mask((D, H, W), (w0, w1, w2),
                                     tuple(int(s) for s in shift_size))
        allow_shift = build_allow_mask(sm, nw, L, sg)
    else:
        allow_shift = allow_noshift

    x = jnp.transpose(x, (0, 2, 3, 4, 1))                             # channel last
    for b, bp in enumerate(params["blocks"]):
        if b % 2 == 0:
            bs, allow = np.zeros_like(shift_size), allow_noshift
        else:
            bs, allow = shift_size, allow_shift
        x = swin_block_forward(x, bp, window_size, bs, allow, tiled_idx, num_heads, sg)
    # last_norm defaults to Identity (SwinLayer(last_norm=False))
    return jnp.transpose(x, (0, 4, 1, 2, 3))


# ----------------------------------------------------------------------------
# deterministic parameter init (synthetic; module __init__ gives the shapes)
# ----------------------------------------------------------------------------
def init_swin_layer_params(key, dim, depth, num_heads, max_window_size, mlp_ratio=4.0):
    mlp_dim = int(dim * mlp_ratio)
    bias_table_len = int(np.prod(2 * np.array(max_window_size) - 1))
    blocks = []
    for _ in range(depth):
        key, *ks = jax.random.split(key, 10)
        blocks.append(dict(
            rpb_table=0.02 * jax.random.normal(ks[0], (num_heads, bias_table_len), jnp.float32),
            wqkv=0.02 * jax.random.normal(ks[1], (dim, 3 * dim), jnp.float32),
            bqkv=0.02 * jax.random.normal(ks[2], (1, 3 * dim), jnp.float32),
            wproj=0.02 * jax.random.normal(ks[3], (dim, dim), jnp.float32),
            bproj=0.02 * jax.random.normal(ks[4], (1, dim), jnp.float32),
            gamma1=jnp.ones((1, dim), jnp.float32),
            beta1=jnp.zeros((1, dim), jnp.float32),
            gamma2=jnp.ones((1, dim), jnp.float32),
            beta2=jnp.zeros((1, dim), jnp.float32),
            w1=0.02 * jax.random.normal(ks[5], (dim, mlp_dim), jnp.float32),
            b1=0.02 * jax.random.normal(ks[6], (1, mlp_dim), jnp.float32),
            w2=0.02 * jax.random.normal(ks[7], (mlp_dim, dim), jnp.float32),
            b2=0.02 * jax.random.normal(ks[8], (1, dim), jnp.float32),
        ))
    return dict(blocks=blocks)


# ----------------------------------------------------------------------------
if __name__ == "__main__":
    dim, depth, num_heads = 32, 2, 4
    max_window_size = (2, 4, 4)          # power-of-2 windows, 3D; L = 32 tokens/window
    N, D, H, W = 2, 4, 8, 8              # spatial divisible by window size

    key = jax.random.PRNGKey(0)
    kx, kp = jax.random.split(key)
    x = jax.random.normal(kx, (N, dim, D, H, W), jnp.float32)
    params = init_swin_layer_params(kp, dim, depth, num_heads, max_window_size)

    out = swin_layer_forward(x, params, num_heads=num_heads,
                             max_window_size=max_window_size, slide=True)
    out = jax.block_until_ready(out)

    assert out.shape == x.shape and out.dtype == x.dtype
    assert bool(jnp.all(jnp.isfinite(out)))
    print("KERNEL_OK")
</pallas_src>

<mosaic_0001>
module attributes {stable_mosaic.version = 11 : i64} {
  func.func @_swin_block_kernel(%arg0: i32, %arg1: i32, %arg2: memref<1x128x32xf32, #tpu.memory_space<vmem>>, %arg3: memref<1x4x128x128xbf16, #tpu.memory_space<vmem>>, %arg4: memref<32x96xbf16, #tpu.memory_space<vmem>>, %arg5: memref<1x96xf32, #tpu.memory_space<vmem>>, %arg6: memref<32x32xbf16, #tpu.memory_space<vmem>>, %arg7: memref<1x32xf32, #tpu.memory_space<vmem>>, %arg8: memref<1x32xf32, #tpu.memory_space<vmem>>, %arg9: memref<1x32xf32, #tpu.memory_space<vmem>>, %arg10: memref<1x32xf32, #tpu.memory_space<vmem>>, %arg11: memref<1x32xf32, #tpu.memory_space<vmem>>, %arg12: memref<32x128xbf16, #tpu.memory_space<vmem>>, %arg13: memref<1x128xf32, #tpu.memory_space<vmem>>, %arg14: memref<128x32xbf16, #tpu.memory_space<vmem>>, %arg15: memref<1x32xf32, #tpu.memory_space<vmem>>, %arg16: memref<1x128x32xf32, #tpu.memory_space<vmem>>) attributes {dimension_semantics = [#tpu.dimension_semantics<parallel>, #tpu.dimension_semantics<parallel>], iteration_bounds = array<i64: 2, 2>, scalar_prefetch = 0 : i64, scratch_operands = 0 : i64, tpu.core_type = #tpu.core_type<tc>, window_params = [{transform_indices = @transform_0, window_bounds = array<i64: 1, 128, 32>}, {transform_indices = @transform_1, window_bounds = array<i64: 1, 4, 128, 128>}, {pipeline_mode = #tpu.pipeline_mode<synchronous>, transform_indices = @transform_2, window_bounds = array<i64: 32, 96>}, {pipeline_mode = #tpu.pipeline_mode<synchronous>, transform_indices = @transform_3, window_bounds = array<i64: 1, 96>}, {pipeline_mode = #tpu.pipeline_mode<synchronous>, transform_indices = @transform_4, window_bounds = array<i64: 32, 32>}, {pipeline_mode = #tpu.pipeline_mode<synchronous>, transform_indices = @transform_5, window_bounds = array<i64: 1, 32>}, {pipeline_mode = #tpu.pipeline_mode<synchronous>, transform_indices = @transform_6, window_bounds = array<i64: 1, 32>}, {pipeline_mode = #tpu.pipeline_mode<synchronous>, transform_indices = @transform_7, window_bounds = array<i64: 1, 32>}, {pipeline_mode = #tpu.pipeline_mode<synchronous>, transform_indices = @transform_8, window_bounds = array<i64: 1, 32>}, {pipeline_mode = #tpu.pipeline_mode<synchronous>, transform_indices = @transform_9, window_bounds = array<i64: 1, 32>}, {pipeline_mode = #tpu.pipeline_mode<synchronous>, transform_indices = @transform_10, window_bounds = array<i64: 32, 128>}, {pipeline_mode = #tpu.pipeline_mode<synchronous>, transform_indices = @transform_11, window_bounds = array<i64: 1, 128>}, {pipeline_mode = #tpu.pipeline_mode<synchronous>, transform_indices = @transform_12, window_bounds = array<i64: 128, 32>}, {pipeline_mode = #tpu.pipeline_mode<synchronous>, transform_indices = @transform_13, window_bounds = array<i64: 1, 32>}, {transform_indices = @transform_14, window_bounds = array<i64: 1, 128, 32>}]} {
    %c0 = arith.constant 0 : index
    %c0_0 = arith.constant 0 : index
    %c0_1 = arith.constant 0 : index
    %0 = vector.load %arg2[%c0, %c0_0, %c0_1] : memref<1x128x32xf32, #tpu.memory_space<vmem>>, vector<1x128x32xf32>
    %1 = vector.shape_cast %0 : vector<1x128x32xf32> to vector<128x32xf32>
    %c0_2 = arith.constant 0 : index
    %c0_3 = arith.constant 0 : index
    %2 = vector.load %arg8[%c0_2, %c0_3] : memref<1x32xf32, #tpu.memory_space<vmem>>, vector<1x32xf32>
    %3 = vector.shape_cast %2 : vector<1x32xf32> to vector<32xf32>
    %c0_4 = arith.constant 0 : index
    %c0_5 = arith.constant 0 : index
    %4 = vector.load %arg9[%c0_4, %c0_5] : memref<1x32xf32, #tpu.memory_space<vmem>>, vector<1x32xf32>
    %5 = vector.shape_cast %4 : vector<1x32xf32> to vector<32xf32>
    %cst = arith.constant dense<0.000000e+00> : vector<128xf32>
    %6 = vector.multi_reduction <add>, %1, %cst [1] : vector<128x32xf32> to vector<128xf32>
    %7 = vector.shape_cast %6 : vector<128xf32> to vector<128x1xf32>
    %cst_6 = arith.constant 3.200000e+01 : f32
    %8 = vector.broadcast %cst_6 : f32 to vector<128x1xf32>
    %9 = arith.divf %7, %8 : vector<128x1xf32>
    %10 = vector.broadcast %9 : vector<128x1xf32> to vector<128x32xf32>
    %11 = arith.subf %1, %10 : vector<128x32xf32>
    %12 = arith.mulf %11, %11 : vector<128x32xf32>
    %cst_7 = arith.constant dense<0.000000e+00> : vector<128xf32>
    %13 = vector.multi_reduction <add>, %12, %cst_7 [1] : vector<128x32xf32> to vector<128xf32>
    %14 = vector.shape_cast %13 : vector<128xf32> to vector<128x1xf32>
    %cst_8 = arith.constant 3.200000e+01 : f32
    %15 = vector.broadcast %cst_8 : f32 to vector<128x1xf32>
    %16 = arith.divf %14, %15 : vector<128x1xf32>
    %17 = vector.broadcast %9 : vector<128x1xf32> to vector<128x32xf32>
    %18 = arith.subf %1, %17 : vector<128x32xf32>
    %cst_9 = arith.constant 9.99999974E-6 : f32
    %19 = vector.broadcast %cst_9 : f32 to vector<128x1xf32>
    %20 = arith.addf %16, %19 : vector<128x1xf32>
    %21 = math.rsqrt %20 : vector<128x1xf32>
    %22 = vector.broadcast %21 : vector<128x1xf32> to vector<128x32xf32>
    %23 = arith.mulf %18, %22 : vector<128x32xf32>
    %24 = vector.shape_cast %3 : vector<32xf32> to vector<1x32xf32>
    %25 = vector.broadcast %24 : vector<1x32xf32> to vector<128x32xf32>
    %26 = arith.mulf %23, %25 : vector<128x32xf32>
    %27 = vector.shape_cast %5 : vector<32xf32> to vector<1x32xf32>
    %28 = vector.broadcast %27 : vector<1x32xf32> to vector<128x32xf32>
    %29 = arith.addf %26, %28 : vector<128x32xf32>
    %30 = arith.truncf %29 : vector<128x32xf32> to vector<128x32xbf16>
    %c0_10 = arith.constant 0 : index
    %c0_11 = arith.constant 0 : index
    %31 = vector.load %arg4[%c0_10, %c0_11] : memref<32x96xbf16, #tpu.memory_space<vmem>>, vector<32x96xbf16>
    %cst_12 = arith.constant dense<0.000000e+00> : vector<128x96xf32>
    %32 = tpu.matmul %30, %31, %cst_12 {dimension_numbers = #tpu.dot_dimension_numbers<[1], [0], [0], [1], [0, 0, 1, 1], [], []>} : vector<128x32xbf16>, vector<32x96xbf16>, vector<128x96xf32> -> vector<128x96xf32>
    %c0_13 = arith.constant 0 : index
    %c0_14 = arith.constant 0 : index
    %33 = vector.load %arg5[%c0_13, %c0_14] : memref<1x96xf32, #tpu.memory_space<vmem>>, vector<1x96xf32>
    %34 = vector.shape_cast %33 : vector<1x96xf32> to vector<96xf32>
    %35 = vector.shape_cast %34 : vector<96xf32> to vector<1x96xf32>
    %36 = vector.broadcast %35 : vector<1x96xf32> to vector<128x96xf32>
    %37 = arith.addf %32, %36 : vector<128x96xf32>
    %38 = arith.truncf %37 : vector<128x96xf32> to vector<128x96xbf16>
    %cst_15 = arith.constant 0.000000e+00 : f32
    %39 = vector.broadcast %cst_15 : f32 to vector<128x32xf32>
    %40 = vector.extract_strided_slice %38 {offsets = [0, 0], sizes = [128, 8], strides = [1, 1]} : vector<128x96xbf16> to vector<128x8xbf16>
    %41 = vector.extract_strided_slice %38 {offsets = [0, 32], sizes = [128, 8], strides = [1, 1]} : vector<128x96xbf16> to vector<128x8xbf16>
    %42 = vector.extract_strided_slice %38 {offsets = [0, 64], sizes = [128, 8], strides = [1, 1]} : vector<128x96xbf16> to vector<128x8xbf16>
    %cst_16 = arith.constant dense<0.000000e+00> : vector<128x128xf32>
    %43 = tpu.matmul %40, %41, %cst_16 {dimension_numbers = #tpu.dot_dimension_numbers<[1], [1], [0], [0], [0, 0, 1, 0], [], []>} : vector<128x8xbf16>, vector<128x8xbf16>, vector<128x128xf32> -> vector<128x128xf32>
    %c0_17 = arith.constant 0 : index
    %c0_18 = arith.constant 0 : index
    %c0_19 = arith.constant 0 : index
    %c0_20 = arith.constant 0 : index
    %44 = vector.load %arg3[%c0_17, %c0_18, %c0_19, %c0_20] : memref<1x4x128x128xbf16, #tpu.memory_space<vmem>>, vector<1x1x128x128xbf16>
    %45 = vector.shape_cast %44 : vector<1x1x128x128xbf16> to vector<128x128xbf16>
    %46 = arith.extf %45 : vector<128x128xbf16> to vector<128x128xf32>
    %47 = arith.addf %43, %46 : vector<128x128xf32>
    %cst_21 = arith.constant dense<0xFF800000> : vector<128xf32>
    %48 = vector.multi_reduction <maximumf>, %47, %cst_21 [1] : vector<128x128xf32> to vector<128xf32>
    %49 = vector.shape_cast %48 : vector<128xf32> to vector<128x1xf32>
    %50 = vector.broadcast %49 : vector<128x1xf32> to vector<128x128xf32>
    %51 = arith.subf %47, %50 : vector<128x128xf32>
    %52 = math.exp %51 : vector<128x128xf32>
    %cst_22 = arith.constant dense<0.000000e+00> : vector<128xf32>
    %53 = vector.multi_reduction <add>, %52, %cst_22 [1] : vector<128x128xf32> to vector<128xf32>
    %54 = vector.shape_cast %53 : vector<128xf32> to vector<128x1xf32>
    %55 = tpu.reciprocal %54 {approx = true} : vector<128x1xf32> -> vector<128x1xf32>
    %56 = vector.broadcast %55 : vector<128x1xf32> to vector<128x128xf32>
    %57 = arith.mulf %52, %56 : vector<128x128xf32>
    %58 = arith.truncf %57 : vector<128x128xf32> to vector<128x128xbf16>
    %cst_23 = arith.constant dense<0.000000e+00> : vector<128x8xf32>
    %59 = tpu.matmul %58, %42, %cst_23 {dimension_numbers = #tpu.dot_dimension_numbers<[1], [0], [0], [1], [0, 0, 1, 1], [], []>} : vector<128x128xbf16>, vector<128x8xbf16>, vector<128x8xf32> -> vector<128x8xf32>
    %60 = arith.truncf %59 : vector<128x8xf32> to vector<128x8xbf16>
    %c0_24 = arith.constant 0 : index
    %c0_25 = arith.constant 0 : index
    %61 = vector.load %arg6[%c0_24, %c0_25] : memref<32x32xbf16, #tpu.memory_space<vmem>>, vector<8x32xbf16>
    %cst_26 = arith.constant dense<0.000000e+00> : vector<128x32xf32>
    %62 = tpu.matmul %60, %61, %cst_26 {dimension_numbers = #tpu.dot_dimension_numbers<[1], [0], [0], [1], [0, 0, 1, 1], [], []>} : vector<128x8xbf16>, vector<8x32xbf16>, vector<128x32xf32> -> vector<128x32xf32>
    %63 = arith.addf %39, %62 : vector<128x32xf32>
    %64 = vector.extract_strided_slice %38 {offsets = [0, 8], sizes = [128, 8], strides = [1, 1]} : vector<128x96xbf16> to vector<128x8xbf16>
    %65 = vector.extract_strided_slice %38 {offsets = [0, 40], sizes = [128, 8], strides = [1, 1]} : vector<128x96xbf16> to vector<128x8xbf16>
    %66 = vector.extract_strided_slice %38 {offsets = [0, 72], sizes = [128, 8], strides = [1, 1]} : vector<128x96xbf16> to vector<128x8xbf16>
    %cst_27 = arith.constant dense<0.000000e+00> : vector<128x128xf32>
    %67 = tpu.matmul %64, %65, %cst_27 {dimension_numbers = #tpu.dot_dimension_numbers<[1], [1], [0], [0], [0, 0, 1, 0], [], []>} : vector<128x8xbf16>, vector<128x8xbf16>, vector<128x128xf32> -> vector<128x128xf32>
    %c0_28 = arith.constant 0 : index
    %c1 = arith.constant 1 : index
    %c0_29 = arith.constant 0 : index
    %c0_30 = arith.constant 0 : index
    %68 = vector.load %arg3[%c0_28, %c1, %c0_29, %c0_30] : memref<1x4x128x128xbf16, #tpu.memory_space<vmem>>, vector<1x1x128x128xbf16>
    %69 = vector.shape_cast %68 : vector<1x1x128x128xbf16> to vector<128x128xbf16>
    %70 = arith.extf %69 : vector<128x128xbf16> to vector<128x128xf32>
    %71 = arith.addf %67, %70 : vector<128x128xf32>
    %cst_31 = arith.constant dense<0xFF800000> : vector<128xf32>
    %72 = vector.multi_reduction <maximumf>, %71, %cst_31 [1] : vector<128x128xf32> to vector<128xf32>
    %73 = vector.shape_cast %72 : vector<128xf32> to vector<128x1xf32>
    %74 = vector.broadcast %73 : vector<128x1xf32> to vector<128x128xf32>
    %75 = arith.subf %71, %74 : vector<128x128xf32>
    %76 = math.exp %75 : vector<128x128xf32>
    %cst_32 = arith.constant dense<0.000000e+00> : vector<128xf32>
    %77 = vector.multi_reduction <add>, %76, %cst_32 [1] : vector<128x128xf32> to vector<128xf32>
    %78 = vector.shape_cast %77 : vector<128xf32> to vector<128x1xf32>
    %79 = tpu.reciprocal %78 {approx = true} : vector<128x1xf32> -> vector<128x1xf32>
    %80 = vector.broadcast %79 : vector<128x1xf32> to vector<128x128xf32>
    %81 = arith.mulf %76, %80 : vector<128x128xf32>
    %82 = arith.truncf %81 : vector<128x128xf32> to vector<128x128xbf16>
    %cst_33 = arith.constant dense<0.000000e+00> : vector<128x8xf32>
    %83 = tpu.matmul %82, %66, %cst_33 {dimension_numbers = #tpu.dot_dimension_numbers<[1], [0], [0], [1], [0, 0, 1, 1], [], []>} : vector<128x128xbf16>, vector<128x8xbf16>, vector<128x8xf32> -> vector<128x8xf32>
    %84 = arith.truncf %83 : vector<128x8xf32> to vector<128x8xbf16>
    %c8 = arith.constant 8 : index
    %c0_34 = arith.constant 0 : index
    %85 = vector.load %arg6[%c8, %c0_34] : memref<32x32xbf16, #tpu.memory_space<vmem>>, vector<8x32xbf16>
    %cst_35 = arith.constant dense<0.000000e+00> : vector<128x32xf32>
    %86 = tpu.matmul %84, %85, %cst_35 {dimension_numbers = #tpu.dot_dimension_numbers<[1], [0], [0], [1], [0, 0, 1, 1], [], []>} : vector<128x8xbf16>, vector<8x32xbf16>, vector<128x32xf32> -> vector<128x32xf32>
    %87 = arith.addf %63, %86 : vector<128x32xf32>
    %88 = vector.extract_strided_slice %38 {offsets = [0, 16], sizes = [128, 8], strides = [1, 1]} : vector<128x96xbf16> to vector<128x8xbf16>
    %89 = vector.extract_strided_slice %38 {offsets = [0, 48], sizes = [128, 8], strides = [1, 1]} : vector<128x96xbf16> to vector<128x8xbf16>
    %90 = vector.extract_strided_slice %38 {offsets = [0, 80], sizes = [128, 8], strides = [1, 1]} : vector<128x96xbf16> to vector<128x8xbf16>
    %cst_36 = arith.constant dense<0.000000e+00> : vector<128x128xf32>
    %91 = tpu.matmul %88, %89, %cst_36 {dimension_numbers = #tpu.dot_dimension_numbers<[1], [1], [0], [0], [0, 0, 1, 0], [], []>} : vector<128x8xbf16>, vector<128x8xbf16>, vector<128x128xf32> -> vector<128x128xf32>
    %c0_37 = arith.constant 0 : index
    %c2 = arith.constant 2 : index
    %c0_38 = arith.constant 0 : index
    %c0_39 = arith.constant 0 : index
    %92 = vector.load %arg3[%c0_37, %c2, %c0_38, %c0_39] : memref<1x4x128x128xbf16, #tpu.memory_space<vmem>>, vector<1x1x128x128xbf16>
    %93 = vector.shape_cast %92 : vector<1x1x128x128xbf16> to vector<128x128xbf16>
    %94 = arith.extf %93 : vector<128x128xbf16> to vector<128x128xf32>
    %95 = arith.addf %91, %94 : vector<128x128xf32>
    %cst_40 = arith.constant dense<0xFF800000> : vector<128xf32>
    %96 = vector.multi_reduction <maximumf>, %95, %cst_40 [1] : vector<128x128xf32> to vector<128xf32>
    %97 = vector.shape_cast %96 : vector<128xf32> to vector<128x1xf32>
    %98 = vector.broadcast %97 : vector<128x1xf32> to vector<128x128xf32>
    %99 = arith.subf %95, %98 : vector<128x128xf32>
    %100 = math.exp %99 : vector<128x128xf32>
    %cst_41 = arith.constant dense<0.000000e+00> : vector<128xf32>
    %101 = vector.multi_reduction <add>, %100, %cst_41 [1] : vector<128x128xf32> to vector<128xf32>
    %102 = vector.shape_cast %101 : vector<128xf32> to vector<128x1xf32>
    %103 = tpu.reciprocal %102 {approx = true} : vector<128x1xf32> -> vector<128x1xf32>
    %104 = vector.broadcast %103 : vector<128x1xf32> to vector<128x128xf32>
    %105 = arith.mulf %100, %104 : vector<128x128xf32>
    %106 = arith.truncf %105 : vector<128x128xf32> to vector<128x128xbf16>
    %cst_42 = arith.constant dense<0.000000e+00> : vector<128x8xf32>
    %107 = tpu.matmul %106, %90, %cst_42 {dimension_numbers = #tpu.dot_dimension_numbers<[1], [0], [0], [1], [0, 0, 1, 1], [], []>} : vector<128x128xbf16>, vector<128x8xbf16>, vector<128x8xf32> -> vector<128x8xf32>
    %108 = arith.truncf %107 : vector<128x8xf32> to vector<128x8xbf16>
    %c16 = arith.constant 16 : index
    %c0_43 = arith.constant 0 : index
    %109 = vector.load %arg6[%c16, %c0_43] : memref<32x32xbf16, #tpu.memory_space<vmem>>, vector<8x32xbf16>
    %cst_44 = arith.constant dense<0.000000e+00> : vector<128x32xf32>
    %110 = tpu.matmul %108, %109, %cst_44 {dimension_numbers = #tpu.dot_dimension_numbers<[1], [0], [0], [1], [0, 0, 1, 1], [], []>} : vector<128x8xbf16>, vector<8x32xbf16>, vector<128x32xf32> -> vector<128x32xf32>
    %111 = arith.addf %87, %110 : vector<128x32xf32>
    %112 = vector.extract_strided_slice %38 {offsets = [0, 24], sizes = [128, 8], strides = [1, 1]} : vector<128x96xbf16> to vector<128x8xbf16>
    %113 = vector.extract_strided_slice %38 {offsets = [0, 56], sizes = [128, 8], strides = [1, 1]} : vector<128x96xbf16> to vector<128x8xbf16>
    %114 = vector.extract_strided_slice %38 {offsets = [0, 88], sizes = [128, 8], strides = [1, 1]} : vector<128x96xbf16> to vector<128x8xbf16>
    %cst_45 = arith.constant dense<0.000000e+00> : vector<128x128xf32>
    %115 = tpu.matmul %112, %113, %cst_45 {dimension_numbers = #tpu.dot_dimension_numbers<[1], [1], [0], [0], [0, 0, 1, 0], [], []>} : vector<128x8xbf16>, vector<128x8xbf16>, vector<128x128xf32> -> vector<128x128xf32>
    %c0_46 = arith.constant 0 : index
    %c3 = arith.constant 3 : index
    %c0_47 = arith.constant 0 : index
    %c0_48 = arith.constant 0 : index
    %116 = vector.load %arg3[%c0_46, %c3, %c0_47, %c0_48] : memref<1x4x128x128xbf16, #tpu.memory_space<vmem>>, vector<1x1x128x128xbf16>
    %117 = vector.shape_cast %116 : vector<1x1x128x128xbf16> to vector<128x128xbf16>
    %118 = arith.extf %117 : vector<128x128xbf16> to vector<128x128xf32>
    %119 = arith.addf %115, %118 : vector<128x128xf32>
    %cst_49 = arith.constant dense<0xFF800000> : vector<128xf32>
    %120 = vector.multi_reduction <maximumf>, %119, %cst_49 [1] : vector<128x128xf32> to vector<128xf32>
    %121 = vector.shape_cast %120 : vector<128xf32> to vector<128x1xf32>
    %122 = vector.broadcast %121 : vector<128x1xf32> to vector<128x128xf32>
    %123 = arith.subf %119, %122 : vector<128x128xf32>
    %124 = math.exp %123 : vector<128x128xf32>
    %cst_50 = arith.constant dense<0.000000e+00> : vector<128xf32>
    %125 = vector.multi_reduction <add>, %124, %cst_50 [1] : vector<128x128xf32> to vector<128xf32>
    %126 = vector.shape_cast %125 : vector<128xf32> to vector<128x1xf32>
    %127 = tpu.reciprocal %126 {approx = true} : vector<128x1xf32> -> vector<128x1xf32>
    %128 = vector.broadcast %127 : vector<128x1xf32> to vector<128x128xf32>
    %129 = arith.mulf %124, %128 : vector<128x128xf32>
    %130 = arith.truncf %129 : vector<128x128xf32> to vector<128x128xbf16>
    %cst_51 = arith.constant dense<0.000000e+00> : vector<128x8xf32>
    %131 = tpu.matmul %130, %114, %cst_51 {dimension_numbers = #tpu.dot_dimension_numbers<[1], [0], [0], [1], [0, 0, 1, 1], [], []>} : vector<128x128xbf16>, vector<128x8xbf16>, vector<128x8xf32> -> vector<128x8xf32>
    %132 = arith.truncf %131 : vector<128x8xf32> to vector<128x8xbf16>
    %c24 = arith.constant 24 : index
    %c0_52 = arith.constant 0 : index
    %133 = vector.load %arg6[%c24, %c0_52] : memref<32x32xbf16, #tpu.memory_space<vmem>>, vector<8x32xbf16>
    %cst_53 = arith.constant dense<0.000000e+00> : vector<128x32xf32>
    %134 = tpu.matmul %132, %133, %cst_53 {dimension_numbers = #tpu.dot_dimension_numbers<[1], [0], [0], [1], [0, 0, 1, 1], [], []>} : vector<128x8xbf16>, vector<8x32xbf16>, vector<128x32xf32> -> vector<128x32xf32>
    %135 = arith.addf %111, %134 : vector<128x32xf32>
    %136 = arith.addf %1, %135 : vector<128x32xf32>
    %c0_54 = arith.constant 0 : index
    %c0_55 = arith.constant 0 : index
    %137 = vector.load %arg7[%c0_54, %c0_55] : memref<1x32xf32, #tpu.memory_space<vmem>>, vector<1x32xf32>
    %138 = vector.shape_cast %137 : vector<1x32xf32> to vector<32xf32>
    %139 = vector.shape_cast %138 : vector<32xf32> to vector<1x32xf32>
    %140 = vector.broadcast %139 : vector<1x32xf32> to vector<128x32xf32>
    %141 = arith.addf %136, %140 : vector<128x32xf32>
    %c0_56 = arith.constant 0 : index
    %c0_57 = arith.constant 0 : index
    %142 = vector.load %arg10[%c0_56, %c0_57] : memref<1x32xf32, #tpu.memory_space<vmem>>, vector<1x32xf32>
    %143 = vector.shape_cast %142 : vector<1x32xf32> to vector<32xf32>
    %c0_58 = arith.constant 0 : index
    %c0_59 = arith.constant 0 : index
    %144 = vector.load %arg11[%c0_58, %c0_59] : memref<1x32xf32, #tpu.memory_space<vmem>>, vector<1x32xf32>
    %145 = vector.shape_cast %144 : vector<1x32xf32> to vector<32xf32>
    %cst_60 = arith.constant dense<0.000000e+00> : vector<128xf32>
    %146 = vector.multi_reduction <add>, %141, %cst_60 [1] : vector<128x32xf32> to vector<128xf32>
    %147 = vector.shape_cast %146 : vector<128xf32> to vector<128x1xf32>
    %cst_61 = arith.constant 3.200000e+01 : f32
    %148 = vector.broadcast %cst_61 : f32 to vector<128x1xf32>
    %149 = arith.divf %147, %148 : vector<128x1xf32>
    %150 = vector.broadcast %149 : vector<128x1xf32> to vector<128x32xf32>
    %151 = arith.subf %141, %150 : vector<128x32xf32>
    %152 = arith.mulf %151, %151 : vector<128x32xf32>
    %cst_62 = arith.constant dense<0.000000e+00> : vector<128xf32>
    %153 = vector.multi_reduction <add>, %152, %cst_62 [1] : vector<128x32xf32> to vector<128xf32>
    %154 = vector.shape_cast %153 : vector<128xf32> to vector<128x1xf32>
    %cst_63 = arith.constant 3.200000e+01 : f32
    %155 = vector.broadcast %cst_63 : f32 to vector<128x1xf32>
    %156 = arith.divf %154, %155 : vector<128x1xf32>
    %157 = vector.broadcast %149 : vector<128x1xf32> to vector<128x32xf32>
    %158 = arith.subf %141, %157 : vector<128x32xf32>
    %cst_64 = arith.constant 9.99999974E-6 : f32
    %159 = vector.broadcast %cst_64 : f32 to vector<128x1xf32>
    %160 = arith.addf %156, %159 : vector<128x1xf32>
    %161 = math.rsqrt %160 : vector<128x1xf32>
    %162 = vector.broadcast %161 : vector<128x1xf32> to vector<128x32xf32>
    %163 = arith.mulf %158, %162 : vector<128x32xf32>
    %164 = vector.shape_cast %143 : vector<32xf32> to vector<1x32xf32>
    %165 = vector.broadcast %164 : vector<1x32xf32> to vector<128x32xf32>
    %166 = arith.mulf %163, %165 : vector<128x32xf32>
    %167 = vector.shape_cast %145 : vector<32xf32> to vector<1x32xf32>
    %168 = vector.broadcast %167 : vector<1x32xf32> to vector<128x32xf32>
    %169 = arith.addf %166, %168 : vector<128x32xf32>
    %170 = arith.truncf %169 : vector<128x32xf32> to vector<128x32xbf16>
    %c0_65 = arith.constant 0 : index
    %c0_66 = arith.constant 0 : index
    %171 = vector.load %arg12[%c0_65, %c0_66] : memref<32x128xbf16, #tpu.memory_space<vmem>>, vector<32x128xbf16>
    %cst_67 = arith.constant dense<0.000000e+00> : vector<128x128xf32>
    %172 = tpu.matmul %170, %171, %cst_67 {dimension_numbers = #tpu.dot_dimension_numbers<[1], [0], [0], [1], [0, 0, 1, 1], [], []>} : vector<128x32xbf16>, vector<32x128xbf16>, vector<128x128xf32> -> vector<128x128xf32>
    %c0_68 = arith.constant 0 : index
    %c0_69 = arith.constant 0 : index
    %173 = vector.load %arg13[%c0_68, %c0_69] : memref<1x128xf32, #tpu.memory_space<vmem>>, vector<1x128xf32>
    %174 = vector.shape_cast %173 : vector<1x128xf32> to vector<128xf32>
    %175 = vector.shape_cast %174 : vector<128xf32> to vector<1x128xf32>
    %176 = vector.broadcast %175 : vector<1x128xf32> to vector<128x128xf32>
    %177 = arith.addf %172, %176 : vector<128x128xf32>
    %cst_70 = arith.constant 5.000000e-01 : f32
    %178 = vector.broadcast %cst_70 : f32 to vector<128x128xf32>
    %179 = arith.mulf %178, %177 : vector<128x128xf32>
    %cst_71 = arith.constant 0.707106769 : f32
    %180 = vector.broadcast %cst_71 : f32 to vector<128x128xf32>
    %181 = arith.mulf %177, %180 : vector<128x128xf32>
    %cst_72 = arith.constant 0.000000e+00 : f32
    %182 = vector.broadcast %cst_72 : f32 to vector<128x128xf32>
    %183 = arith.cmpf oge, %181, %182 : vector<128x128xf32>
    %cst_73 = arith.constant 1.000000e+00 : f32
    %cst_74 = arith.constant -1.000000e+00 : f32
    %184 = vector.broadcast %cst_73 : f32 to vector<128x128xf32>
    %185 = vector.broadcast %cst_74 : f32 to vector<128x128xf32>
    %186 = arith.select %183, %184, %185 : vector<128x128xi1>, vector<128x128xf32>
    %187 = math.absf %181 : vector<128x128xf32>
    %cst_75 = arith.constant 0.327591091 : f32
    %188 = vector.broadcast %cst_75 : f32 to vector<128x128xf32>
    %189 = arith.mulf %188, %187 : vector<128x128xf32>
    %cst_76 = arith.constant 1.000000e+00 : f32
    %190 = vector.broadcast %cst_76 : f32 to vector<128x128xf32>
    %191 = arith.addf %190, %189 : vector<128x128xf32>
    %192 = tpu.reciprocal %191 {approx = true} : vector<128x128xf32> -> vector<128x128xf32>
    %cst_77 = arith.constant 1.06140542 : f32
    %193 = vector.broadcast %cst_77 : f32 to vector<128x128xf32>
    %194 = arith.mulf %193, %192 : vector<128x128xf32>
    %cst_78 = arith.constant -1.45315206 : f32
    %195 = vector.broadcast %cst_78 : f32 to vector<128x128xf32>
    %196 = arith.addf %194, %195 : vector<128x128xf32>
    %197 = arith.mulf %196, %192 : vector<128x128xf32>
    %cst_79 = arith.constant 1.42141378 : f32
    %198 = vector.broadcast %cst_79 : f32 to vector<128x128xf32>
    %199 = arith.addf %197, %198 : vector<128x128xf32>
    %200 = arith.mulf %199, %192 : vector<128x128xf32>
    %cst_80 = arith.constant -0.284496725 : f32
    %201 = vector.broadcast %cst_80 : f32 to vector<128x128xf32>
    %202 = arith.addf %200, %201 : vector<128x128xf32>
    %203 = arith.mulf %202, %192 : vector<128x128xf32>
    %cst_81 = arith.constant 0.254829586 : f32
    %204 = vector.broadcast %cst_81 : f32 to vector<128x128xf32>
    %205 = arith.addf %203, %204 : vector<128x128xf32>
    %206 = arith.mulf %205, %192 : vector<128x128xf32>
    %cst_82 = arith.constant 0.000000e+00 : f32
    %207 = vector.broadcast %cst_82 : f32 to vector<128x128xf32>
    %208 = arith.subf %207, %187 : vector<128x128xf32>
    %209 = arith.mulf %208, %187 : vector<128x128xf32>
    %210 = math.exp %209 : vector<128x128xf32>
    %211 = arith.mulf %206, %210 : vector<128x128xf32>
    %cst_83 = arith.constant 1.000000e+00 : f32
    %212 = vector.broadcast %cst_83 : f32 to vector<128x128xf32>
    %213 = arith.subf %212, %211 : vector<128x128xf32>
    %214 = arith.mulf %186, %213 : vector<128x128xf32>
    %cst_84 = arith.constant 1.000000e+00 : f32
    %215 = vector.broadcast %cst_84 : f32 to vector<128x128xf32>
    %216 = arith.addf %215, %214 : vector<128x128xf32>
    %217 = arith.mulf %179, %216 : vector<128x128xf32>
    %218 = arith.truncf %217 : vector<128x128xf32> to vector<128x128xbf16>
    %c0_85 = arith.constant 0 : index
    %c0_86 = arith.constant 0 : index
    %219 = vector.load %arg14[%c0_85, %c0_86] : memref<128x32xbf16, #tpu.memory_space<vmem>>, vector<128x32xbf16>
    %cst_87 = arith.constant dense<0.000000e+00> : vector<128x32xf32>
    %220 = tpu.matmul %218, %219, %cst_87 {dimension_numbers = #tpu.dot_dimension_numbers<[1], [0], [0], [1], [0, 0, 1, 1], [], []>} : vector<128x128xbf16>, vector<128x32xbf16>, vector<128x32xf32> -> vector<128x32xf32>
    %c0_88 = arith.constant 0 : index
    %c0_89 = arith.constant 0 : index
    %221 = vector.load %arg15[%c0_88, %c0_89] : memref<1x32xf32, #tpu.memory_space<vmem>>, vector<1x32xf32>
    %222 = vector.shape_cast %221 : vector<1x32xf32> to vector<32xf32>
    %223 = vector.shape_cast %222 : vector<32xf32> to vector<1x32xf32>
    %224 = vector.broadcast %223 : vector<1x32xf32> to vector<128x32xf32>
    %225 = arith.addf %220, %224 : vector<128x32xf32>
    %226 = arith.addf %141, %225 : vector<128x32xf32>
    %c0_90 = arith.constant 0 : index
    %c0_91 = arith.constant 0 : index
    %c0_92 = arith.constant 0 : index
    %227 = vector.load %arg16[%c0_90, %c0_91, %c0_92] : memref<1x128x32xf32, #tpu.memory_space<vmem>>, vector<1x128x32xf32>
    %228 = vector.shape_cast %227 : vector<1x128x32xf32> to vector<128x32xf32>
    %229 = vector.shape_cast %226 : vector<128x32xf32> to vector<1x128x32xf32>
    tpu.vector_store %arg16[%c0_90, %c0_91, %c0_92], %229 {strides = array<i32>} : memref<1x128x32xf32, #tpu.memory_space<vmem>>, vector<1x128x32xf32>,
    return
  }
  func.func @transform_0(%arg0: i32, %arg1: i32) -> (i32, i32, i32) {
    %c0_i32 = arith.constant 0 : i32
    %c0_i32_0 = arith.constant 0 : i32
    return %arg0, %arg1, %c0_i32 : i32, i32, i32
  }
  func.func @transform_1(%arg0: i32, %arg1: i32) -> (i32, i32, i32, i32) {
    %c0_i32 = arith.constant 0 : i32
    %c0_i32_0 = arith.constant 0 : i32
    %c0_i32_1 = arith.constant 0 : i32
    %c0_i32_2 = arith.constant 0 : i32
    return %arg1, %c0_i32, %c0_i32_0, %c0_i32_1 : i32, i32, i32, i32
  }
  func.func @transform_2(%arg0: i32, %arg1: i32) -> (i32, i32) {
    %c0_i32 = arith.constant 0 : i32
    %c0_i32_0 = arith.constant 0 : i32
    %c0_i32_1 = arith.constant 0 : i32
    return %c0_i32, %c0_i32_0 : i32, i32
  }
  func.func @transform_3(%arg0: i32, %arg1: i32) -> (i32, i32) {
    %c0_i32 = arith.constant 0 : i32
    %c0_i32_0 = arith.constant 0 : i32
    %c0_i32_1 = arith.constant 0 : i32
    return %c0_i32, %c0_i32_0 : i32, i32
  }
  func.func @transform_4(%arg0: i32, %arg1: i32) -> (i32, i32) {
    %c0_i32 = arith.constant 0 : i32
    %c0_i32_0 = arith.constant 0 : i32
    %c0_i32_1 = arith.constant 0 : i32
    return %c0_i32, %c0_i32_0 : i32, i32
  }
  func.func @transform_5(%arg0: i32, %arg1: i32) -> (i32, i32) {
    %c0_i32 = arith.constant 0 : i32
    %c0_i32_0 = arith.constant 0 : i32
    %c0_i32_1 = arith.constant 0 : i32
    return %c0_i32, %c0_i32_0 : i32, i32
  }
  func.func @transform_6(%arg0: i32, %arg1: i32) -> (i32, i32) {
    %c0_i32 = arith.constant 0 : i32
    %c0_i32_0 = arith.constant 0 : i32
    %c0_i32_1 = arith.constant 0 : i32
    return %c0_i32, %c0_i32_0 : i32, i32
  }
  func.func @transform_7(%arg0: i32, %arg1: i32) -> (i32, i32) {
    %c0_i32 = arith.constant 0 : i32
    %c0_i32_0 = arith.constant 0 : i32
    %c0_i32_1 = arith.constant 0 : i32
    return %c0_i32, %c0_i32_0 : i32, i32
  }
  func.func @transform_8(%arg0: i32, %arg1: i32) -> (i32, i32) {
    %c0_i32 = arith.constant 0 : i32
    %c0_i32_0 = arith.constant 0 : i32
    %c0_i32_1 = arith.constant 0 : i32
    return %c0_i32, %c0_i32_0 : i32, i32
  }
  func.func @transform_9(%arg0: i32, %arg1: i32) -> (i32, i32) {
    %c0_i32 = arith.constant 0 : i32
    %c0_i32_0 = arith.constant 0 : i32
    %c0_i32_1 = arith.constant 0 : i32
    return %c0_i32, %c0_i32_0 : i32, i32
  }
  func.func @transform_10(%arg0: i32, %arg1: i32) -> (i32, i32) {
    %c0_i32 = arith.constant 0 : i32
    %c0_i32_0 = arith.constant 0 : i32
    %c0_i32_1 = arith.constant 0 : i32
    return %c0_i32, %c0_i32_0 : i32, i32
  }
  func.func @transform_11(%arg0: i32, %arg1: i32) -> (i32, i32) {
    %c0_i32 = arith.constant 0 : i32
    %c0_i32_0 = arith.constant 0 : i32
    %c0_i32_1 = arith.constant 0 : i32
    return %c0_i32, %c0_i32_0 : i32, i32
  }
  func.func @transform_12(%arg0: i32, %arg1: i32) -> (i32, i32) {
    %c0_i32 = arith.constant 0 : i32
    %c0_i32_0 = arith.constant 0 : i32
    %c0_i32_1 = arith.constant 0 : i32
    return %c0_i32, %c0_i32_0 : i32, i32
  }
  func.func @transform_13(%arg0: i32, %arg1: i32) -> (i32, i32) {
    %c0_i32 = arith.constant 0 : i32
    %c0_i32_0 = arith.constant 0 : i32
    %c0_i32_1 = arith.constant 0 : i32
    return %c0_i32, %c0_i32_0 : i32, i32
  }
  func.func @transform_14(%arg0: i32, %arg1: i32) -> (i32, i32, i32) {
    %c0_i32 = arith.constant 0 : i32
    %c0_i32_0 = arith.constant 0 : i32
    return %arg0, %arg1, %c0_i32 : i32, i32, i32
  }
}

</mosaic_0001>

<bundles_post_ra>
// kernel: swin_layer_forward.2
= control target key start
LH: loop header
LB: loop body
LE: loop exit
PB: predicated region body
PF: predicated region fallthrough
CT: control target
= control target key end

     0   :  { %s5174_s29 = smov 0   ;;  %s5176_s30 = smov 0   ;;  %s7419_s0 = inlined_call_operand.vmem [shape: f32[2,256,32], index: 0, kind: input, shape index: {}]   ;;  %s7420_s1 = inlined_call_operand.vmem [shape: bf16[2,4,128,128], index: 1, kind: input, shape index: {}]   ;;  %s7421_s2 = inlined_call_operand.vmem [shape: bf16[32,96], index: 2, kind: input, shape index: {}]   ;;  %s7422_s3 = inlined_call_operand.vmem [shape: f32[1,96], index: 3, kind: input, shape index: {}]   ;;  %s7423_s4 = inlined_call_operand.vmem [shape: bf16[32,32], index: 4, kind: input, shape index: {}]   ;;  %s7424_s5 = inlined_call_operand.vmem [shape: f32[1,32], index: 5, kind: input, shape index: {}]   ;;  %s7425_s6 = inlined_call_operand.vmem [shape: f32[1,32], index: 6, kind: input, shape index: {}]   ;;  %s7426_s7 = inlined_call_operand.vmem [shape: f32[1,32], index: 7, kind: input, shape index: {}]   ;;  %s7427_s8 = inlined_call_operand.vmem [shape: f32[1,32], index: 8, kind: input, shape index: {}]   ;;  %s7428_s9 = inlined_call_operand.vmem [shape: f32[1,32], index: 9, kind: input, shape index: {}]   ;;  %s7429_s10 = inlined_call_operand.vmem [shape: bf16[32,128], index: 10, kind: input, shape index: {}]   ;;  %s7430_s11 = inlined_call_operand.vmem [shape: f32[1,128], index: 11, kind: input, shape index: {}]   ;;  %s7431_s12 = inlined_call_operand.vmem [shape: bf16[128,32], index: 12, kind: input, shape index: {}]   ;;  %s7432_s13 = inlined_call_operand.vmem [shape: f32[1,32], index: 13, kind: input, shape index: {}]   ;;  %s7433_s14 = inlined_call_operand.vmem [shape: f32[2,256,32], index: 14, kind: output, shape index: {}]  }
   0x1   :  { %s5178_s15 = smov 0   ;;  %s5180_s16 = smov 0  }
   0x2   :  { %s5182_s17 = smov 0  }
   0x3 LB: > { %s33_s18 = sadd.s32 1, %s5076_s15  ;;  %s36_s19 = sadd.s32 1, %s5080_s16  ;;  %s5084_s17 = sphi %s5182_s17, %s24_s17   ;;  %s5080_s16 = sphi %s5180_s16, %s7453_s16   ;;  %s5076_s15 = sphi %s5178_s15, %s7452_s15   ;;  %s5072_s30 = sphi %s5176_s30, %s7451_s30   ;;  %s5068_s29 = sphi %s5174_s29, %s7450_s29  }
   0x4   : > { %p34_p0 = scmp.ge.s32.totalorder %s33_s18, 2  ;;  %p4214_p1 = scmp.ge.s32.totalorder %s5084_s17, 1 }
   0x5   : > { %p443_p2 = scmp.lt.s32.totalorder %s5084_s17, 5 }
   0x6   : > { %s7455_s18 = smov (%p34_p0, %s33_s18), 0  ;;  %s7457_s19 = smov (!%p34_p0, %s36_s19), %s5080_s16 }
   0x7   : > { %p444_p3 = pnand %p4214_p1, %p443_p2  ;;  %p38_p4 = scmp.ge.s32.totalorder %s7457_s19, 2 }
   0x9   : > { %s7459_s19 = smov (%p38_p4, %s7457_s19), 0  ;;  %447 = sbr.rel (%p444_p3) target bundleno = 3236 (0xca4), region = 76 }
   0xe   : > { %s4215_s20 = sshll.u32 %s5068_s29, 4  ;;  %p503_p5 = scmp.lt.s32.totalorder %s5072_s30, 1  ;;  %vm546_vm0 = vcmask 261120   ;;  %v5086_v14 = vmov 32.0  }
   0xf   : > { %p505_p6 = scmp.lt.s32.totalorder %s4215_s20, 31  ;;  %4643 = vrcp.f32 %v5086_v14  ;;  %s5089_s24 = smov 88  }
  0x10   : > { %s7461_s30 = smov (!%p503_p5, %s5072_s30), 1  ;;  %s5090_s25 = smov 120  }
  0x11   : > { %s7463_s20 = smov (!%p505_p6, %s4215_s20), 31  ;;  %s4216_s21 = sshll.u32 %s7461_s30, 5 }
  0x12   : > { %s5207_s22 = sadd.s32 %s4216_s21, %s7463_s20  ;;  %s5087_s20 = smov 96  }
  0x13   : > { %s7434_s23 = sshll.u32 %s5207_s22, 3  ;;  %s5088_s21 = smov 64  }
  0x14   : > { %s5215_s26 = scalar_lea.vmem %s7419_s0, %s7434_s23  ;;  %s5091_s27 = smov 80  }
  0x15   : > { %v530_v0 = vld [vmem:[%s5215_s26 + $0x10] sm:$0xff]  ;;  %v528_v1 = vld [vmem:[%s5215_s26] sm:$0xff]  ;;  %v531_v6 = vld [vmem:[%s5215_s26 + $0x18] sm:$0xff]  ;;  %v4644_v15 = vpop.eup %4643  ;;  %s5092_s28 = smov 72   ;;  %s5093_s30 = smov 112  }
  0x16   : > { %v553_v2 = vsel %vm546_vm0, %v530_v0, 0.0  ;;  %v547_v3 = vsel %vm546_vm0, %v528_v1, 0.0  ;;  %v532_v4 = vld [vmem:[%s5215_s26 + $0x20] sm:$0xff]  ;;  %v529_v7 = vld [vmem:[%s5215_s26 + $0x8] sm:$0xff]  ;;  %v556_v9 = vsel %vm546_vm0, %v531_v6, 0.0  ;;  %v534_v12 = vld [vmem:[%s5215_s26 + $0x30] sm:$0xff]  ;;  %vm600_vm1 = vweird.f32 %v4644_v15 }
  0x17   : > { %554 = vadd.xlane.f32.xlu1 %v553_v2  ;;  %548 = vadd.xlane.f32.xlu0 %v547_v3  ;;  %v559_v5 = vsel %vm546_vm0, %v532_v4, 0.0  ;;  %v533_v8 = vld [vmem:[%s5215_s26 + $0x28] sm:$0xff]  ;;  %v550_v10 = vsel %vm546_vm0, %v529_v7, 0.0  ;;  %v565_v13 = vsel %vm546_vm0, %v534_v12, 0.0  ;;  %v596_v16 = vmul.f32 32.0, %v4644_v15  ;;  %v5244_v34 = vld [vmem:[%s5215_s26 + $0x38] sm:$0xff] }
  0x18   : > { %560 = vadd.xlane.f32.xlu2 %v559_v5  ;;  %v562_v11 = vsel %vm546_vm0, %v533_v8, 0.0  ;;  %v568_v40 = vsel %vm546_vm0, %v5244_v34, 0.0  ;;  %v5266_v47 = vld [vmem:[%s5215_s26 + $0x40] sm:$0xff]  ;;  %v5280_v56 = vld [vmem:[%s5215_s26 + $0x58] sm:$0xff]  ;;  %v5283_v57 = vld [vmem:[%s5215_s26 + $0x48] sm:$0xff]  ;;  %s5094_s23 = smov 104  }
  0x19   : > { %v597_v17 = vsub.f32 1.0, %v596_v16  ;;  %v571_v51 = vsel %vm546_vm0, %v5266_v47, 0.0  ;;  %v580_v59 = vsel %vm546_vm0, %v5280_v56, 0.0  ;;  %v574_v61 = vsel %vm546_vm0, %v5283_v57, 0.0  ;;  %v5295_v63 = vld [vmem:[%s5215_s26 + $0x60] sm:$0xff]  ;;  %p512_p7 = scmp.lt.s32.totalorder %s5068_s29, 1 }
  0x1b   : > { %v598_v18 = vmul.f32 %v4644_v15, %v597_v17  ;;  %s7465_s29 = smov (!%p512_p7, %s5068_s29), 1 }
  0x1d   : > { %v599_v19 = vadd.f32 %v4644_v15, %v598_v18 }
  0x1f   : > { %557 = vadd.xlane.f32.xlu1 %v556_v9  ;;  %551 = vadd.xlane.f32.xlu0 %v550_v10  ;;  %v5231_v20 = vsel %vm600_vm1, %v4644_v15, %v599_v19  ;;  %v4403_v9 = vld [vmem:[%s7421_s2 + $0x8] sm:$0xff] }
  0x20   : > { %563 = vadd.xlane.f32.xlu2 %v562_v11  ;;  %1002 = vmatpush.bf16.msra.mxu0 %v4403_v9 }
  0x28   : > { %566 = vadd.xlane.f32.xlu2 %v565_v13 }
  0x8a   : > { %v555_v21 = vpop.xlane.xlu1 %554  ;;  %v549_v22 = vpop.xlane.xlu0 %548 }
  0x8b   : > { %v602_v23 = vmul.f32 %v5231_v20, %v549_v22  ;;  %v561_v24 = vpop.xlane.xlu2 %560  ;;  %v604_v33 = vmul.f32 %v5231_v20, %v555_v21 }
  0x8c   : > { %v606_v32 = vmul.f32 %v5231_v20, %v561_v24 }
  0x8d   : > { %v5234_v25 = vsub.f32 %v528_v1, %v602_v23  ;;  %v5258_v42 = vsub.f32 %v530_v0, %v604_v33  ;;  %v5298_v0 = vld [vmem:[%s5215_s26 + $0x50] sm:$0xff]  ;;  %v583_v1 = vsel %vm546_vm0, %v5295_v63, 0.0 }
  0x8e   : > { %v5250_v38 = vsub.f32 %v532_v4, %v606_v32  ;;  %v577_v3 = vsel %vm546_vm0, %v5298_v0, 0.0  ;;  %v5306_v4 = vld [vmem:[%s5215_s26 + $0x68] sm:$0xff] }
  0x8f   : > { %v634_v26 = vmul.f32 %v5234_v25, %v5234_v25  ;;  %v636_v48 = vmul.f32 %v5258_v42, %v5258_v42  ;;  %v586_v5 = vsel %vm546_vm0, %v5306_v4, 0.0 }
  0x90   : > { %v638_v46 = vmul.f32 %v5250_v38, %v5250_v38 }
  0x91   : > { %v650_v27 = vsel %vm546_vm0, %v634_v26, 0.0  ;;  %v656_v52 = vsel %vm546_vm0, %v636_v48, 0.0 }
  0x92   : > { %v558_v28 = vpop.xlane.xlu1 %557  ;;  %651 = vadd.xlane.f32.xlu0 %v650_v27  ;;  %v552_v29 = vpop.xlane.xlu0 %551  ;;  %v662_v50 = vsel %vm546_vm0, %v638_v46, 0.0 }
  0x93   : > { %v605_v30 = vmul.f32 %v5231_v20, %v558_v28  ;;  %v603_v31 = vmul.f32 %v5231_v20, %v552_v29  ;;  %v564_v37 = vpop.xlane.xlu2 %563 }
  0x94   : > { %v607_v45 = vmul.f32 %v5231_v20, %v564_v37 }
  0x95   : > { %v5246_v35 = vsub.f32 %v531_v6, %v605_v30  ;;  %v5248_v36 = vsub.f32 %v529_v7, %v603_v31  ;;  %v5311_v6 = vld [vmem:[%s5215_s26 + $0x70] sm:$0xff] }
  0x96   : > { %v5270_v49 = vsub.f32 %v533_v8, %v607_v45  ;;  %v589_v7 = vsel %vm546_vm0, %v5311_v6, 0.0 }
  0x97   : > { %v637_v39 = vmul.f32 %v5246_v35, %v5246_v35  ;;  %v635_v41 = vmul.f32 %v5248_v36, %v5248_v36 }
  0x98   : > { %v639_v55 = vmul.f32 %v5270_v49, %v5270_v49 }
  0x99   : > { %v659_v43 = vsel %vm546_vm0, %v637_v39, 0.0  ;;  %v653_v44 = vsel %vm546_vm0, %v635_v41, 0.0 }
  0x9a   : > { %660 = vadd.xlane.f32.xlu2 %v659_v43  ;;  %569 = vadd.xlane.f32.xlu0 %v568_v40  ;;  %v665_v60 = vsel %vm546_vm0, %v639_v55, 0.0 }
  0x9b   : > { %654 = vadd.xlane.f32.xlu1 %v653_v44  ;;  %v567_v53 = vpop.xlane.xlu2 %566 }
  0x9c   : > { %v608_v54 = vmul.f32 %v5231_v20, %v567_v53 }
  0x9e   : > { %v5285_v58 = vsub.f32 %v534_v12, %v608_v54  ;;  %v4402_v12 = vld [vmem:[%s7421_s2] sm:$0xff] }
  0x9f   : > { %1003 = vmatpush.bf16.msra.mxu0 %v4402_v12  ;;  %v5380_v12 = vld [vmem:[%s5215_s26 + $0x78] sm:$0xff] }
  0xa0   : > { %v640_v62 = vmul.f32 %v5285_v58, %v5285_v58 }
  0xa2   : > { %663 = vadd.xlane.f32.xlu2 %v662_v50  ;;  %572 = vadd.xlane.f32.xlu0 %v571_v51  ;;  %v668_v2 = vsel %vm546_vm0, %v640_v62, 0.0 }
  0xa3   : > { %657 = vadd.xlane.f32.xlu1 %v656_v52 }
  0xaa   : > { %581 = vadd.xlane.f32.xlu2 %v580_v59  ;;  %666 = vadd.xlane.f32.xlu0 %v665_v60 }
  0xab   : > { %575 = vadd.xlane.f32.xlu1 %v574_v61 }
  0xb2   : > { %584 = vadd.xlane.f32.xlu2 %v583_v1  ;;  %669 = vadd.xlane.f32.xlu0 %v668_v2 }
  0xb3   : > { %578 = vadd.xlane.f32.xlu1 %v577_v3 }
  0xba   : > { %587 = vadd.xlane.f32.xlu0 %v586_v5 }
  0xc2   : > { %590 = vadd.xlane.f32.xlu0 %v589_v7 }
 0x105   : > { %v652_v8 = vpop.xlane.xlu0 %651 }
 0x106   : > { %v698_v10 = vmul.f32 %v652_v8, %v5231_v20 }
 0x108   : > { %v714_v11 = vadd.f32 1e-05, %v698_v10 }
 0x10a   : > { %4645 = vrsqrt.f32 %v714_v11  ;;  %vm736_vm3 = vweird.f32 %v714_v11 }
 0x10d   : > { %v661_v13 = vpop.xlane.xlu2 %660  ;;  %v570_v14 = vpop.xlane.xlu0 %569 }
 0x10e   : > { %v701_v15 = vmul.f32 %v661_v13, %v5231_v20  ;;  %v655_v16 = vpop.xlane.xlu1 %654  ;;  %v609_v17 = vmul.f32 %v5231_v20, %v570_v14 }
 0x10f   : > { %v699_v18 = vmul.f32 %v655_v16, %v5231_v20 }
 0x110   : > { %v4646_v19 = vpop.eup %4645  ;;  %v5325_v21 = vadd.f32 1e-05, %v701_v15  ;;  %v5328_v22 = vsub.f32 %v5244_v34, %v609_v17  ;;  %v5389_v15 = vld [vmem:[%s7425_s6] ss:$0 sm:$0xff] }
 0x111   : > { %v731_v23 = vmul.f32 %v4646_v19, %v714_v11  ;;  %v715_v24 = vadd.f32 1e-05, %v699_v18  ;;  %vm737_vm2 = vweird.f32 %v4646_v19 }
 0x112   : > { %4647 = vrsqrt.f32 %v5325_v21  ;;  %v641_v26 = vmul.f32 %v5328_v22, %v5328_v22  ;;  %vm5351_vm6 = vmor %vm736_vm3, %vm737_vm2  ;;  %vm766_vm10 = vweird.f32 %v5325_v21 }
 0x113   : > { %v732_v27 = vmul.f32 %v4646_v19, %v731_v23  ;;  %4649 = vrsqrt.f32 %v715_v24  ;;  %vm746_vm4 = vweird.f32 %v715_v24 }
 0x114   : > { %v671_v28 = vsel %vm546_vm0, %v641_v26, 0.0 }
 0x115   : > { %v733_v29 = vmul.f32 0.5, %v732_v27  ;;  %v664_v30 = vpop.xlane.xlu2 %663  ;;  %672 = vadd.xlane.f32.xlu1 %v671_v28  ;;  %v573_v31 = vpop.xlane.xlu0 %572 }
 0x116   : > { %v658_v32 = vpop.xlane.xlu1 %657  ;;  %v610_v33 = vmul.f32 %v5231_v20, %v573_v31  ;;  %v702_v43 = vmul.f32 %v664_v30, %v5231_v20 }
 0x117   : > { %v734_v34 = vsub.f32 1.5, %v733_v29  ;;  %v700_v37 = vmul.f32 %v658_v32, %v5231_v20 }
 0x118   : > { %v5336_v39 = vpop.eup %4647  ;;  %v5339_v40 = vsub.f32 %v5266_v47, %v610_v33  ;;  %v5349_v47 = vadd.f32 1e-05, %v702_v43  ;;  %v5411_v33 = vld [vmem:[%s7426_s7] ss:$0 sm:$0xff] }
 0x119   : > { %v4650_v41 = vpop.eup %4649  ;;  %v5342_v44 = vadd.f32 1e-05, %v700_v37  ;;  %v735_v46 = vmul.f32 %v4646_v19, %v734_v34  ;;  %v761_v48 = vmul.f32 %v5336_v39, %v5325_v21  ;;  %vm767_vm11 = vweird.f32 %v5336_v39 }
 0x11a   : > { %v741_v45 = vmul.f32 %v4650_v41, %v715_v24  ;;  %v642_v51 = vmul.f32 %v5339_v40, %v5339_v40  ;;  %vm747_vm5 = vweird.f32 %v4650_v41  ;;  %vm5443_vm13 = vmor %vm766_vm10, %vm767_vm11  ;;  %vm776_vm1 = vweird.f32 %v5349_v47 }
 0x11b   : > { %4651 = vrsqrt.f32 %v5342_v44  ;;  %v739_v1 = vsel %vm5351_vm6, %v4646_v19, %v735_v46  ;;  %v762_v2 = vmul.f32 %v5336_v39, %v761_v48  ;;  %vm5371_vm7 = vmor %vm746_vm4, %vm747_vm5  ;;  %vm756_vm8 = vweird.f32 %v5342_v44 }
 0x11c   : > { %v742_v50 = vmul.f32 %v4650_v41, %v741_v45  ;;  %v674_v61 = vsel %vm546_vm0, %v642_v51, 0.0  ;;  %4653 = vrsqrt.f32 %v5349_v47  ;;  %v890_v14 = vmul.f32 %v739_v1, %v5234_v25 }
 0x11d   : > { %v582_v52 = vpop.xlane.xlu2 %581  ;;  %v667_v53 = vpop.xlane.xlu0 %666  ;;  %675 = vadd.xlane.f32.xlu1 %v674_v61  ;;  %v763_v16 = vmul.f32 0.5, %v762_v2  ;;  %v592_v25 = vsel %vm546_vm0, %v5380_v12, 0.0 }
 0x11e   : > { %v743_v55 = vmul.f32 0.5, %v742_v50  ;;  %v613_v59 = vmul.f32 %v5231_v20, %v582_v52  ;;  %v576_v60 = vpop.xlane.xlu1 %575  ;;  %v703_v62 = vmul.f32 %v667_v53, %v5231_v20  ;;  %v909_v32 = vmul.f32 %v5389_v15, %v890_v14 }
 0x11f   : > { %v611_v3 = vmul.f32 %v5231_v20, %v576_v60  ;;  %v764_v37 = vsub.f32 1.5, %v763_v16 }
 0x120   : > { %v744_v5 = vsub.f32 1.5, %v743_v55  ;;  %v5363_v7 = vsub.f32 %v5280_v56, %v613_v59  ;;  %v5365_v8 = vadd.f32 1e-05, %v703_v62 }
 0x121   : > { %v5367_v9 = vpop.eup %4651  ;;  %v5377_v11 = vsub.f32 %v5283_v57, %v611_v3  ;;  %v765_v21 = vmul.f32 %v5336_v39, %v764_v37 }
 0x122   : > { %v745_v13 = vmul.f32 %v4650_v41, %v744_v5  ;;  %v751_v56 = vmul.f32 %v5367_v9, %v5342_v44  ;;  %4655 = vrsqrt.f32 %v5365_v8  ;;  %v645_v57 = vmul.f32 %v5363_v7, %v5363_v7  ;;  %v5413_v34 = vpop.eup %4653 }
 0x123   : > { %v643_v19 = vmul.f32 %v5377_v11, %v5377_v11  ;;  %vm757_vm9 = vweird.f32 %v5367_v9  ;;  %v771_v54 = vmul.f32 %v5413_v34, %v5349_v47  ;;  %v769_v5 = vsel %vm5443_vm13, %v5336_v39, %v765_v21 }
 0x124   : > { %v749_v17 = vsel %vm5371_vm7, %v4650_v41, %v745_v13  ;;  %v752_v18 = vmul.f32 %v5367_v9, %v751_v56  ;;  %v683_v24 = vsel %vm546_vm0, %v645_v57, 0.0  ;;  %vm5430_vm12 = vmor %vm756_vm8, %vm757_vm9  ;;  %v893_v16 = vmul.f32 %v769_v5, %v5246_v35 }
 0x125   : > { %v585_v23 = vpop.xlane.xlu2 %584  ;;  %v5402_v26 = vpop.xlane.xlu0 %669  ;;  %v891_v27 = vmul.f32 %v749_v17, %v5248_v36  ;;  %684 = vadd.xlane.f32.xlu0 %v683_v24  ;;  %v677_v30 = vsel %vm546_vm0, %v643_v19, 0.0  ;;  %593 = vadd.xlane.f32.xlu1 %v592_v25  ;;  %v772_v10 = vmul.f32 %v5413_v34, %v771_v54  ;;  %vm786_vm14 = vweird.f32 %v5365_v8 }
 0x126   : > { %v753_v28 = vmul.f32 0.5, %v752_v18  ;;  %v614_v29 = vmul.f32 %v5231_v20, %v585_v23  ;;  %v579_v31 = vpop.xlane.xlu1 %578  ;;  %678 = vadd.xlane.f32.xlu2 %v677_v30  ;;  %vm777_vm2 = vweird.f32 %v5413_v34 }
 0x127   : > { %v612_v36 = vmul.f32 %v5231_v20, %v579_v31  ;;  %v910_v41 = vmul.f32 %v5389_v15, %v891_v27  ;;  %v773_v57 = vmul.f32 0.5, %v772_v10  ;;  %vm778_vm4 = vmor %vm776_vm1, %vm777_vm2 }
 0x128   : > { %v4656_v43 = vpop.eup %4655  ;;  %v754_v45 = vsub.f32 1.5, %v753_v28  ;;  %v5419_v46 = vsub.f32 %v5295_v63, %v614_v29  ;;  %v928_v63 = vadd.f32 %v5411_v33, %v909_v32 }
 0x129   : > { %v781_v48 = vmul.f32 %v4656_v43, %v5365_v8  ;;  %v5425_v50 = vsub.f32 %v5298_v0, %v612_v36  ;;  %v929_v53 = vadd.f32 %v5411_v33, %v910_v41  ;;  %v774_v23 = vsub.f32 1.5, %v773_v57 }
 0x12a   : > { %v755_v51 = vmul.f32 %v5367_v9, %v754_v45  ;;  %v646_v55 = vmul.f32 %v5419_v46, %v5419_v46  ;;  %vm787_vm15 = vweird.f32 %v4656_v43 }
 0x12b   : > { %v644_v0 = vmul.f32 %v5425_v50, %v5425_v50  ;;  %v944_v59 = vpack.c.bf16 %v929_v53, %v928_v63  ;;  %v782_v61 = vmul.f32 %v4656_v43, %v781_v48  ;;  %vm788_vm3 = vmor %vm786_vm14, %vm787_vm15  ;;  %v775_v8 = vmul.f32 %v5413_v34, %v774_v23 }
 0x12c   : > { %v759_v60 = vsel %vm5430_vm12, %v5367_v9, %v755_v51  ;;  %v686_v1 = vsel %vm546_vm0, %v646_v55, 0.0 }
 0x12d   : > { %v680_v62 = vsel %vm546_vm0, %v644_v0, 0.0  ;;  %v588_v2 = vpop.xlane.xlu0 %587  ;;  %4231 = vmatmul.msk.bf16.vlgmr.msra.gmra.mxu0 %vm546_vm0, %v944_v59  ;;  %687 = vadd.xlane.f32.xlu1 %v686_v1  ;;  %v892_v13 = vmul.f32 %v759_v60, %v5258_v42  ;;  %v783_v56 = vmul.f32 0.5, %v782_v61  ;;  %v779_v47 = vsel %vm778_vm4, %v5413_v34, %v775_v8 }
 0x12e   : > { %v615_v3 = vmul.f32 %v5231_v20, %v588_v2  ;;  %681 = vadd.xlane.f32.xlu2 %v680_v62  ;;  %v894_v32 = vmul.f32 %v779_v47, %v5250_v38 }
 0x12f   : > { %v911_v39 = vmul.f32 %v5389_v15, %v892_v13  ;;  %v784_v18 = vsub.f32 1.5, %v783_v56 }
 0x130   : > { %v5459_v9 = vsub.f32 %v5306_v4, %v615_v3  ;;  %v912_v4 = vmul.f32 %v5389_v15, %v893_v16  ;;  %v913_v36 = vmul.f32 %v5389_v15, %v894_v32 }
 0x131   : > { %v930_v35 = vadd.f32 %v5411_v33, %v911_v39  ;;  %v785_v24 = vmul.f32 %v4656_v43, %v784_v18 }
 0x132   : > { %v647_v14 = vmul.f32 %v5459_v9, %v5459_v9  ;;  %v931_v27 = vadd.f32 %v5411_v33, %v912_v4  ;;  %v932_v45 = vadd.f32 %v5411_v33, %v913_v36 }
 0x133   : > { %v789_v30 = vsel %vm788_vm3, %v4656_v43, %v785_v24  ;;  %v704_v43 = vmul.f32 %v5402_v26, %v5231_v20 }
 0x134   : > { %v689_v17 = vsel %vm546_vm0, %v647_v14, 0.0  ;;  %v945_v29 = vpack.c.bf16 %v931_v27, %v930_v35  ;;  %v895_v31 = vmul.f32 %v789_v30, %v5270_v49 }
 0x135   : > { %v591_v19 = vpop.xlane.xlu0 %590  ;;  %v720_v51 = vadd.f32 1e-05, %v704_v43 }
 0x136   : > { %v616_v25 = vmul.f32 %v5231_v20, %v591_v19  ;;  %690 = vadd.xlane.f32.xlu2 %v689_v17  ;;  %v914_v37 = vmul.f32 %v5389_v15, %v895_v31 }
 0x137   : > { %4657 = vrsqrt.f32 %v720_v51  ;;  %vm796_vm5 = vweird.f32 %v720_v51 }
 0x138   : > { %v5471_v42 = vsub.f32 %v5311_v6, %v616_v25  ;;  %v933_v41 = vadd.f32 %v5411_v33, %v914_v37 }
 0x13a   : > { %v648_v28 = vmul.f32 %v5471_v42, %v5471_v42  ;;  %v946_v48 = vpack.c.bf16 %v933_v41, %v932_v45 }
 0x13c   : > { %v692_v6 = vsel %vm546_vm0, %v648_v28, 0.0 }
 0x13d   : > { %693 = vadd.xlane.f32.xlu0 %v692_v6  ;;  %4232 = vmatmul.msk.bf16.gmra.mxu0 %vm546_vm0, %v945_v29  ;;  %v4658_v34 = vpop.eup %4657 }
 0x13e   : > { %v791_v49 = vmul.f32 %v4658_v34, %v720_v51  ;;  %vm797_vm6 = vweird.f32 %v4658_v34 }
 0x13f   : > { %vm5494_vm7 = vmor %vm796_vm5, %vm797_vm6 }
 0x140   : > { %v792_v38 = vmul.f32 %v4658_v34, %v791_v49 }
 0x142   : > { %v793_v21 = vmul.f32 0.5, %v792_v38 }
 0x144   : > { %v794_v54 = vsub.f32 1.5, %v793_v21 }
 0x146   : > { %v795_v26 = vmul.f32 %v4658_v34, %v794_v54 }
 0x148   : > { %v799_v2 = vsel %vm5494_vm7, %v4658_v34, %v795_v26 }
 0x149   : > { %v896_v39 = vmul.f32 %v799_v2, %v5285_v58 }
 0x14b   : > { %v915_v28 = vmul.f32 %v5389_v15, %v896_v39 }
 0x14d   : > { %4233 = vmatmul.msk.bf16.gmra.mxu0 %vm546_vm0, %v946_v48  ;;  %v934_v32 = vadd.f32 %v5411_v33, %v915_v28 }
 0x188   : > { %v673_v52 = vpop.xlane.xlu1 %672 }
 0x189   : > { %v705_v63 = vmul.f32 %v673_v52, %v5231_v20 }
 0x18b   : > { %v721_v53 = vadd.f32 1e-05, %v705_v63 }
 0x18d   : > { %4659 = vrsqrt.f32 %v721_v53  ;;  %vm806_vm9 = vweird.f32 %v721_v53 }
 0x190   : > { %v676_v0 = vpop.xlane.xlu1 %675 }
 0x191   : > { %v706_v44 = vmul.f32 %v676_v0, %v5231_v20 }
 0x193   : > { %v4660_v55 = vpop.eup %4659  ;;  %v722_v60 = vadd.f32 1e-05, %v706_v44 }
 0x194   : > { %v801_v59 = vmul.f32 %v4660_v55, %v721_v53  ;;  %vm807_vm8 = vweird.f32 %v4660_v55 }
 0x195   : > { %4661 = vrsqrt.f32 %v722_v60  ;;  %vm808_vm10 = vmor %vm806_vm9, %vm807_vm8  ;;  %vm816_vm12 = vweird.f32 %v722_v60 }
 0x196   : > { %v802_v62 = vmul.f32 %v4660_v55, %v801_v59 }
 0x198   : > { %v803_v1 = vmul.f32 0.5, %v802_v62  ;;  %v685_v3 = vpop.xlane.xlu0 %684  ;;  %v594_v13 = vpop.xlane.xlu1 %593 }
 0x199   : > { %v679_v10 = vpop.xlane.xlu2 %678  ;;  %v709_v56 = vmul.f32 %v685_v3, %v5231_v20  ;;  %v617_v16 = vmul.f32 %v5231_v20, %v594_v13 }
 0x19a   : > { %v804_v5 = vsub.f32 1.5, %v803_v1  ;;  %v707_v14 = vmul.f32 %v679_v10, %v5231_v20 }
 0x19b   : > { %v5503_v17 = vadd.f32 1e-05, %v709_v56  ;;  %v4662_v18 = vpop.eup %4661  ;;  %v5507_v25 = vsub.f32 %v5380_v12, %v617_v16 }
 0x19c   : > { %v805_v57 = vmul.f32 %v4660_v55, %v804_v5  ;;  %v723_v19 = vadd.f32 1e-05, %v707_v14  ;;  %v811_v23 = vmul.f32 %v4662_v18, %v722_v60  ;;  %vm817_vm11 = vweird.f32 %v4662_v18 }
 0x19d   : > { %4663 = vrsqrt.f32 %v5503_v17  ;;  %v649_v35 = vmul.f32 %v5507_v25, %v5507_v25  ;;  %vm818_vm13 = vmor %vm816_vm12, %vm817_vm11  ;;  %vm846_vm4 = vweird.f32 %v5503_v17 }
 0x19e   : > { %v809_v4 = vsel %vm808_vm10, %v4660_v55, %v805_v57  ;;  %4665 = vrsqrt.f32 %v723_v19  ;;  %v812_v24 = vmul.f32 %v4662_v18, %v811_v23  ;;  %vm826_vm14 = vweird.f32 %v723_v19 }
 0x19f   : > { %v897_v27 = vmul.f32 %v809_v4, %v5328_v22  ;;  %v695_v58 = vsel %vm546_vm0, %v649_v35, 0.0 }
 0x1a0   : > { %v813_v8 = vmul.f32 0.5, %v812_v24  ;;  %696 = vadd.xlane.f32.xlu1 %v695_v58  ;;  %v688_v12 = vpop.xlane.xlu1 %687 }
 0x1a1   : > { %v682_v29 = vpop.xlane.xlu2 %681  ;;  %v916_v6 = vmul.f32 %v5389_v15, %v897_v27  ;;  %v710_v41 = vmul.f32 %v688_v12, %v5231_v20 }
 0x1a2   : > { %v708_v30 = vmul.f32 %v682_v29, %v5231_v20  ;;  %v814_v31 = vsub.f32 1.5, %v813_v8 }
 0x1a3   : > { %v5517_v47 = vpop.eup %4663  ;;  %v935_v37 = vadd.f32 %v5411_v33, %v916_v6  ;;  %v726_v49 = vadd.f32 1e-05, %v710_v41 }
 0x1a4   : > { %v4666_v22 = vpop.eup %4665  ;;  %v724_v36 = vadd.f32 1e-05, %v708_v30  ;;  %v815_v45 = vmul.f32 %v4662_v18, %v814_v31  ;;  %v841_v43 = vmul.f32 %v5517_v47, %v5503_v17  ;;  %vm847_vm5 = vweird.f32 %v5517_v47 }
 0x1a5   : > { %v821_v48 = vmul.f32 %v4666_v22, %v723_v19  ;;  %v947_v51 = vpack.c.bf16 %v935_v37, %v934_v32  ;;  %vm827_vm15 = vweird.f32 %v4666_v22  ;;  %vm848_vm7 = vmor %vm846_vm4, %vm847_vm5  ;;  %vm856_vm10 = vweird.f32 %v726_v49 }
 0x1a6   : > { %4667 = vrsqrt.f32 %v724_v36  ;;  %v819_v52 = vsel %vm818_vm13, %v4662_v18, %v815_v45  ;;  %v842_v63 = vmul.f32 %v5517_v47, %v841_v43  ;;  %vm828_vm1 = vmor %vm826_vm14, %vm827_vm15  ;;  %vm836_vm2 = vweird.f32 %v724_v36 }
 0x1a7   : > { %v822_v34 = vmul.f32 %v4666_v22, %v821_v48  ;;  %4234 = vmatmul.msk.bf16.gmra.mxu0 %vm546_vm0, %v947_v51  ;;  %4669 = vrsqrt.f32 %v726_v49  ;;  %v898_v44 = vmul.f32 %v819_v52, %v5339_v40  ;;  %vm1149_vm5 = vcmask 64512  }
 0x1a8   : > { %v843_v26 = vmul.f32 0.5, %v842_v63 }
 0x1a9   : > { %v823_v38 = vmul.f32 0.5, %v822_v34  ;;  %v691_v53 = vpop.xlane.xlu2 %690  ;;  %v917_v2 = vmul.f32 %v5389_v15, %v898_v44 }
 0x1aa   : > { %v711_v21 = vmul.f32 %v691_v53, %v5231_v20  ;;  %v844_v3 = vsub.f32 1.5, %v843_v26  ;;  %v5552_v34 = vpop.f32.mrf.mxu0 }
 0x1ab   : > { %v824_v54 = vsub.f32 1.5, %v823_v38  ;;  %v936_v14 = vadd.f32 %v5411_v33, %v917_v2 }
 0x1ac   : > { %v4668_v0 = vpop.eup %4667  ;;  %v727_v55 = vadd.f32 1e-05, %v711_v21  ;;  %v845_v16 = vmul.f32 %v5517_v47, %v844_v3 }
 0x1ad   : > { %v825_v59 = vmul.f32 %v4666_v22, %v824_v54  ;;  %v831_v60 = vmul.f32 %v4668_v0, %v724_v36  ;;  %vm837_vm3 = vweird.f32 %v4668_v0  ;;  %v4670_v10 = vpop.eup %4669 }
 0x1ae   : > { %4671 = vrsqrt.f32 %v727_v55  ;;  %vm838_vm6 = vmor %vm836_vm2, %vm837_vm3  ;;  %v851_v39 = vmul.f32 %v4670_v10, %v726_v49  ;;  %v849_v17 = vsel %vm848_vm7, %v5517_v47, %v845_v16  ;;  %vm866_vm8 = vweird.f32 %v727_v55 }
 0x1af   : > { %v829_v61 = vsel %vm828_vm1, %v4666_v22, %v825_v59  ;;  %v832_v62 = vmul.f32 %v4668_v0, %v831_v60  ;;  %v901_v28 = vmul.f32 %v849_v17, %v5363_v7  ;;  %vm857_vm11 = vweird.f32 %v4670_v10 }
 0x1b0   : > { %v899_v1 = vmul.f32 %v829_v61, %v5377_v11  ;;  %v852_v35 = vmul.f32 %v4670_v10, %v851_v39  ;;  %vm858_vm13 = vmor %vm856_vm10, %vm857_vm11  ;;  %v694_v52 = vpop.xlane.xlu0 %693 }
 0x1b1   : > { %v833_v5 = vmul.f32 0.5, %v832_v62  ;;  %v920_v12 = vmul.f32 %v5389_v15, %v901_v28 }
 0x1b2   : > { %v918_v13 = vmul.f32 %v5389_v15, %v899_v1  ;;  %v853_v58 = vmul.f32 0.5, %v852_v35  ;;  %v5554_v49 = vpop.f32.mrf.mxu0 }
 0x1b3   : > { %v834_v40 = vsub.f32 1.5, %v833_v5 }
 0x1b4   : > { %v4672_v56 = vpop.eup %4671  ;;  %v937_v11 = vadd.f32 %v5411_v33, %v918_v13  ;;  %v854_v6 = vsub.f32 1.5, %v853_v58 }
 0x1b5   : > { %v835_v57 = vmul.f32 %v4668_v0, %v834_v40  ;;  %v861_v18 = vmul.f32 %v4672_v56, %v727_v55  ;;  %vm867_vm9 = vweird.f32 %v4672_v56 }
 0x1b6   : > { %v948_v19 = vpack.c.bf16 %v937_v11, %v936_v14  ;;  %vm868_vm12 = vmor %vm866_vm8, %vm867_vm9  ;;  %v855_v31 = vmul.f32 %v4670_v10, %v854_v6 }
 0x1b7   : > { %v839_v4 = vsel %vm838_vm6, %v4668_v0, %v835_v57  ;;  %v862_v23 = vmul.f32 %v4672_v56, %v861_v18  ;;  %vm1901_vm6 = vcmask 1043456  }
 0x1b8   : > { %4235 = vmatmul.msk.bf16.gmra.mxu0 %vm546_vm0, %v948_v19  ;;  %v900_v24 = vmul.f32 %v839_v4, %v5425_v50  ;;  %v939_v50 = vadd.f32 %v5411_v33, %v920_v12  ;;  %v859_v37 = vsel %vm858_vm13, %v4670_v10, %v855_v31 }
 0x1b9   : > { %v863_v27 = vmul.f32 0.5, %v862_v23  ;;  %v902_v36 = vmul.f32 %v859_v37, %v5419_v46 }
 0x1ba   : > { %v919_v8 = vmul.f32 %v5389_v15, %v900_v24  ;;  %v1010_v38 = vpop.f32.mrf.mxu0 }
 0x1bb   : > { %v864_v29 = vsub.f32 1.5, %v863_v27  ;;  %v921_v45 = vmul.f32 %v5389_v15, %v902_v36 }
 0x1bc   : > { %v938_v30 = vadd.f32 %v5411_v33, %v919_v8 }
 0x1bd   : > { %v865_v47 = vmul.f32 %v4672_v56, %v864_v29  ;;  %v940_v43 = vadd.f32 %v5411_v33, %v921_v45 }
 0x1be   : > { %v949_v7 = vpack.c.bf16 %v939_v50, %v938_v30 }
 0x1bf   : > { %v869_v32 = vsel %vm868_vm12, %v4672_v56, %v865_v47 }
 0x1c0   : > { %v903_v22 = vmul.f32 %v869_v32, %v5459_v9  ;;  %v712_v9 = vmul.f32 %v694_v52, %v5231_v20 }
 0x1c2   : > { %v922_v41 = vmul.f32 %v5389_v15, %v903_v22  ;;  %v728_v46 = vadd.f32 1e-05, %v712_v9  ;;  %v1012_v63 = vpop.f32.mrf.mxu0 }
 0x1c4   : > { %v941_v48 = vadd.f32 %v5411_v33, %v922_v41  ;;  %4673 = vrsqrt.f32 %v728_v46  ;;  %vm876_vm14 = vweird.f32 %v728_v46 }
 0x1c6   : > { %v950_v51 = vpack.c.bf16 %v941_v48, %v940_v43 }
 0x1c8   : > { %4236 = vmatmul.msk.bf16.gmra.mxu0 %vm546_vm0, %v949_v7 }
 0x1ca   : > { %v4674_v53 = vpop.eup %4673  ;;  %v5557_v54 = vpop.f32.mrf.mxu0 }
 0x1cb   : > { %v871_v21 = vmul.f32 %v4674_v53, %v728_v46  ;;  %vm877_vm15 = vweird.f32 %v4674_v53 }
 0x1cc   : > { %vm878_vm1 = vmor %vm876_vm14, %vm877_vm15 }
 0x1cd   : > { %v872_v0 = vmul.f32 %v4674_v53, %v871_v21 }
 0x1cf   : > { %v873_v26 = vmul.f32 0.5, %v872_v0 }
 0x1d1   : > { %v874_v60 = vsub.f32 1.5, %v873_v26 }
 0x1d2   : > { %v1017_v61 = vpop.f32.mrf.mxu0 }
 0x1d3   : > { %v875_v1 = vmul.f32 %v4674_v53, %v874_v60 }
 0x1d5   : > { %v879_v5 = vsel %vm878_vm1, %v4674_v53, %v875_v1 }
 0x1d6   : > { %v904_v56 = vmul.f32 %v879_v5, %v5471_v42 }
 0x1d8   : > { %4237 = vmatmul.msk.bf16.gmra.mxu0 %vm546_vm0, %v950_v51  ;;  %v923_v57 = vmul.f32 %v5389_v15, %v904_v56 }
 0x1da   : > { %v942_v19 = vadd.f32 %v5411_v33, %v923_v57 }
 0x213   : > { %v697_v55 = vpop.xlane.xlu1 %696 }
 0x214   : > { %v713_v44 = vmul.f32 %v697_v55, %v5231_v20 }
 0x216   : > { %v729_v59 = vadd.f32 1e-05, %v713_v44 }
 0x218   : > { %4675 = vrsqrt.f32 %v729_v59  ;;  %vm886_vm3 = vweird.f32 %v729_v59 }
 0x21e   : > { %v4676_v62 = vpop.eup %4675 }
 0x21f   : > { %v881_v2 = vmul.f32 %v4676_v62, %v729_v59  ;;  %vm887_vm2 = vweird.f32 %v4676_v62 }
 0x220   : > { %vm888_vm4 = vmor %vm886_vm3, %vm887_vm2 }
 0x221   : > { %v882_v3 = vmul.f32 %v4676_v62, %v881_v2 }
 0x223   : > { %v883_v10 = vmul.f32 0.5, %v882_v3 }
 0x224   : > { %v1020_v13 = vpop.f32.mrf.mxu0 }
 0x225   : > { %v884_v40 = vsub.f32 1.5, %v883_v10 }
 0x227   : > { %v885_v14 = vmul.f32 %v4676_v62, %v884_v40 }
 0x229   : > { %v889_v11 = vsel %vm888_vm4, %v4676_v62, %v885_v14 }
 0x22a   : > { %v905_v16 = vmul.f32 %v889_v11, %v5507_v25  ;;  %v5572_v25 = vld [vmem:[%s7422_s3] ss:$0 sm:$0xff] }
 0x22b   : > { %v1011_v8 = vadd.f32 %v5572_v25, %v1010_v38  ;;  %v1018_v45 = vadd.f32 %v5572_v25, %v1017_v61  ;;  %v1016_v51 = vadd.f32 %v5572_v25, %v5557_v54  ;;  %v1021_v52 = vadd.f32 %v5572_v25, %v1020_v13 }
 0x22c   : > { %v1022_v39 = vpop.f32.mrf.mxu0  ;;  %v924_v18 = vmul.f32 %v5389_v15, %v905_v16  ;;  %v1008_v54 = vadd.f32 %v5572_v25, %v5554_v49  ;;  %v1006_v59 = vadd.f32 %v5572_v25, %v5552_v34 }
 0x22d   : > { %v1047_v50 = vpack.c.bf16 %v1011_v8, %v1011_v8  ;;  %v1023_v48 = vadd.f32 %v5572_v25, %v1022_v39  ;;  %v1050_v46 = vpack.c.bf16 %v1018_v45, %v1018_v45  ;;  %v1049_v21 = vpack.c.bf16 %v1016_v51, %v1016_v51 }
 0x22e   : > { %v943_v4 = vadd.f32 %v5411_v33, %v924_v18  ;;  %v1013_v33 = vadd.f32 %v5572_v25, %v1012_v63  ;;  %v1051_v0 = vpack.c.bf16 %v1021_v52, %v1021_v52  ;;  %v1046_v61 = vpack.c.bf16 %v1008_v54, %v1008_v54 }
 0x22f   : > { %v1111_v7 = vunpack.c.l.b16 %v1047_v50  ;;  %v1052_v63 = vpack.c.bf16 %v1023_v48, %v1023_v48  ;;  %v1114_v55 = vunpack.c.l.b16 %v1050_v46  ;;  %v1113_v26 = vunpack.c.l.b16 %v1049_v21 }
 0x230   : > { %v951_v23 = vpack.c.bf16 %v943_v4, %v942_v19  ;;  %v1048_v6 = vpack.c.bf16 %v1013_v33, %v1013_v33  ;;  %v1115_v60 = vunpack.c.l.b16 %v1051_v0  ;;  %v1045_v2 = vpack.c.bf16 %v1006_v59, %v1006_v59 }
 0x231   : > { %v1116_v44 = vunpack.c.l.b16 %v1052_v63  ;;  %v5603_v62 = vpack.c.b16 %v1114_v55, %v1113_v26  ;;  %v1110_v49 = vunpack.c.l.b16 %v1046_v61 }
 0x232   : > { %4238 = vmatmul.msk.bf16.gmra.mxu0 %vm546_vm0, %v951_v23  ;;  %v1112_v31 = vunpack.c.l.b16 %v1048_v6  ;;  %v1109_v3 = vunpack.c.l.b16 %v1045_v2 }
 0x233   : > { %v5605_v1 = vpack.c.b16 %v1116_v44, %v1115_v60 }
 0x234   : > { %v5583_v37 = vpack.c.b16 %v1112_v31, %v1111_v7  ;;  %v5611_v5 = vpack.c.b16 %v1110_v49, %v1109_v3 }
 0x235   : > { %v5567_v17 = vpop.f32.mrf.mxu0 }
 0x236   : > { %v1026_v10 = vadd.f32 %v5572_v25, %v5567_v17 }
 0x238   : > { %v1053_v40 = vpack.c.bf16 %v1026_v10, %v1026_v10 }
 0x23a   : > { %v1117_v14 = vunpack.c.l.b16 %v1053_v40 }
 0x23d   : > { %v1027_v42 = vpop.f32.mrf.mxu0 }
 0x23e   : > { %v1028_v34 = vadd.f32 %v5572_v25, %v1027_v42 }
 0x240   : > { %v1054_v13 = vpack.c.bf16 %v1028_v34, %v1028_v34 }
 0x242   : > { %v1118_v56 = vunpack.c.l.b16 %v1054_v13 }
 0x244   : > { %v5628_v11 = vpack.c.b16 %v1118_v56, %v1117_v14 }
 0x245   : > { %v1030_v35 = vpop.f32.mrf.mxu0 }
 0x246   : > { %v1031_v24 = vadd.f32 %v5572_v25, %v1030_v35 }
 0x248   : > { %v1055_v15 = vpack.c.bf16 %v1031_v24, %v1031_v24 }
 0x24a   : > { %v1119_v29 = vunpack.c.l.b16 %v1055_v15 }
 0x24d   : > { %v1032_v27 = vpop.f32.mrf.mxu0 }
 0x24e   : > { %v1033_v28 = vadd.f32 %v5572_v25, %v1032_v27 }
 0x250   : > { %v1056_v58 = vpack.c.bf16 %v1033_v28, %v1033_v28 }
 0x252   : > { %v1120_v12 = vunpack.c.l.b16 %v1056_v58 }
 0x254   : > { %v5578_v30 = vpack.c.b16 %v1120_v12, %v1119_v29 }
 0x255   : > { %v1035_v47 = vpop.f32.mrf.mxu0 }
 0x256   : > { %1143 = vrot.lane.b32.xlu1 %v5578_v30, %s5087_s20  ;;  %v1036_v32 = vadd.f32 %v5572_v25, %v1035_v47 }
 0x258   : > { %v1057_v36 = vpack.c.bf16 %v1036_v32, %v1036_v32 }
 0x25a   : > { %v1121_v38 = vunpack.c.l.b16 %v1057_v36 }
 0x25d   : > { %v1037_v22 = vpop.f32.mrf.mxu0 }
 0x25e   : > { %v1038_v41 = vadd.f32 %v5572_v25, %v1037_v22  ;;  %1135 = vrot.lane.b32.xlu1 %v5583_v37, %s5087_s20 }
 0x260   : > { %v1058_v43 = vpack.c.bf16 %v1038_v41, %v1038_v41 }
 0x262   : > { %v1122_v9 = vunpack.c.l.b16 %v1058_v43 }
 0x264   : > { %v5593_v53 = vpack.c.b16 %v1122_v9, %v1121_v38 }
 0x266   : > { %1145 = vrot.lane.b32.xlu0 %v5593_v53, %s5087_s20  ;;  %1411 = vrot.lane.b32.xlu1 %v5593_v53, %s5088_s21 }
 0x26e   : > { %1139 = vrot.lane.b32.xlu0 %v5605_v1, %s5087_s20  ;;  %1403 = vrot.lane.b32.xlu1 %v5603_v62, %s5088_s21 }
 0x276   : > { %1133 = vrot.lane.b32.xlu0 %v5611_v5, %s5087_s20  ;;  %1540 = vrot.lane.b32.xlu1 %v5578_v30, %s5089_s24 }
 0x27e   : > { %1409 = vrot.lane.b32.xlu0 %v5578_v30, %s5088_s21  ;;  %1536 = vrot.lane.b32.xlu1 %v5605_v1, %s5089_s24 }
 0x286   : > { %1401 = vrot.lane.b32.xlu0 %v5583_v37, %s5088_s21  ;;  %1534 = vrot.lane.b32.xlu1 %v5603_v62, %s5089_s24 }
 0x28e   : > { %1538 = vrot.lane.b32.xlu0 %v5628_v11, %s5089_s24  ;;  %1516 = vrot.lane.b32.xlu1 %v5583_v37, %s5090_s25 }
 0x296   : > { %1530 = vrot.lane.b32.xlu0 %v5611_v5, %s5089_s24  ;;  %1520 = vrot.lane.b32.xlu1 %v5605_v1, %s5090_s25 }
 0x29e   : > { %1514 = vrot.lane.b32.xlu0 %v5611_v5, %s5090_s25  ;;  %1524 = vrot.lane.b32.xlu1 %v5578_v30, %s5090_s25 }
 0x2a6   : > { %1522 = vrot.lane.b32.xlu0 %v5628_v11, %s5090_s25  ;;  %1526 = vrot.lane.b32.xlu1 %v5593_v53, %s5090_s25 }
 0x2ae   : > { %2091 = vrot.lane.b32.xlu0 %v5593_v53, %s5091_s27  ;;  %2089 = vrot.lane.b32.xlu1 %v5578_v30, %s5091_s27 }
 0x2af   : > { %v1040_v16 = vpop.f32.mrf.mxu0 }
 0x2b0   : > { %v1041_v57 = vadd.f32 %v5572_v25, %v1040_v16 }
 0x2b2   : > { %v1059_v18 = vpack.c.bf16 %v1041_v57, %v1041_v57 }
 0x2b4   : > { %v1123_v23 = vunpack.c.l.b16 %v1059_v18 }
 0x2b6   : > { %2579 = vrot.lane.b32.xlu0 %v5593_v53, %s5092_s28  ;;  %2577 = vrot.lane.b32.xlu1 %v5578_v30, %s5092_s28 }
 0x2b7   : > { %v1042_v39 = vpop.f32.mrf.mxu0 }
 0x2b8   : > { %v1043_v19 = vadd.f32 %v5572_v25, %v1042_v39 }
 0x2ba   : > { %v1060_v4 = vpack.c.bf16 %v1043_v19, %v1043_v19 }
 0x2bc   : > { %v1124_v17 = vunpack.c.l.b16 %v1060_v4 }
 0x2be   : > { %2085 = vrot.lane.b32.xlu0 %v5605_v1, %s5091_s27  ;;  %2083 = vrot.lane.b32.xlu1 %v5603_v62, %s5091_s27  ;;  %v5660_v42 = vpack.c.b16 %v1124_v17, %v1123_v23 }
 0x2c0   : > { %1147 = vrot.lane.b32.xlu2 %v5660_v42, %s5087_s20 }
 0x2c6   : > { %2573 = vrot.lane.b32.xlu0 %v5605_v1, %s5092_s28  ;;  %2571 = vrot.lane.b32.xlu1 %v5603_v62, %s5092_s28 }
 0x2c8   : > { %v1144_v35 = vpop.permute.xlu1 %1143  ;;  %1141 = vrot.lane.b32.xlu2 %v5628_v11, %s5087_s20 }
 0x2c9   : > { %v1190_v41 = vsel %vm1149_vm5, %v1144_v35, 0  ;;  %v1480_v35 = vld [vmem:[%s7423_s4] sm:$0xf] }
 0x2ce   : > { %2079 = vrot.lane.b32.xlu0 %v5611_v5, %s5091_s27  ;;  %2063 = vrot.lane.b32.xlu1 %v5611_v5, %s5093_s30 }
 0x2d0   : > { %v1136_v25 = vpop.permute.xlu1 %1135  ;;  %1137 = vrot.lane.b32.xlu2 %v5603_v62, %s5087_s20 }
 0x2d1   : > { %v1178_v44 = vsel %vm1149_vm5, %v1136_v25, 0  ;;  %v1979_v25 = vsel %vm1901_vm6, %v1480_v35, 0 }
 0x2d6   : > { %2567 = vrot.lane.b32.xlu0 %v5611_v5, %s5092_s28  ;;  %2065 = vrot.lane.b32.xlu1 %v5583_v37, %s5093_s30 }
 0x2d8   : > { %v5680_v24 = vpop.permute.xlu1 %1411  ;;  %1407 = vrot.lane.b32.xlu2 %v5628_v11, %s5088_s21  ;;  %v1146_v31 = vpop.permute.xlu0 %1145 }
 0x2d9   : > { %v1193_v32 = vsel %vm1149_vm5, %v1146_v31, 0 }
 0x2de   : > { %2553 = vrot.lane.b32.xlu0 %v5583_v37, %s5094_s23  ;;  %1544 = vrot.lane.b32.xlu1 %v5660_v42, %s5089_s24 }
 0x2e0   : > { %v5688_v27 = vpop.permute.xlu1 %1403  ;;  %1405 = vrot.lane.b32.xlu2 %v5605_v1, %s5088_s21  ;;  %v1140_v52 = vpop.permute.xlu0 %1139 }
 0x2e1   : > { %v1184_v9 = vsel %vm1149_vm5, %v1140_v52, 0 }
 0x2e6   : > { %2093 = vrot.lane.b32.xlu1 %v5660_v42, %s5091_s27 }
 0x2e8   : > { %v5694_v15 = vpop.permute.xlu1 %1540  ;;  %1399 = vrot.lane.b32.xlu2 %v5611_v5, %s5088_s21  ;;  %v1134_v0 = vpop.permute.xlu0 %1133 }
 0x2e9   : > { %v1175_v2 = vsel %vm1149_vm5, %v1134_v0, 0  ;;  %v1586_v10 = vsel %vm1149_vm5, %v5694_v15, 0 }
 0x2f0   : > { %v5698_v28 = vpop.permute.xlu1 %1536  ;;  %1542 = vrot.lane.b32.xlu2 %v5593_v53, %s5089_s24  ;;  %v1410_v60 = vpop.permute.xlu0 %1409 }
 0x2f1   : > { %v1580_v16 = vsel %vm1149_vm5, %v5698_v28, 0 }
 0x2f8   : > { %v5702_v33 = vpop.permute.xlu1 %1534  ;;  %1532 = vrot.lane.b32.xlu2 %v5583_v37, %s5089_s24  ;;  %v1402_v34 = vpop.permute.xlu0 %1401  ;;  %s4401_s24 = sshll.u32 %s7465_s29, 8  ;;  %s5095_s29 = smov 56  }
 0x2f9   : > { %v1577_v18 = vsel %vm1149_vm5, %v5702_v33, 0 }
 0x300   : > { %v5706_v58 = vpop.permute.xlu1 %1516  ;;  %1518 = vrot.lane.b32.xlu2 %v5603_v62, %s5090_s25  ;;  %v1539_v40 = vpop.permute.xlu0 %1538 }
 0x301   : > { %v1583_v56 = vsel %vm1149_vm5, %v1539_v40, 0 }
 0x308   : > { %v5710_v8 = vpop.permute.xlu1 %1520  ;;  %2087 = vrot.lane.b32.xlu2 %v5628_v11, %s5091_s27  ;;  %v1531_v39 = vpop.permute.xlu0 %1530 }
 0x309   : > { %v1571_v15 = vsel %vm1149_vm5, %v1531_v39, 0 }
 0x310   : > { %v5714_v29 = vpop.permute.xlu1 %1524  ;;  %2575 = vrot.lane.b32.xlu2 %v5628_v11, %s5092_s28  ;;  %v1515_v23 = vpop.permute.xlu0 %1514 }
 0x318   : > { %v5718_v12 = vpop.permute.xlu1 %1526  ;;  %2081 = vrot.lane.b32.xlu2 %v5583_v37, %s5091_s27  ;;  %v1523_v33 = vpop.permute.xlu0 %1522 }
 0x31a   : > { %v1148_v6 = vpop.permute.xlu2 %1147 }
 0x31b   : > { %v1196_v47 = vsel %vm1149_vm5, %v1148_v6, 0 }
 0x31c   : > { %1198 = vmatpush.bf16.xpose.msra.mxu1 %v1196_v47 }
 0x320   : > { %v5723_v50 = vpop.permute.xlu1 %2089  ;;  %2569 = vrot.lane.b32.xlu2 %v5583_v37, %s5092_s28 }
 0x322   : > { %v1142_v7 = vpop.permute.xlu2 %1141 }
 0x323   : > { %v1187_v43 = vsel %vm1149_vm5, %v1142_v7, 0  ;;  %v2092_v7 = vpop.permute.xlu0 %2091 }
 0x324   : > { %1199 = vmatpush.bf16.xpose.msra.mxu1 %v1193_v32  ;;  %v2138_v32 = vsel %vm1149_vm5, %v2092_v7, 0 }
 0x328   : > { %v5728_v22 = vpop.permute.xlu1 %2577  ;;  %2551 = vrot.lane.b32.xlu2 %v5611_v5, %s5094_s23 }
 0x32a   : > { %v1138_v36 = vpop.permute.xlu2 %1137 }
 0x32b   : > { %v1181_v21 = vsel %vm1149_vm5, %v1138_v36, 0  ;;  %v2135_v36 = vsel %vm1149_vm5, %v5723_v50, 0 }
 0x32c   : > { %1200 = vmatpush.bf16.xpose.msra.mxu1 %v1190_v41 }
 0x330   : > { %v5733_v45 = vpop.permute.xlu1 %2083  ;;  %2067 = vrot.lane.b32.xlu2 %v5603_v62, %s5093_s30 }
 0x331   : > { %v2126_v50 = vsel %vm1149_vm5, %v5733_v45, 0 }
 0x332   : > { %v5737_v48 = vpop.permute.xlu2 %1407 }
 0x334   : > { %1201 = vmatpush.bf16.xpose.msra.mxu1 %v1187_v43 }
 0x338   : > { %v5740_v51 = vpop.permute.xlu1 %2571  ;;  %1413 = vrot.lane.b32.xlu2 %v5660_v42, %s5088_s21 }
 0x33a   : > { %v5744_v38 = vpop.permute.xlu2 %1405 }
 0x33c   : > { %1202 = vmatpush.bf16.xpose.msra.mxu1 %v1184_v9 }
 0x340   : > { %v5747_v46 = vpop.permute.xlu1 %2063  ;;  %1528 = vrot.lane.b32.xlu2 %v5660_v42, %s5090_s25 }
 0x342   : > { %v5751_v63 = vpop.permute.xlu2 %1399 }
 0x344   : > { %1203 = vmatpush.bf16.xpose.msra.mxu1 %v1181_v21 }
 0x348   : > { %v5754_v54 = vpop.permute.xlu1 %2065  ;;  %2581 = vrot.lane.b32.xlu2 %v5660_v42, %s5092_s28  ;;  %s5837_s28 = scalar_lea.vmem %s7420_s1, %s4401_s24 }
 0x34a   : > { %v1543_v55 = vpop.permute.xlu2 %1542 }
 0x34b   : > { %v1589_v49 = vsel %vm1149_vm5, %v1543_v55, 0 }
 0x34c   : > { %1204 = vmatpush.bf16.xpose.msra.mxu1 %v1178_v44  ;;  %v4542_v44 = vld [vmem:[%s5837_s28 + $0x8] sm:$0xff]  }
 0x350   : > { %v1545_v59 = vpop.permute.xlu1 %1544 }
 0x351   : > { %v1592_v26 = vsel %vm1149_vm5, %v1545_v59, 0  ;;  %v4420_v59 = vunpack.c.l.bf16 %v4542_v44 }
 0x352   : > { %1594 = vmatpush.bf16.xpose.msra.mxu3 %v1592_v26  ;;  %v1533_v61 = vpop.permute.xlu2 %1532 }
 0x353   : > { %v1574_v4 = vsel %vm1149_vm5, %v1533_v61, 0  ;;  %v4421_v61 = vunpack.c.h.bf16 %v4542_v44  ;;  %v4547_v44 = vld [vmem:[%s5837_s28 + $0x30] sm:$0xff]  }
 0x354   : > { %1205 = vmatpush.bf16.xpose.msra.mxu1 %v1175_v2 }
 0x358   : > { %v2094_v6 = vpop.permute.xlu1 %2093 }
 0x359   : > { %v2141_v47 = vsel %vm1149_vm5, %v2094_v6, 0 }
 0x35a   : > { %1595 = vmatpush.bf16.xpose.msra.mxu3 %v1589_v49  ;;  %v5762_v3 = vpop.permute.xlu2 %1518 }
 0x35b   : > { %4239 = vmatmul.msk.bf16.vlgmr.msra.gmra.mxu1 %vm1149_vm5, %v5611_v5 }
 0x362   : > { %1596 = vmatpush.bf16.xpose.msra.mxu3 %v1586_v10  ;;  %v2088_v13 = vpop.permute.xlu2 %2087 }
 0x363   : > { %v2132_v41 = vsel %vm1149_vm5, %v2088_v13, 0 }
 0x36a   : > { %1597 = vmatpush.bf16.xpose.msra.mxu3 %v1583_v56  ;;  %v5769_v14 = vpop.permute.xlu2 %2575 }
 0x36b   : > { %4240 = vmatmul.msk.bf16.gmra.mxu1 %vm1149_vm5, %v5583_v37 }
 0x372   : > { %1598 = vmatpush.bf16.xpose.msra.mxu3 %v1580_v16  ;;  %v2082_v57 = vpop.permute.xlu2 %2081 }
 0x373   : > { %v2123_v43 = vsel %vm1149_vm5, %v2082_v57, 0 }
 0x37a   : > { %1599 = vmatpush.bf16.xpose.msra.mxu3 %v1577_v18  ;;  %v5777_v19 = vpop.permute.xlu2 %2569 }
 0x37b   : > { %4241 = vmatmul.msk.bf16.gmra.mxu1 %vm1149_vm5, %v5603_v62 }
 0x382   : > { %1600 = vmatpush.bf16.xpose.msra.mxu3 %v1574_v4  ;;  %v5782_v17 = vpop.permute.xlu2 %2551 }
 0x38a   : > { %1601 = vmatpush.bf16.xpose.msra.mxu3 %v1571_v15  ;;  %v5789_v28 = vpop.permute.xlu2 %2067 }
 0x38b   : > { %4242 = vmatmul.msk.bf16.gmra.mxu1 %vm1149_vm5, %v5605_v1 }
 0x391   : > { %4263 = vmatmul.msk.bf16.vlgmr.msra.gmra.mxu3 %vm1149_vm5, %v1515_v23 }
 0x392   : > { %4581 = vmatpush.bf16.msrb.mxu3 %v1979_v25  ;;  %v1414_v31 = vpop.permute.xlu2 %1413 }
 0x393   : > { %1423 = vmatpush.bf16.msrb.mxu1 %v1414_v31  ;;  %4573 = vmatpush.bf16.msra.mxu2 %v1414_v31 }
 0x396   : > { %2143 = vmatpush.bf16.xpose.msra.mxu3 %v2141_v47 }
 0x397   : > { %1424 = vmatpush.bf16.msrb.mxu1 %v5680_v24  ;;  %4574 = vmatpush.bf16.msra.mxu2 %v5680_v24  ;;  %v5806_v24 = vpop.permute.xlu0 %2579 }
 0x39a   : > { %v1529_v40 = vpop.permute.xlu2 %1528 }
 0x39b   : > { %4243 = vmatmul.msk.bf16.gmra.mxu1 %vm1149_vm5, %v5628_v11  ;;  %4575 = vmatpush.bf16.msra.mxu2 %v1410_v60 }
 0x39c   : > { %1425 = vmatpush.bf16.msrb.mxu1 %v1410_v60 }
 0x39e   : > { %2144 = vmatpush.bf16.xpose.msra.mxu3 %v2138_v32  ;;  %v5882_v32 = vld [vmem:[%s5837_s28 + $0x48] sm:$0xff]  }
 0x39f   : > { %4576 = vmatpush.bf16.msra.mxu2 %v5737_v48 }
 0x3a0   : > { %1426 = vmatpush.bf16.msrb.mxu1 %v5737_v48 }
 0x3a1   : > { %4264 = vmatmul.msk.bf16.gmra.mxu3 %vm1149_vm5, %v5706_v58  ;;  %v2086_v58 = vpop.permute.xlu0 %2085 }
 0x3a3   : > { %4577 = vmatpush.bf16.msra.mxu2 %v5744_v38 }
 0x3a4   : > { %1427 = vmatpush.bf16.msrb.mxu1 %v5744_v38 }
 0x3a6   : > { %2145 = vmatpush.bf16.xpose.msra.mxu3 %v2135_v36 }
 0x3a7   : > { %4578 = vmatpush.bf16.msra.mxu2 %v5688_v27 }
 0x3a8   : > { %1428 = vmatpush.bf16.msrb.mxu1 %v5688_v27  ;;  %v2129_v27 = vsel %vm1149_vm5, %v2086_v58, 0 }
 0x3a9   : > { %v5822_v48 = vpop.permute.xlu0 %2573 }
 0x3ab   : > { %4244 = vmatmul.msk.bf16.gmra.mxu1 %vm1149_vm5, %v5578_v30  ;;  %4579 = vmatpush.bf16.msra.mxu2 %v1402_v34 }
 0x3ac   : > { %1429 = vmatpush.bf16.msrb.mxu1 %v1402_v34 }
 0x3ae   : > { %2146 = vmatpush.bf16.xpose.msra.mxu3 %v2132_v41  ;;  %v4452_v41 = vunpack.c.l.bf16 %v5882_v32 }
 0x3af   : > { %4580 = vmatpush.bf16.msra.mxu2 %v5751_v63 }
 0x3b0   : > { %1430 = vmatpush.bf16.msrb.mxu1 %v5751_v63 }
 0x3b1   : > { %4265 = vmatmul.msk.bf16.gmra.mxu3 %vm1149_vm5, %v5762_v3  ;;  %v2080_v52 = vpop.permute.xlu0 %2079 }
 0x3b2   : > { %v2120_v38 = vsel %vm1149_vm5, %v2080_v52, 0 }
 0x3b4   : > { %1988 = vmatpush.bf16.msra.mxu1 %v1979_v25  ;;  %v4545_v25 = vld [vmem:[%s5837_s28 + $0x20] sm:$0xff]  }
 0x3b5   : > { %v4433_v7 = vunpack.c.h.bf16 %v4545_v25 }
 0x3b6   : > { %2147 = vmatpush.bf16.xpose.msra.mxu3 %v2129_v27  ;;  %v4546_v27 = vld [vmem:[%s5837_s28 + $0x28] sm:$0xff]  }
 0x3b7   : > { %v4436_v52 = vunpack.c.l.bf16 %v4546_v27 }
 0x3bb   : > { %4245 = vmatmul.msk.bf16.gmra.mxu1 %vm1149_vm5, %v5593_v53 }
 0x3be   : > { %2148 = vmatpush.bf16.xpose.msra.mxu3 %v2126_v50 }
 0x3c1   : > { %4266 = vmatmul.msk.bf16.gmra.mxu3 %vm1149_vm5, %v5710_v8  ;;  %v4415_v8 = vld [vmem:[%s5837_s28] sm:$0xff]  }
 0x3c2   : > { %v4416_v45 = vunpack.c.l.bf16 %v4415_v8  ;;  %v4417_v21 = vunpack.c.h.bf16 %v4415_v8 }
 0x3c6   : > { %2149 = vmatpush.bf16.xpose.msra.mxu3 %v2123_v43 }
 0x3cb   : > { %4246 = vmatmul.msk.bf16.gmra.mxu1 %vm1149_vm5, %v5660_v42 }
 0x3ce   : > { %2150 = vmatpush.bf16.xpose.msra.mxu3 %v2120_v38 }
 0x3d1   : > { %4267 = vmatmul.msk.bf16.gmra.mxu3 %vm1149_vm5, %v1523_v33  ;;  %v4432_v33 = vunpack.c.l.bf16 %v4545_v25 }
 0x3d8   : > { %v1207_v9 = vpop.f32.mrf.mxu1 }
 0x3d9   : > { %v5841_v63 = vadd.f32 %v4416_v45, %v1207_v9  ;;  %v4437_v9 = vunpack.c.h.bf16 %v4546_v27 }
 0x3db   : > { %1247 = vmax.xlane.f32.xlu0 %v5841_v63 }
 0x3e0   : > { %v1209_v0 = vpop.f32.mrf.mxu1 }
 0x3e1   : > { %4268 = vmatmul.msk.bf16.gmra.mxu3 %vm1149_vm5, %v5714_v29  ;;  %v5846_v55 = vadd.f32 %v4417_v21, %v1209_v0  ;;  %v4543_v29 = vld [vmem:[%s5837_s28 + $0x10] sm:$0xff]  }
 0x3e2   : > { %v4424_v3 = vunpack.c.l.bf16 %v4543_v29  ;;  %v4425_v13 = vunpack.c.h.bf16 %v4543_v29 }
 0x3e3   : > { %1249 = vmax.xlane.f32.xlu1 %v5846_v55 }
 0x3e8   : > { %v1212_v26 = vpop.f32.mrf.mxu1 }
 0x3e9   : > { %v5850_v60 = vadd.f32 %v4420_v59, %v1212_v26  ;;  %v4440_v26 = vunpack.c.l.bf16 %v4547_v44 }
 0x3eb   : > { %1251 = vmax.xlane.f32.xlu2 %v5850_v60 }
 0x3f0   : > { %v1214_v2 = vpop.f32.mrf.mxu1 }
 0x3f1   : > { %4269 = vmatmul.msk.bf16.gmra.mxu3 %vm1149_vm5, %v5718_v12  ;;  %v5855_v49 = vadd.f32 %v4421_v61, %v1214_v2  ;;  %v4544_v12 = vld [vmem:[%s5837_s28 + $0x18] sm:$0xff]  }
 0x3f2   : > { %v4428_v57 = vunpack.c.l.bf16 %v4544_v12  ;;  %v4429_v4 = vunpack.c.h.bf16 %v4544_v12 }
 0x3f3   : > { %1253 = vmax.xlane.f32.xlu1 %v5855_v49 }
 0x3f8   : > { %v1217_v34 = vpop.f32.mrf.mxu1 }
 0x3f9   : > { %v5859_v10 = vadd.f32 %v4424_v3, %v1217_v34  ;;  %v5907_v3 = vpop.permute.xlu0 %2567  ;;  %v4441_v34 = vunpack.c.h.bf16 %v4547_v44 }
 0x3fb   : > { %1255 = vmax.xlane.f32.xlu0 %v5859_v10 }
 0x400   : > { %v1219_v56 = vpop.f32.mrf.mxu1 }
 0x401   : > { %4270 = vmatmul.msk.bf16.gmra.mxu3 %vm1149_vm5, %v1529_v40  ;;  %v5863_v16 = vadd.f32 %v4425_v13, %v1219_v56  ;;  %v4548_v56 = vld [vmem:[%s5837_s28 + $0x38] sm:$0xff]  }
 0x403   : > { %1257 = vmax.xlane.f32.xlu2 %v5863_v16 }
 0x408   : > { %v1222_v39 = vpop.f32.mrf.mxu1 }
 0x409   : > { %v5867_v18 = vadd.f32 %v4428_v57, %v1222_v39  ;;  %v4444_v57 = vunpack.c.l.bf16 %v4548_v56  ;;  %v5915_v39 = vpop.permute.xlu0 %2553 }
 0x40b   : > { %1259 = vmax.xlane.f32.xlu1 %v5867_v18 }
 0x410   : > { %v1224_v23 = vpop.f32.mrf.mxu1 }
 0x411   : > { %v5870_v35 = vadd.f32 %v4429_v4, %v1224_v23 }
 0x413   : > { %1261 = vmax.xlane.f32.xlu0 %v5870_v35 }
 0x414   : > { %v5874_v15 = vpop.f32.mrf.mxu3 }
 0x418   : > { %v1227_v6 = vpop.f32.mrf.mxu1 }
 0x419   : > { %v5876_v47 = vadd.f32 %v4432_v33, %v1227_v6  ;;  %v4445_v33 = vunpack.c.h.bf16 %v4548_v56  ;;  %v5923_v6 = vld [vmem:[%s5837_s28 + $0x60] sm:$0xff]  }
 0x41a   : > { %v4464_v27 = vunpack.c.l.bf16 %v5923_v6 }
 0x41b   : > { %1263 = vmax.xlane.f32.xlu0 %v5876_v47 }
 0x41c   : > { %v5879_v31 = vpop.f32.mrf.mxu3 }
 0x420   : > { %v1229_v36 = vpop.f32.mrf.mxu1 }
 0x421   : > { %v5885_v58 = vadd.f32 %v4433_v7, %v1229_v36 }
 0x423   : > { %1265 = vmax.xlane.f32.xlu1 %v5885_v58 }
 0x424   : > { %v1608_v50 = vpop.f32.mrf.mxu3 }
 0x425   : > { %v5889_v43 = vadd.f32 %v4452_v41, %v1608_v50 }
 0x428   : > { %v1232_v38 = vpop.f32.mrf.mxu1 }
 0x429   : > { %v5891_v8 = vadd.f32 %v4436_v52, %v1232_v38 }
 0x42b   : > { %1267 = vmax.xlane.f32.xlu2 %v5891_v8 }
 0x42c   : > { %v5894_v45 = vpop.f32.mrf.mxu3 }
 0x430   : > { %v1234_v21 = vpop.f32.mrf.mxu1 }
 0x431   : > { %v5896_v0 = vadd.f32 %v4437_v9, %v1234_v21  ;;  %v5932_v21 = vpop.permute.xlu2 %2581 }
 0x433   : > { %1269 = vmax.xlane.f32.xlu0 %v5896_v0 }
 0x434   : > { %v5900_v59 = vpop.f32.mrf.mxu3 }
 0x438   : > { %v1237_v61 = vpop.f32.mrf.mxu1 }
 0x439   : > { %v5902_v2 = vadd.f32 %v4440_v26, %v1237_v61 }
 0x43b   : > { %1271 = vmax.xlane.f32.xlu0 %v5902_v2 }
 0x43c   : > { %v5905_v29 = vpop.f32.mrf.mxu3 }
 0x440   : > { %v1239_v13 = vpop.f32.mrf.mxu1 }
 0x441   : > { %v5909_v40 = vadd.f32 %v4441_v34, %v1239_v13 }
 0x443   : > { %1273 = vmax.xlane.f32.xlu0 %v5909_v40 }
 0x444   : > { %v5913_v12 = vpop.f32.mrf.mxu3 }
 0x448   : > { %v1242_v4 = vpop.f32.mrf.mxu1 }
 0x449   : > { %v5917_v23 = vadd.f32 %v4444_v57, %v1242_v4 }
 0x44b   : > { %1275 = vmax.xlane.f32.xlu1 %v5917_v23 }
 0x44c   : > { %v5920_v25 = vpop.f32.mrf.mxu3 }
 0x44e   : > { %v1248_v7 = vpop.xlane.xlu0 %1247 }
 0x44f   : > { %v1279_v36 = vsub.f32 %v5841_v63, %v1248_v7 }
 0x450   : > { %v1244_v41 = vpop.f32.mrf.mxu1 }
 0x451   : > { %v1295_v50 = vmul.f32 1.442695, %v1279_v36  ;;  %v5927_v52 = vadd.f32 %v4445_v33, %v1244_v41 }
 0x453   : > { %4677 = vpow2.f32 %v1295_v50  ;;  %1277 = vmax.xlane.f32.xlu0 %v5927_v52 }
 0x454   : > { %v1623_v38 = vpop.f32.mrf.mxu3 }
 0x455   : > { %v5930_v9 = vadd.f32 %v4464_v27, %v1623_v38 }
 0x456   : > { %v1250_v44 = vpop.xlane.xlu1 %1249 }
 0x457   : > { %v1280_v26 = vsub.f32 %v5846_v55, %v1250_v44  ;;  %v4549_v55 = vld [vmem:[%s5837_s28 + $0x40] sm:$0xff]  }
 0x458   : > { %v4448_v41 = vunpack.c.l.bf16 %v4549_v55 }
 0x459   : > { %v5935_v61 = vpop.eup %4677  ;;  %v1297_v63 = vmul.f32 1.442695, %v1280_v26 }
 0x45a   : > { %v5949_v50 = vadd.f32 %v4448_v41, %v5874_v15 }
 0x45b   : > { %4679 = vpow2.f32 %v1297_v63  ;;  %1327 = vadd.xlane.f32.xlu0 %v5935_v61 }
 0x45e   : > { %v1252_v34 = vpop.xlane.xlu2 %1251 }
 0x45f   : > { %v1281_v13 = vsub.f32 %v5850_v60, %v1252_v34 }
 0x461   : > { %v5939_v56 = vpop.eup %4679  ;;  %v1299_v57 = vmul.f32 1.442695, %v1281_v13 }
 0x463   : > { %4681 = vpow2.f32 %v1299_v57  ;;  %1329 = vadd.xlane.f32.xlu0 %v5939_v56 }
 0x466   : > { %v1254_v4 = vpop.xlane.xlu1 %1253 }
 0x467   : > { %v1282_v33 = vsub.f32 %v5855_v49, %v1254_v4 }
 0x469   : > { %v5943_v7 = vpop.eup %4681  ;;  %v1301_v36 = vmul.f32 1.442695, %v1282_v33 }
 0x46a   : > { %1331 = vadd.xlane.f32.xlu2 %v5943_v7 }
 0x46b   : > { %4683 = vpow2.f32 %v1301_v36 }
 0x46e   : > { %v1256_v27 = vpop.xlane.xlu0 %1255 }
 0x46f   : > { %v1283_v60 = vsub.f32 %v5859_v10, %v1256_v27 }
 0x471   : > { %v5951_v38 = vpop.eup %4683  ;;  %v1303_v44 = vmul.f32 1.442695, %v1283_v60 }
 0x472   : > { %1643 = vmax.xlane.f32.xlu2 %v5949_v50  ;;  %1333 = vadd.xlane.f32.xlu0 %v5951_v38 }
 0x473   : > { %4685 = vpow2.f32 %v1303_v44 }
 0x476   : > { %v1258_v33 = vpop.xlane.xlu2 %1257 }
 0x479   : > { %v5955_v49 = vpop.eup %4685 }
 0x47a   : > { %1335 = vadd.xlane.f32.xlu1 %v5955_v49 }
 0x47e   : > { %v1260_v63 = vpop.xlane.xlu1 %1259 }
 0x486   : > { %2069 = vrot.lane.b32.xlu0 %v5605_v1, %s5093_s30  ;;  %v1262_v26 = vpop.xlane.xlu0 %1261 }
 0x487   : > { %v1286_v10 = vsub.f32 %v5870_v35, %v1262_v26  ;;  %v1284_v26 = vsub.f32 %v5863_v16, %v1258_v33 }
 0x489   : > { %v1309_v15 = vmul.f32 1.442695, %v1286_v10 }
 0x48b   : > { %4687 = vpow2.f32 %v1309_v15  ;;  %v1305_v15 = vmul.f32 1.442695, %v1284_v26 }
 0x48e   : > { %v1264_v34 = vpop.xlane.xlu0 %1263 }
 0x48f   : > { %v1287_v13 = vsub.f32 %v5876_v47, %v1264_v34 }
 0x491   : > { %v5962_v57 = vpop.eup %4687  ;;  %v1311_v4 = vmul.f32 1.442695, %v1287_v13 }
 0x492   : > { %1341 = vadd.xlane.f32.xlu2 %v5962_v57 }
 0x493   : > { %4689 = vpow2.f32 %v1311_v4  ;;  %2555 = vrot.lane.b32.xlu1 %v5603_v62, %s5094_s23  ;;  %v4453_v4 = vunpack.c.h.bf16 %v5882_v32 }
 0x495   : > { %v5985_v16 = vadd.f32 %v4453_v4, %v5894_v45  ;;  %v2629_v4 = vsel %vm1149_vm5, %v5932_v21, 0 }
 0x496   : > { %v1266_v36 = vpop.xlane.xlu1 %1265 }
 0x497   : > { %v1288_v41 = vsub.f32 %v5885_v58, %v1266_v36  ;;  %v1285_v58 = vsub.f32 %v5867_v18, %v1260_v63  ;;  %v4449_v63 = vunpack.c.h.bf16 %v4549_v55 }
 0x499   : > { %v5968_v35 = vpop.eup %4689  ;;  %v1313_v27 = vmul.f32 1.442695, %v1288_v41 }
 0x49a   : > { %1343 = vadd.xlane.f32.xlu2 %v5968_v35 }
 0x49b   : > { %4691 = vpow2.f32 %v1313_v27  ;;  %v5993_v27 = vadd.f32 %v4449_v63, %v5879_v31 }
 0x49e   : > { %v1268_v47 = vpop.xlane.xlu2 %1267 }
 0x49f   : > { %v1289_v60 = vsub.f32 %v5891_v8, %v1268_v47  ;;  %v1307_v8 = vmul.f32 1.442695, %v1285_v58 }
 0x4a1   : > { %v5972_v44 = vpop.eup %4691  ;;  %v1315_v10 = vmul.f32 1.442695, %v1289_v60 }
 0x4a2   : > { %1345 = vadd.xlane.f32.xlu2 %v5972_v44 }
 0x4a3   : > { %4693 = vpow2.f32 %v1315_v10 }
 0x4a4   : > { %4695 = vpow2.f32 %v1305_v15 }
 0x4a5   : > { %4697 = vpow2.f32 %v1307_v8 }
 0x4a6   : > { %v1270_v13 = vpop.xlane.xlu0 %1269 }
 0x4a7   : > { %v1290_v41 = vsub.f32 %v5896_v0, %v1270_v13 }
 0x4a9   : > { %v5976_v34 = vpop.eup %4693  ;;  %v1317_v32 = vmul.f32 1.442695, %v1290_v41 }
 0x4aa   : > { %1347 = vadd.xlane.f32.xlu2 %v5976_v34  ;;  %v5981_v36 = vpop.eup %4695 }
 0x4ab   : > { %v5989_v18 = vpop.eup %4697  ;;  %4699 = vpow2.f32 %v1317_v32 }
 0x4ae   : > { %v1272_v33 = vpop.xlane.xlu0 %1271 }
 0x4af   : > { %v1291_v41 = vsub.f32 %v5902_v2, %v1272_v33 }
 0x4b0   : > { %1337 = vadd.xlane.f32.xlu0 %v5981_v36 }
 0x4b1   : > { %v5996_v47 = vpop.eup %4699 }
 0x4b2   : > { %1649 = vmax.xlane.f32.xlu2 %v5985_v16 }
 0x4b6   : > { %v1274_v45 = vpop.xlane.xlu0 %1273 }
 0x4b7   : > { %v1292_v33 = vsub.f32 %v5909_v40, %v1274_v45  ;;  %v2614_v40 = vsel %vm1149_vm5, %v5740_v51, 0  ;;  %v2611_v45 = vsel %vm1149_vm5, %v5777_v19, 0  ;;  %v2608_v51 = vsel %vm1149_vm5, %v5907_v3, 0 }
 0x4b8   : > { %1339 = vadd.xlane.f32.xlu0 %v5989_v18 }
 0x4bd   : > { %1645 = vmax.xlane.f32.xlu1 %v5993_v27 }
 0x4c5   : > { %1349 = vadd.xlane.f32.xlu1 %v5996_v47 }
 0x4c6   : > { %v1278_v60 = vpop.xlane.xlu0 %1277 }
 0x4ca   : > { %2073 = vrot.lane.b32.xlu2 %v5578_v30, %s5093_s30 }
 0x4cc   : > { %2557 = vrot.lane.b32.xlu0 %v5605_v1, %s5094_s23 }
 0x4ce   : > { %v1328_v0 = vpop.xlane.xlu0 %1327 }
 0x4cf   : > { %4701 = vrcp.f32 %v1328_v0 }
 0x4d2   : > { %2561 = vrot.lane.b32.xlu2 %v5578_v30, %s5094_s23 }
 0x4d5   : > { %v4702_v55 = vpop.eup %4701 }
 0x4d6   : > { %v1330_v31 = vpop.xlane.xlu0 %1329  ;;  %v1375_v10 = vmul.f32 %v4702_v55, %v5935_v61  ;;  %v2626_v61 = vsel %vm1149_vm5, %v5806_v24, 0  ;;  %v2623_v55 = vsel %vm1149_vm5, %v5728_v22, 0  ;;  %v2620_v24 = vsel %vm1149_vm5, %v5769_v14, 0 }
 0x4d7   : > { %4703 = vrcp.f32 %v1330_v31 }
 0x4da   : > { %1807 = vrot.lane.b32.xlu2 %v5593_v53, %s5095_s29 }
 0x4dd   : > { %v4704_v26 = vpop.eup %4703  ;;  %v1332_v13 = vpop.xlane.xlu2 %1331 }
 0x4de   : > { %2559 = vrot.lane.b32.xlu1 %v5628_v11, %s5094_s23  ;;  %v1376_v15 = vmul.f32 %v4704_v26, %v5939_v56  ;;  %4705 = vrcp.f32 %v1332_v13  ;;  %v1319_v56 = vmul.f32 1.442695, %v1291_v41  ;;  %v4551_v26 = vld [vmem:[%s5837_s28 + $0x50] sm:$0xff]  }
 0x4e0   : > { %v1391_v58 = vpack.c.bf16 %v1376_v15, %v1375_v10  ;;  %v2617_v10 = vsel %vm1149_vm5, %v5822_v48, 0  ;;  %v4457_v15 = vunpack.c.h.bf16 %v4551_v26  ;;  %v1294_v48 = vsub.f32 %v5927_v52, %v1278_v60 }
 0x4e2   : > { %1805 = vrot.lane.b32.xlu2 %v5578_v30, %s5095_s29  ;;  %1431 = vmatmul.bf16.vlgmr.msrb.gmra.mxu1 %v1391_v58  ;;  %v6033_v58 = vadd.f32 %v4457_v15, %v5905_v29 }
 0x4e3   : > { %2631 = vmatpush.bf16.xpose.msrb.mxu1 %v2629_v4 }
 0x4e4   : > { %v4706_v63 = vpop.eup %4705 }
 0x4e5   : > { %v1334_v8 = vpop.xlane.xlu0 %1333  ;;  %v1377_v21 = vmul.f32 %v4706_v63, %v5943_v7  ;;  %v1321_v7 = vmul.f32 1.442695, %v1292_v33  ;;  %v1644_v4 = vpop.xlane.xlu2 %1643 }
 0x4e6   : > { %4707 = vrcp.f32 %v1334_v8 }
 0x4e7   : > { %4709 = vpow2.f32 %v1319_v56 }
 0x4e8   : > { %4711 = vpow2.f32 %v1321_v7 }
 0x4eb   : > { %2632 = vmatpush.bf16.xpose.msrb.mxu1 %v2626_v61 }
 0x4ec   : > { %v4708_v32 = vpop.eup %4707 }
 0x4ed   : > { %v1378_v0 = vmul.f32 %v4708_v32, %v5951_v38  ;;  %v6022_v2 = vpop.eup %4709  ;;  %v1276_v38 = vpop.xlane.xlu1 %1275 }
 0x4ee   : > { %v1293_v22 = vsub.f32 %v5917_v23, %v1276_v38  ;;  %v6036_v14 = vpop.eup %4711  ;;  %v1325_v23 = vmul.f32 1.442695, %v1294_v48 }
 0x4ef   : > { %v1392_v31 = vpack.c.bf16 %v1378_v0, %v1377_v21 }
 0x4f0   : > { %v1323_v13 = vmul.f32 1.442695, %v1293_v22 }
 0x4f1   : > { %1436 = vmatmul.bf16.vlgmr.msra.gmra.mxu2 %v1392_v31 }
 0x4f2   : > { %4713 = vpow2.f32 %v1323_v13 }
 0x4f3   : > { %2633 = vmatpush.bf16.xpose.msrb.mxu1 %v2623_v55  ;;  %4715 = vpow2.f32 %v1325_v23 }
 0x4f5   : > { %v1336_v52 = vpop.xlane.xlu1 %1335 }
 0x4f6   : > { %1351 = vadd.xlane.f32.xlu0 %v6022_v2  ;;  %4717 = vrcp.f32 %v1336_v52  ;;  %v1625_v52 = vpop.f32.mrf.mxu3 }
 0x4f8   : > { %v6044_v29 = vpop.eup %4713  ;;  %v6053_v41 = vpop.permute.xlu0 %2069 }
 0x4f9   : > { %v6049_v8 = vpop.eup %4715 }
 0x4fb   : > { %2634 = vmatpush.bf16.xpose.msrb.mxu1 %v2620_v24  ;;  %v4456_v24 = vunpack.c.l.bf16 %v4551_v26 }
 0x4fc   : > { %v4718_v63 = vpop.eup %4717 }
 0x4fd   : > { %v1379_v32 = vmul.f32 %v4718_v63, %v5955_v49  ;;  %v6065_v49 = vadd.f32 %v4456_v24, %v5900_v59 }
 0x503   : > { %2635 = vmatpush.bf16.xpose.msrb.mxu1 %v2617_v10  ;;  %v1675_v10 = vsub.f32 %v5949_v50, %v1644_v4 }
 0x505   : > { %v1342_v60 = vpop.xlane.xlu2 %1341  ;;  %v1691_v13 = vmul.f32 1.442695, %v1675_v10 }
 0x508   : > { %1653 = vmax.xlane.f32.xlu1 %v6033_v58 }
 0x50a   : > { %2071 = vrot.lane.b32.xlu0 %v5628_v11, %s5093_s30 }
 0x50b   : > { %2636 = vmatpush.bf16.xpose.msrb.mxu1 %v2614_v40  ;;  %1353 = vadd.xlane.f32.xlu2 %v6036_v14 }
 0x50d   : > { %v1344_v56 = vpop.xlane.xlu2 %1343 }
 0x513   : > { %2637 = vmatpush.bf16.xpose.msrb.mxu1 %v2611_v45  ;;  %1355 = vadd.xlane.f32.xlu2 %v6044_v29 }
 0x515   : > { %v1346_v31 = vpop.xlane.xlu2 %1345 }
 0x51b   : > { %2638 = vmatpush.bf16.xpose.msrb.mxu1 %v2608_v51  ;;  %1357 = vadd.xlane.f32.xlu2 %v6049_v8  ;;  %v4465_v51 = vunpack.c.h.bf16 %v5923_v6 }
 0x51d   : > { %v1348_v22 = vpop.xlane.xlu2 %1347 }
 0x521   : > { %1801 = vrot.lane.b32.xlu1 %v5605_v1, %s5095_s29 }
 0x523   : > { %v1338_v19 = vpop.xlane.xlu0 %1337 }
 0x524   : > { %4719 = vrcp.f32 %v1338_v19 }
 0x525   : > { %v1650_v59 = vpop.xlane.xlu2 %1649 }
 0x52a   : > { %v4720_v61 = vpop.eup %4719 }
 0x52b   : > { %v1380_v3 = vmul.f32 %v4720_v61, %v5981_v36  ;;  %v1340_v21 = vpop.xlane.xlu0 %1339  ;;  %v6067_v36 = vpop.permute.xlu1 %2555 }
 0x52c   : > { %4721 = vrcp.f32 %v1340_v21 }
 0x52d   : > { %v1393_v0 = vpack.c.bf16 %v1380_v3, %v1379_v32  ;;  %4723 = vrcp.f32 %v1342_v60  ;;  %v6085_v61 = vpop.permute.xlu2 %2073 }
 0x52e   : > { %4725 = vrcp.f32 %v1346_v31 }
 0x52f   : > { %1441 = vmatmul.bf16.gmra.mxu2 %v1393_v0  ;;  %4727 = vrcp.f32 %v1344_v56 }
 0x530   : > { %4729 = vpow2.f32 %v1691_v13 }
 0x532   : > { %v4722_v55 = vpop.eup %4721 }
 0x533   : > { %1803 = vrot.lane.b32.xlu2 %v5628_v11, %s5095_s29  ;;  %v4724_v33 = vpop.eup %4723  ;;  %v1381_v7 = vmul.f32 %v4722_v55, %v5989_v18  ;;  %v1646_v26 = vpop.xlane.xlu1 %1645 }
 0x534   : > { %1647 = vmax.xlane.f32.xlu0 %v5889_v43  ;;  %v1382_v38 = vmul.f32 %v4724_v33, %v5962_v57  ;;  %v4726_v18 = vpop.eup %4725  ;;  %v1678_v57 = vsub.f32 %v5985_v16, %v1650_v59 }
 0x535   : > { %v4728_v40 = vpop.eup %4727  ;;  %v1384_v48 = vmul.f32 %v4726_v18, %v5972_v44  ;;  %v6081_v44 = vadd.f32 %v4465_v51, %v1625_v52  ;;  %v6098_v31 = vpop.permute.xlu2 %2561 }
 0x536   : > { %v1394_v15 = vpack.c.bf16 %v1382_v38, %v1381_v7  ;;  %v6073_v23 = vpop.eup %4729  ;;  %v1383_v50 = vmul.f32 %v4728_v40, %v5968_v35  ;;  %v1697_v60 = vmul.f32 1.442695, %v1678_v57  ;;  %v4552_v35 = vld [vmem:[%s5837_s28 + $0x58] sm:$0xff]   ;;  %v1676_v38 = vsub.f32 %v5993_v27, %v1646_v26 }
 0x537   : > { %v4461_v16 = vunpack.c.h.bf16 %v4552_v35  ;;  %v4460_v10 = vunpack.c.l.bf16 %v4552_v35 }
 0x538   : > { %v1395_v4 = vpack.c.bf16 %v1384_v48, %v1383_v50  ;;  %v1693_v18 = vmul.f32 1.442695, %v1676_v38  ;;  %v6151_v38 = vld [vmem:[%s5837_s28 + $0x70] sm:$0xff]  }
 0x539   : > { %v6093_v32 = vadd.f32 %v4461_v16, %v5920_v25  ;;  %v6116_v40 = vadd.f32 %v4460_v10, %v5913_v12  ;;  %v4473_v10 = vunpack.c.h.bf16 %v6151_v38 }
 0x53b   : > { %v1350_v45 = vpop.xlane.xlu1 %1349 }
 0x53c   : > { %1651 = vmax.xlane.f32.xlu0 %v6065_v49  ;;  %4731 = vrcp.f32 %v1350_v45 }
 0x53d   : > { %4733 = vrcp.f32 %v1348_v22 }
 0x53e   : > { %4735 = vpow2.f32 %v1697_v60  ;;  %v6103_v33 = vpop.permute.xlu0 %2557 }
 0x53f   : > { %1446 = vmatmul.bf16.gmra.mxu2 %v1394_v15 }
 0x542   : > { %v4732_v19 = vpop.eup %4731 }
 0x543   : > { %v4734_v63 = vpop.eup %4733  ;;  %v1386_v6 = vmul.f32 %v4732_v19, %v5996_v47  ;;  %v6101_v47 = vpop.permute.xlu2 %1807  ;;  %v4554_v19 = vld [vmem:[%s5837_s28 + $0x68] sm:$0xff]  }
 0x544   : > { %v6090_v56 = vpop.eup %4735  ;;  %v1385_v3 = vmul.f32 %v4734_v63, %v5976_v34  ;;  %v4469_v16 = vunpack.c.h.bf16 %v4554_v19 }
 0x546   : > { %v1396_v21 = vpack.c.bf16 %v1386_v6, %v1385_v3 }
 0x54b   : > { %1723 = vadd.xlane.f32.xlu1 %v6073_v23  ;;  %v6109_v34 = vpop.permute.xlu2 %1805 }
 0x54f   : > { %1451 = vmatmul.bf16.gmra.mxu2 %v1395_v4  ;;  %v1628_v4 = vpop.f32.mrf.mxu3 }
 0x550   : > { %1809 = vrot.lane.b32.xlu0 %v5660_v42, %s5095_s29  ;;  %v6127_v63 = vpop.permute.xlu1 %2559 }
 0x553   : > { %1661 = vmax.xlane.f32.xlu1 %v6081_v44 }
 0x558   : > { %2075 = vrot.lane.b32.xlu0 %v5593_v53, %s5093_s30 }
 0x55b   : > { %1729 = vadd.xlane.f32.xlu1 %v6090_v56 }
 0x55c   : > { %1657 = vmax.xlane.f32.xlu2 %v6093_v32 }
 0x55f   : > { %v1432_v0 = vpop.f32.mrf.mxu1  ;;  %1456 = vmatmul.bf16.gmra.mxu2 %v1396_v21 }
 0x567   : > { %v1434_v55 = vpop.f32.mrf.mxu1 }
 0x568   : > { %v1472_v24 = vpack.c.bf16 %v1434_v55, %v1432_v0 }
 0x569   : > { %v1352_v7 = vpop.xlane.xlu0 %1351 }
 0x56a   : > { %4279 = vmatmul.msk.bf16.vlgmr.msra.gmra.mxu1 %vm1149_vm5, %v1472_v24  ;;  %4737 = vrcp.f32 %v1352_v7 }
 0x570   : > { %v4738_v59 = vpop.eup %4737 }
 0x571   : > { %v1387_v48 = vmul.f32 %v4738_v59, %v6022_v2 }
 0x574   : > { %2565 = vrot.lane.b32.xlu1 %v5660_v42, %s5094_s23  ;;  %2563 = vrot.lane.b32.xlu2 %v5593_v53, %s5094_s23  ;;  %v1437_v25 = vpop.f32.mrf.mxu2  ;;  %s5096_s23 = smov 40  }
 0x57b   : > { %v1654_v3 = vpop.xlane.xlu1 %1653 }
 0x57c   : > { %2077 = vrot.lane.b32.xlu2 %v5660_v42, %s5093_s30  ;;  %v1439_v15 = vpop.f32.mrf.mxu2  ;;  %v6138_v21 = vpop.permute.xlu0 %2071  ;;  %s5097_s30 = smov 48  }
 0x57d   : > { %v1473_v22 = vpack.c.bf16 %v1439_v15, %v1437_v25 }
 0x57e   : > { %v1354_v13 = vpop.xlane.xlu2 %1353 }
 0x57f   : > { %4739 = vrcp.f32 %v1354_v13  ;;  %4280 = vmatmul.msk.bf16.gmra.mxu1 %vm1149_vm5, %v1473_v22 }
 0x580   : > { %4741 = vpow2.f32 %v1693_v18 }
 0x582   : > { %1655 = vmax.xlane.f32.xlu0 %v6116_v40 }
 0x585   : > { %v4740_v27 = vpop.eup %4739 }
 0x586   : > { %v1356_v26 = vpop.xlane.xlu2 %1355  ;;  %v1388_v50 = vmul.f32 %v4740_v27, %v6036_v14  ;;  %v6121_v45 = vpop.eup %4741 }
 0x587   : > { %4743 = vrcp.f32 %v1356_v26  ;;  %v1630_v14 = vpop.f32.mrf.mxu3 }
 0x588   : > { %v1397_v57 = vpack.c.bf16 %v1388_v50, %v1387_v48  ;;  %v6129_v6 = vadd.f32 %v4469_v16, %v1630_v14 }
 0x58a   : > { %1725 = vadd.xlane.f32.xlu0 %v6121_v45  ;;  %1461 = vmatmul.bf16.gmra.mxu2 %v1397_v57 }
 0x58d   : > { %v4744_v51 = vpop.eup %4743 }
 0x58e   : > { %v1358_v12 = vpop.xlane.xlu2 %1357  ;;  %v1389_v60 = vmul.f32 %v4744_v51, %v6044_v29  ;;  %v1680_v29 = vsub.f32 %v6033_v58, %v1654_v3 }
 0x58f   : > { %4745 = vrcp.f32 %v1358_v12  ;;  %v6143_v24 = vpop.f32.mrf.mxu3 }
 0x590   : > { %v1701_v0 = vmul.f32 1.442695, %v1680_v29  ;;  %v4556_v29 = vld [vmem:[%s5837_s28 + $0x78] sm:$0xff]  }
 0x592   : > { %4747 = vpow2.f32 %v1701_v0  ;;  %v4477_v0 = vunpack.c.h.bf16 %v4556_v29 }
 0x593   : > { %v1802_v48 = vpop.permute.xlu1 %1801 }
 0x595   : > { %v4746_v52 = vpop.eup %4745 }
 0x596   : > { %v1390_v35 = vmul.f32 %v4746_v52, %v6049_v8  ;;  %v4468_v8 = vunpack.c.l.bf16 %v4554_v19  ;;  %v1804_v50 = vpop.permute.xlu2 %1803 }
 0x597   : > { %v1635_v15 = vpop.f32.mrf.mxu3 }
 0x598   : > { %v1398_v2 = vpack.c.bf16 %v1390_v35, %v1389_v60  ;;  %v6140_v55 = vadd.f32 %v4468_v8, %v1628_v4  ;;  %v6147_v58 = vpop.eup %4747  ;;  %v6156_v18 = vadd.f32 %v4473_v10, %v1635_v15 }
 0x59a   : > { %1466 = vmatmul.bf16.gmra.mxu2 %v1398_v2 }
 0x59e   : > { %1665 = vmax.xlane.f32.xlu1 %v6129_v6  ;;  %1799 = vrot.lane.b32.xlu0 %v5603_v62, %s5095_s29 }
 0x5a5   : > { %1659 = vmax.xlane.f32.xlu2 %v5930_v9 }
 0x5a6   : > { %1797 = vrot.lane.b32.xlu0 %v5583_v37, %s5095_s29 }
 0x5a7   : > { %v1648_v25 = vpop.xlane.xlu0 %1647 }
 0x5a8   : > { %v1677_v57 = vsub.f32 %v5889_v43, %v1648_v25 }
 0x5aa   : > { %v1695_v51 = vmul.f32 1.442695, %v1677_v57 }
 0x5ac   : > { %4749 = vpow2.f32 %v1695_v51 }
 0x5ad   : > { %1663 = vmax.xlane.f32.xlu2 %v6140_v55 }
 0x5ae   : > { %1795 = vrot.lane.b32.xlu0 %v5611_v5, %s5095_s29  ;;  %s7449_s29 = sshll.u32 %s5207_s22, 3 }
 0x5af   : > { %v1652_v22 = vpop.xlane.xlu0 %1651  ;;  %s7304_s20 = scalar_lea.vmem %s7433_s14, %s7449_s29 }
 0x5b0   : > { %v1679_v43 = vsub.f32 %v6065_v49, %v1652_v22  ;;  %v4472_v22 = vunpack.c.l.bf16 %v6151_v38 }
 0x5b2   : > { %v1442_v7 = vpop.f32.mrf.mxu2  ;;  %v1699_v2 = vmul.f32 1.442695, %v1679_v43  ;;  %v6174_v16 = vpop.eup %4749 }
 0x5b5   : > { %1733 = vadd.xlane.f32.xlu2 %v6147_v58 }
 0x5b7   : > { %2846 = vrot.lane.b32.xlu1 %v5660_v42, %s5096_s23 }
 0x5ba   : > { %v1444_v13 = vpop.f32.mrf.mxu2 }
 0x5bb   : > { %v1474_v59 = vpack.c.bf16 %v1444_v13, %v1442_v7 }
 0x5bd   : > { %1669 = vmax.xlane.f32.xlu2 %v6156_v18  ;;  %4281 = vmatmul.msk.bf16.gmra.mxu1 %vm1149_vm5, %v1474_v59 }
 0x5be   : > { %v6168_v52 = vpop.xlane.xlu1 %1723 }
 0x5bf   : > { %2842 = vrot.lane.b32.xlu1 %v5578_v30, %s5096_s23 }
 0x5c2   : > { %v1447_v27 = vpop.f32.mrf.mxu2  ;;  %v1810_v26 = vpop.permute.xlu0 %1809 }
 0x5c3   : > { %1819 = vmatpush.bf16.msrb.mxu0 %v1810_v26 }
 0x5c6   : > { %v1662_v14 = vpop.xlane.xlu1 %1661 }
 0x5c7   : > { %2840 = vrot.lane.b32.xlu1 %v5628_v11, %s5096_s23  ;;  %1820 = vmatpush.bf16.msrb.mxu0 %v6101_v47  ;;  %v1684_v8 = vsub.f32 %v6081_v44, %v1662_v14  ;;  %v6195_v44 = vadd.f32 %v4472_v22, %v6143_v24 }
 0x5c9   : > { %v1709_v10 = vmul.f32 1.442695, %v1684_v8 }
 0x5ca   : > { %v1449_v12 = vpop.f32.mrf.mxu2  ;;  %v6201_v26 = vpop.permute.xlu0 %2075 }
 0x5cb   : > { %v1475_v4 = vpack.c.bf16 %v1449_v12, %v1447_v27  ;;  %1821 = vmatpush.bf16.msrb.mxu0 %v6109_v34  ;;  %v1638_v34 = vpop.f32.mrf.mxu3  ;;  %v4476_v12 = vunpack.c.l.bf16 %v4556_v29 }
 0x5cd   : > { %4282 = vmatmul.msk.bf16.gmra.mxu1 %vm1149_vm5, %v1475_v4  ;;  %v6216_v51 = vadd.f32 %v4476_v12, %v1638_v34 }
 0x5ce   : > { %v6211_v57 = vpop.xlane.xlu1 %1729 }
 0x5cf   : > { %2350 = vrot.lane.b32.xlu1 %v5605_v1, %s5097_s30  ;;  %v1658_v60 = vpop.xlane.xlu2 %1657  ;;  %1822 = vmatpush.bf16.msrb.mxu0 %v1804_v50 }
 0x5d0   : > { %v1682_v35 = vsub.f32 %v6093_v32, %v1658_v60 }
 0x5d2   : > { %v1705_v47 = vmul.f32 1.442695, %v1682_v35  ;;  %v1452_v19 = vpop.f32.mrf.mxu2 }
 0x5d3   : > { %1823 = vmatpush.bf16.msrb.mxu0 %v1802_v48  ;;  %v1640_v25 = vpop.f32.mrf.mxu3 }
 0x5d4   : > { %4751 = vpow2.f32 %v1705_v47  ;;  %v6190_v15 = vadd.f32 %v4477_v0, %v1640_v25 }
 0x5d5   : > { %4753 = vpow2.f32 %v1699_v2 }
 0x5d6   : > { %4755 = vpow2.f32 %v1709_v10 }
 0x5d7   : > { %2836 = vrot.lane.b32.xlu1 %v5603_v62, %s5096_s23  ;;  %v6214_v4 = vpop.permute.xlu2 %2563 }
 0x5d8   : > { %1727 = vadd.xlane.f32.xlu0 %v6174_v16 }
 0x5da   : > { %v6179_v32 = vpop.eup %4751  ;;  %v1454_v3 = vpop.f32.mrf.mxu2 }
 0x5db   : > { %v1476_v49 = vpack.c.bf16 %v1454_v3, %v1452_v19  ;;  %1737 = vadd.xlane.f32.xlu2 %v6179_v32  ;;  %v6187_v7 = vpop.eup %4753 }
 0x5dd   : > { %4283 = vmatmul.msk.bf16.vlgmr.msrb.gmra.mxu3 %vm1149_vm5, %v1476_v49  ;;  %4335 = vmatmul.msk.bf16.vlgmr.msrb.gmra.mxu1 %vm1149_vm5, %v5782_v17  ;;  %v6198_v17 = vpop.eup %4755 }
 0x5e0   : > { %1731 = vadd.xlane.f32.xlu0 %v6187_v7 }
 0x5e2   : > { %v1457_v13 = vpop.f32.mrf.mxu2 }
 0x5e3   : > { %1673 = vmax.xlane.f32.xlu2 %v6190_v15 }
 0x5e6   : > { %v6218_v60 = vpop.permute.xlu1 %2565 }
 0x5e7   : > { %v6226_v2 = vpop.f32.mrf.mxu1 }
 0x5e8   : > { %1667 = vmax.xlane.f32.xlu0 %v6195_v44 }
 0x5ea   : > { %v1459_v59 = vpop.f32.mrf.mxu2 }
 0x5eb   : > { %v1477_v27 = vpack.c.bf16 %v1459_v59, %v1457_v13  ;;  %1741 = vadd.xlane.f32.xlu2 %v6198_v17 }
 0x5ed   : > { %4284 = vmatmul.msk.bf16.gmra.mxu3 %vm1149_vm5, %v1477_v27  ;;  %4336 = vmatmul.msk.bf16.gmra.mxu1 %vm1149_vm5, %v5915_v39 }
 0x5ef   : > { %v6237_v10 = vpop.f32.mrf.mxu1 }
 0x5f5   : > { %v1656_v38 = vpop.xlane.xlu0 %1655 }
 0x5f6   : > { %v1681_v48 = vsub.f32 %v6116_v40, %v1656_v38 }
 0x5f8   : > { %v1703_v24 = vmul.f32 1.442695, %v1681_v48 }
 0x5fa   : > { %4757 = vpow2.f32 %v1703_v24 }
 0x5fd   : > { %4337 = vmatmul.msk.bf16.gmra.mxu1 %vm1149_vm5, %v6067_v36  ;;  %v1726_v39 = vpop.xlane.xlu0 %1725  ;;  %v6223_v36 = vpop.permute.xlu2 %2077 }
 0x5fe   : > { %4759 = vrcp.f32 %v1726_v39 }
 0x600   : > { %v6209_v50 = vpop.eup %4757 }
 0x601   : > { %1735 = vadd.xlane.f32.xlu0 %v6209_v50 }
 0x604   : > { %v4760_v29 = vpop.eup %4759 }
 0x609   : > { %1671 = vmax.xlane.f32.xlu0 %v6216_v51 }
 0x60d   : > { %v1462_v40 = vpop.f32.mrf.mxu2  ;;  %4338 = vmatmul.msk.bf16.gmra.mxu1 %vm1149_vm5, %v6103_v33 }
 0x610   : > { %v1800_v35 = vpop.permute.xlu0 %1799 }
 0x611   : > { %v1666_v43 = vpop.xlane.xlu1 %1665  ;;  %1824 = vmatpush.bf16.msrb.mxu0 %v1800_v35 }
 0x612   : > { %v1686_v47 = vsub.f32 %v6129_v6, %v1666_v43 }
 0x614   : > { %v1713_v19 = vmul.f32 1.442695, %v1686_v47 }
 0x615   : > { %v1464_v34 = vpop.f32.mrf.mxu2 }
 0x616   : > { %4761 = vpow2.f32 %v1713_v19  ;;  %v1478_v14 = vpack.c.bf16 %v1464_v34, %v1462_v40 }
 0x617   : > { %4763 = vrcp.f32 %v6168_v52  ;;  %v1772_v52 = vmul.f32 %v4760_v29, %v6121_v45  ;;  %v6244_v45 = vpop.f32.mrf.mxu1 }
 0x618   : > { %v1660_v3 = vpop.xlane.xlu2 %1659  ;;  %4285 = vmatmul.msk.bf16.gmra.mxu3 %vm1149_vm5, %v1478_v14  ;;  %v1798_v33 = vpop.permute.xlu0 %1797 }
 0x619   : > { %v1683_v49 = vsub.f32 %v5930_v9, %v1660_v3  ;;  %1825 = vmatpush.bf16.msrb.mxu0 %v1798_v33 }
 0x61b   : > { %v1707_v8 = vmul.f32 1.442695, %v1683_v49 }
 0x61c   : > { %v6231_v0 = vpop.eup %4761 }
 0x61d   : > { %v4764_v6 = vpop.eup %4763  ;;  %4765 = vpow2.f32 %v1707_v8  ;;  %1745 = vadd.xlane.f32.xlu2 %v6231_v0  ;;  %v1467_v25 = vpop.f32.mrf.mxu2  ;;  %4339 = vmatmul.msk.bf16.gmra.mxu1 %vm1149_vm5, %v6127_v63 }
 0x61e   : > { %v1771_v9 = vmul.f32 %v4764_v6, %v6073_v23 }
 0x61f   : > { %v6253_v35 = vpop.f32.mrf.mxu1 }
 0x620   : > { %v1664_v22 = vpop.xlane.xlu2 %1663  ;;  %v1796_v13 = vpop.permute.xlu0 %1795  ;;  %v1787_v27 = vpack.c.bf16 %v1772_v52, %v1771_v9 }
 0x621   : > { %v1685_v59 = vsub.f32 %v6140_v55, %v1664_v22  ;;  %1826 = vmatpush.bf16.msrb.mxu0 %v1796_v13 }
 0x623   : > { %v6241_v38 = vpop.eup %4765  ;;  %v1711_v48 = vmul.f32 1.442695, %v1685_v59  ;;  %v4566_v59 = vld [vmem:[%s5837_s28 + $0xc8] sm:$0xff]  }
 0x624   : > { %1739 = vadd.xlane.f32.xlu0 %v6241_v38  ;;  %1827 = vmatmul.bf16.vlgmr.msrb.gmra.mxu0 %v1787_v27 }
 0x625   : > { %4767 = vpow2.f32 %v1711_v48  ;;  %v1469_v63 = vpop.f32.mrf.mxu2  ;;  %v4516_v48 = vunpack.c.l.bf16 %v4566_v59 }
 0x626   : > { %v1479_v24 = vpack.c.bf16 %v1469_v63, %v1467_v25 }
 0x628   : > { %v1734_v12 = vpop.xlane.xlu2 %1733  ;;  %4286 = vmatmul.msk.bf16.gmra.mxu3 %vm1149_vm5, %v1479_v24 }
 0x629   : > { %v2847_v39 = vpop.permute.xlu1 %2846 }
 0x62a   : > { %2856 = vmatpush.bf16.msrb.mxu3 %v2847_v39 }
 0x62b   : > { %v6247_v23 = vpop.eup %4767 }
 0x62c   : > { %1743 = vadd.xlane.f32.xlu0 %v6247_v23 }
 0x62d   : > { %4340 = vmatmul.msk.bf16.gmra.mxu1 %vm1149_vm5, %v6098_v31 }
 0x630   : > { %v1670_v55 = vpop.xlane.xlu2 %1669 }
 0x631   : > { %v1688_v40 = vsub.f32 %v6156_v18, %v1670_v55  ;;  %v6309_v55 = vld [vmem:[%s5837_s28 + $0xd0] sm:$0xff]  }
 0x633   : > { %v1717_v43 = vmul.f32 1.442695, %v1688_v40 }
 0x635   : > { %4769 = vpow2.f32 %v1717_v43 }
 0x636   : > { %4771 = vrcp.f32 %v6211_v57 }
 0x638   : > { %4303 = vmatmul.msk.bf16.vlgmr.msra.gmra.mxu3 %vm1149_vm5, %v5747_v46 }
 0x63a   : > { %v6257_v47 = vpop.f32.mrf.mxu1 }
 0x63b   : > { %v6259_v19 = vpop.eup %4769 }
 0x63c   : > { %1749 = vadd.xlane.f32.xlu2 %v6259_v19  ;;  %v4772_v34 = vpop.eup %4771 }
 0x63d   : > { %4341 = vmatmul.msk.bf16.gmra.mxu1 %vm1149_vm5, %v6214_v4  ;;  %v1774_v49 = vmul.f32 %v4772_v34, %v6090_v56 }
 0x642   : > { %v6264_v31 = vpop.f32.mrf.mxu1 }
 0x648   : > { %4304 = vmatmul.msk.bf16.gmra.mxu3 %vm1149_vm5, %v5754_v54  ;;  %v4565_v54 = vld [vmem:[%s5837_s28 + $0xc0] sm:$0xff]  }
 0x649   : > { %v4512_v29 = vunpack.c.l.bf16 %v4565_v54  ;;  %v4513_v25 = vunpack.c.h.bf16 %v4565_v54 }
 0x64a   : > { %v6269_v18 = vpop.f32.mrf.mxu1 }
 0x64b   : > { %v1728_v46 = vpop.xlane.xlu0 %1727 }
 0x64c   : > { %4773 = vrcp.f32 %v1728_v46 }
 0x64d   : > { %4342 = vmatmul.msk.bf16.gmra.mxu1 %vm1149_vm5, %v6218_v60 }
 0x652   : > { %v4774_v14 = vpop.eup %4773  ;;  %v6273_v3 = vpop.f32.mrf.mxu1 }
 0x653   : > { %v1732_v33 = vpop.xlane.xlu0 %1731  ;;  %v1773_v4 = vmul.f32 %v4774_v14, %v6174_v16 }
 0x654   : > { %2358 = vrot.lane.b32.xlu2 %v5660_v42, %s5097_s30  ;;  %4775 = vrcp.f32 %v1732_v33 }
 0x655   : > { %v1788_v57 = vpack.c.bf16 %v1774_v49, %v1773_v4  ;;  %4777 = vrcp.f32 %v1734_v12 }
 0x657   : > { %1832 = vmatmul.bf16.gmra.mxu0 %v1788_v57 }
 0x658   : > { %4305 = vmatmul.msk.bf16.gmra.mxu3 %vm1149_vm5, %v5789_v28 }
 0x65a   : > { %v2640_v60 = vpop.f32.mrf.mxu1  ;;  %v4776_v42 = vpop.eup %4775 }
 0x65b   : > { %v6282_v8 = vadd.f32 %v4512_v29, %v2640_v60  ;;  %v1668_v6 = vpop.xlane.xlu0 %1667  ;;  %v4778_v52 = vpop.eup %4777  ;;  %v1775_v22 = vmul.f32 %v4776_v42, %v6187_v7  ;;  %v4568_v29 = vld [vmem:[%s5837_s28 + $0xd8] sm:$0xff]  }
 0x65c   : > { %v1687_v16 = vsub.f32 %v6195_v44, %v1668_v6  ;;  %2356 = vrot.lane.b32.xlu2 %v5593_v53, %s5097_s30  ;;  %v1776_v9 = vmul.f32 %v4778_v52, %v6147_v58  ;;  %v1738_v58 = vpop.xlane.xlu2 %1737  ;;  %v1876_v6 = vld [vmem:[%s7423_s4 + $0x4] sm:$0xf] }
 0x65d   : > { %v1903_v42 = vsel %vm1901_vm6, %v1876_v6, 0 }
 0x65e   : > { %v1715_v56 = vmul.f32 1.442695, %v1687_v16  ;;  %v1789_v44 = vpack.c.bf16 %v1776_v9, %v1775_v22  ;;  %1912 = vmatpush.bf16.msrb.mxu2 %v1903_v42 }
 0x660   : > { %4779 = vpow2.f32 %v1715_v56  ;;  %v6311_v40 = vpop.f32.mrf.mxu3 }
 0x661   : > { %4781 = vrcp.f32 %v1738_v58 }
 0x662   : > { %v2642_v13 = vpop.f32.mrf.mxu1 }
 0x663   : > { %v6288_v28 = vadd.f32 %v4513_v25, %v2642_v13 }
 0x664   : > { %2354 = vrot.lane.b32.xlu2 %v5578_v30, %s5097_s30  ;;  %v4517_v30 = vunpack.c.h.bf16 %v4566_v59 }
 0x665   : > { %2682 = vmax.xlane.f32.xlu1 %v6288_v28 }
 0x666   : > { %v6295_v27 = vpop.eup %4779 }
 0x667   : > { %1837 = vmatmul.bf16.gmra.mxu0 %v1789_v44  ;;  %1747 = vadd.xlane.f32.xlu0 %v6295_v27 }
 0x668   : > { %4306 = vmatmul.msk.bf16.gmra.mxu3 %vm1149_vm5, %v6053_v41  ;;  %v4520_v41 = vunpack.c.l.bf16 %v6309_v55 }
 0x66a   : > { %v2645_v7 = vpop.f32.mrf.mxu1 }
 0x66b   : > { %v6300_v63 = vadd.f32 %v4516_v48, %v2645_v7 }
 0x66c   : > { %2352 = vrot.lane.b32.xlu2 %v5628_v11, %s5097_s30  ;;  %v4782_v11 = vpop.eup %4781 }
 0x66d   : > { %v1778_v33 = vmul.f32 %v4782_v11, %v6179_v32  ;;  %v1674_v32 = vpop.xlane.xlu2 %1673 }
 0x672   : > { %v2647_v24 = vpop.f32.mrf.mxu1 }
 0x673   : > { %v6304_v12 = vadd.f32 %v4517_v30, %v2647_v24 }
 0x674   : > { %2348 = vrot.lane.b32.xlu2 %v5603_v62, %s5097_s30  ;;  %v1736_v39 = vpop.xlane.xlu0 %1735 }
 0x675   : > { %4783 = vrcp.f32 %v1736_v39  ;;  %2686 = vmax.xlane.f32.xlu1 %v6304_v12  ;;  %v1742_v56 = vpop.xlane.xlu2 %1741 }
 0x678   : > { %4307 = vmatmul.msk.bf16.gmra.mxu3 %vm1149_vm5, %v6138_v21  ;;  %v6325_v21 = vpop.f32.mrf.mxu3 }
 0x67a   : > { %v2650_v43 = vpop.f32.mrf.mxu1 }
 0x67b   : > { %v4784_v46 = vpop.eup %4783  ;;  %v6317_v34 = vadd.f32 %v4520_v41, %v2650_v43 }
 0x67c   : > { %2346 = vrot.lane.b32.xlu2 %v5583_v37, %s5097_s30  ;;  %v1672_v62 = vpop.xlane.xlu0 %1671  ;;  %v1777_v14 = vmul.f32 %v4784_v46, %v6209_v50  ;;  %v4524_v50 = vunpack.c.l.bf16 %v4568_v29  ;;  %v4525_v46 = vunpack.c.h.bf16 %v4568_v29 }
 0x67d   : > { %v1689_v4 = vsub.f32 %v6216_v51, %v1672_v62  ;;  %2688 = vmax.xlane.f32.xlu1 %v6317_v34 }
 0x67e   : > { %v1790_v49 = vpack.c.bf16 %v1778_v33, %v1777_v14 }
 0x67f   : > { %v1719_v54 = vmul.f32 1.442695, %v1689_v4 }
 0x680   : > { %1842 = vmatmul.bf16.gmra.mxu0 %v1790_v49  ;;  %v6337_v51 = vpop.f32.mrf.mxu3 }
 0x681   : > { %4785 = vpow2.f32 %v1719_v54  ;;  %v1690_v54 = vsub.f32 %v6190_v15, %v1674_v32 }
 0x682   : > { %v6327_v57 = vpop.f32.mrf.mxu1  ;;  %4787 = vrcp.f32 %v1742_v56 }
 0x683   : > { %v1721_v29 = vmul.f32 1.442695, %v1690_v54 }
 0x684   : > { %2834 = vrot.lane.b32.xlu2 %v5583_v37, %s5096_s23 }
 0x687   : > { %v6332_v60 = vpop.eup %4785 }
 0x688   : > { %4308 = vmatmul.msk.bf16.gmra.mxu3 %vm1149_vm5, %v6085_v61  ;;  %1751 = vadd.xlane.f32.xlu0 %v6332_v60  ;;  %v6346_v25 = vpop.f32.mrf.mxu3  ;;  %v4788_v22 = vpop.eup %4787 }
 0x689   : > { %v1780_v59 = vmul.f32 %v4788_v22, %v6198_v17 }
 0x68a   : > { %v2655_v16 = vpop.f32.mrf.mxu1 }
 0x68b   : > { %v6343_v37 = vadd.f32 %v4524_v50, %v2655_v16 }
 0x68d   : > { %2692 = vmax.xlane.f32.xlu1 %v6343_v37 }
 0x690   : > { %v1746_v30 = vpop.xlane.xlu2 %1745 }
 0x692   : > { %v2657_v14 = vpop.f32.mrf.mxu1 }
 0x693   : > { %v6375_v4 = vadd.f32 %v4525_v46, %v2657_v14 }
 0x697   : > { %v1740_v61 = vpop.xlane.xlu0 %1739 }
 0x698   : > { %4789 = vrcp.f32 %v1740_v61  ;;  %4309 = vmatmul.msk.bf16.gmra.mxu3 %vm1149_vm5, %v6201_v26 }
 0x69b   : > { %v6350_v52 = vpop.f32.mrf.mxu3 }
 0x69c   : > { %2844 = vrot.lane.b32.xlu0 %v5593_v53, %s5096_s23 }
 0x69e   : > { %v4790_v13 = vpop.eup %4789 }
 0x69f   : > { %v1779_v9 = vmul.f32 %v4790_v13, %v6241_v38  ;;  %v1744_v44 = vpop.xlane.xlu0 %1743  ;;  %v4521_v13 = vunpack.c.h.bf16 %v6309_v55 }
 0x6a0   : > { %4791 = vrcp.f32 %v1744_v44  ;;  %v4569_v44 = vld [vmem:[%s5837_s28 + $0xe0] sm:$0xff]  }
 0x6a1   : > { %v1828_v48 = vpop.f32.mrf.mxu0  ;;  %v1791_v7 = vpack.c.bf16 %v1780_v59, %v1779_v9  ;;  %4793 = vrcp.f32 %v1746_v30  ;;  %v6393_v9 = vadd.f32 %v4521_v13, %v6327_v57  ;;  %v4528_v55 = vunpack.c.l.bf16 %v4569_v44 }
 0x6a2   : > { %4795 = vpow2.f32 %v1721_v29 }
 0x6a3   : > { %1847 = vmatmul.bf16.gmra.mxu0 %v1791_v7  ;;  %v6356_v58 = vpop.f32.mrf.mxu3 }
 0x6a4   : > { %2838 = vrot.lane.b32.xlu0 %v5605_v1, %s5096_s23 }
 0x6a6   : > { %v4792_v26 = vpop.eup %4791 }
 0x6a7   : > { %v4794_v24 = vpop.eup %4793  ;;  %v1781_v39 = vmul.f32 %v4792_v26, %v6247_v23 }
 0x6a8   : > { %4310 = vmatmul.msk.bf16.gmra.mxu3 %vm1149_vm5, %v6223_v36  ;;  %v1782_v1 = vmul.f32 %v4794_v24, %v6231_v0  ;;  %v6372_v36 = vld [vmem:[%s5837_s28 + $0x80] sm:$0xff]   ;;  %v6381_v0 = vpop.permute.xlu1 %2842  ;;  %v6388_v61 = vpop.eup %4795 }
 0x6a9   : > { %v1830_v53 = vpop.f32.mrf.mxu0  ;;  %v4480_v33 = vunpack.c.l.bf16 %v6372_v36  ;;  %v4481_v54 = vunpack.c.h.bf16 %v6372_v36  ;;  %v4559_v36 = vld [vmem:[%s5837_s28 + $0x90] sm:$0xff]  }
 0x6aa   : > { %v1868_v38 = vpack.c.bf16 %v1830_v53, %v1828_v48  ;;  %v1792_v11 = vpack.c.bf16 %v1782_v1, %v1781_v39  ;;  %v2660_v48 = vpop.f32.mrf.mxu1  ;;  %v4529_v1 = vunpack.c.h.bf16 %v4569_v44  ;;  %v4560_v44 = vld [vmem:[%s5837_s28 + $0x98] sm:$0xff]  }
 0x6ab   : > { %v6362_v17 = vpop.f32.mrf.mxu3  ;;  %v6401_v53 = vadd.f32 %v4528_v55, %v2660_v48  ;;  %v4489_v48 = vunpack.c.h.bf16 %v4559_v36 }
 0x6ac   : > { %4271 = vmatmul.msk.bf16.vlgmr.msrb.gmra.mxu2 %vm1149_vm5, %v1868_v38 }
 0x6ad   : > { %2680 = vmax.xlane.f32.xlu2 %v6282_v8 }
 0x6af   : > { %v1750_v41 = vpop.xlane.xlu2 %1749 }
 0x6b0   : > { %v6384_v42 = vpop.permute.xlu1 %2840  ;;  %4797 = vrcp.f32 %v1750_v41 }
 0x6b3   : > { %1852 = vmatmul.bf16.gmra.mxu0 %v1792_v11  ;;  %v6368_v43 = vpop.f32.mrf.mxu3 }
 0x6b4   : > { %7445 = vst [vmem:[#allocation2_spill] sm:$0xff] %v6368_v43 }
 0x6b5   : > { %2684 = vmax.xlane.f32.xlu2 %v6300_v63 }
 0x6b6   : > { %v4798_v24 = vpop.eup %4797 }
 0x6b7   : > { %v2359_v62 = vpop.permute.xlu2 %2358  ;;  %v1784_v46 = vmul.f32 %v4798_v24, %v6259_v19  ;;  %v4558_v19 = vld [vmem:[%s5837_s28 + $0x88] sm:$0xff]  }
 0x6b8   : > { %2368 = vmatpush.bf16.msra.mxu0 %v2359_v62  ;;  %v2351_v15 = vpop.permute.xlu1 %2350 }
 0x6bb   : > { %v2152_v23 = vpop.f32.mrf.mxu3 }
 0x6bc   : > { %v6377_v49 = vadd.f32 %v4480_v33, %v2152_v23 }
 0x6bd   : > { %2694 = vmax.xlane.f32.xlu2 %v6375_v4 }
 0x6be   : > { %2192 = vmax.xlane.f32.xlu1 %v6377_v49 }
 0x6bf   : > { %v2357_v50 = vpop.permute.xlu2 %2356 }
 0x6c0   : > { %2369 = vmatpush.bf16.msra.mxu0 %v2357_v50 }
 0x6c3   : > { %v2154_v6 = vpop.f32.mrf.mxu3 }
 0x6c4   : > { %v6411_v29 = vadd.f32 %v4481_v54, %v2154_v6  ;;  %v4492_v6 = vunpack.c.l.bf16 %v4560_v44 }
 0x6c7   : > { %v2355_v16 = vpop.permute.xlu2 %2354 }
 0x6c8   : > { %2370 = vmatpush.bf16.msra.mxu0 %v2355_v16 }
 0x6cb   : > { %v6386_v56 = vpop.f32.mrf.mxu3 }
 0x6ce   : > { %1753 = vadd.xlane.f32.xlu0 %v6388_v61 }
 0x6cf   : > { %v2353_v22 = vpop.permute.xlu2 %2352 }
 0x6d0   : > { %2371 = vmatpush.bf16.msra.mxu0 %v2353_v22 }
 0x6d3   : > { %v2159_v32 = vpop.f32.mrf.mxu3 }
 0x6d4   : > { %v1833_v59 = vpop.f32.mrf.mxu0  ;;  %2372 = vmatpush.bf16.msra.mxu0 %v2351_v15  ;;  %v2837_v15 = vpop.permute.xlu1 %2836 }
 0x6d5   : > { %2832 = vrot.lane.b32.xlu2 %v5611_v5, %s5096_s23 }
 0x6d6   : > { %2690 = vmax.xlane.f32.xlu0 %v6393_v9 }
 0x6d7   : > { %v2349_v7 = vpop.permute.xlu2 %2348  ;;  %2344 = vrot.lane.b32.xlu1 %v5611_v5, %s5097_s30  ;;  %v2662_v5 = vpop.f32.mrf.mxu1 }
 0x6d8   : > { %2373 = vmatpush.bf16.msra.mxu0 %v2349_v7  ;;  %v6407_v14 = vadd.f32 %v4529_v1, %v2662_v5  ;;  %v4484_v7 = vunpack.c.l.bf16 %v4558_v19  ;;  %v4561_v1 = vld [vmem:[%s5837_s28 + $0xa0] sm:$0xff]  }
 0x6d9   : > { %v4497_v5 = vunpack.c.h.bf16 %v4561_v1 }
 0x6da   : > { %v1748_v30 = vpop.xlane.xlu0 %1747 }
 0x6db   : > { %4799 = vrcp.f32 %v1748_v30  ;;  %v2162_v57 = vpop.f32.mrf.mxu3 }
 0x6dc   : > { %v1835_v26 = vpop.f32.mrf.mxu0  ;;  %v2683_v30 = vpop.xlane.xlu1 %2682 }
 0x6dd   : > { %v1869_v38 = vpack.c.bf16 %v1835_v26, %v1833_v59 }
 0x6de   : > { %2696 = vmax.xlane.f32.xlu0 %v6401_v53 }
 0x6df   : > { %v2347_v39 = vpop.permute.xlu2 %2346  ;;  %4272 = vmatmul.msk.bf16.gmra.mxu2 %vm1149_vm5, %v1869_v38 }
 0x6e0   : > { %2374 = vmatpush.bf16.msra.mxu0 %v2347_v39  ;;  %v2713_v39 = vsub.f32 %v6288_v28, %v2683_v30 }
 0x6e1   : > { %v4800_v11 = vpop.eup %4799 }
 0x6e2   : > { %v1783_v41 = vmul.f32 %v4800_v11, %v6295_v27  ;;  %v4485_v27 = vunpack.c.h.bf16 %v4558_v19  ;;  %v4493_v11 = vunpack.c.h.bf16 %v4560_v44 }
 0x6e3   : > { %v2164_v62 = vpop.f32.mrf.mxu3 }
 0x6e4   : > { %v1838_v33 = vpop.f32.mrf.mxu0  ;;  %v1793_v23 = vpack.c.bf16 %v1784_v46, %v1783_v41  ;;  %v6416_v59 = vadd.f32 %v4485_v27, %v2159_v32  ;;  %v6421_v26 = vadd.f32 %v4489_v48, %v2164_v62  ;;  %v6428_v32 = vadd.f32 %v4484_v7, %v6386_v56 }
 0x6e5   : > { %v2730_v41 = vmul.f32 1.442695, %v2713_v39  ;;  %v4488_v46 = vunpack.c.l.bf16 %v4559_v36 }
 0x6e6   : > { %2698 = vmax.xlane.f32.xlu0 %v6407_v14  ;;  %1857 = vmatmul.bf16.gmra.mxu0 %v1793_v23 }
 0x6e7   : > { %4801 = vpow2.f32 %v2730_v41  ;;  %v6439_v28 = vadd.f32 %v4488_v46, %v2162_v57  ;;  %v2835_v27 = vpop.permute.xlu2 %2834 }
 0x6e8   : > { %v6447_v19 = vpop.xlane.xlu1 %2686 }
 0x6eb   : > { %v2167_v50 = vpop.f32.mrf.mxu3 }
 0x6ec   : > { %v1840_v16 = vpop.f32.mrf.mxu0  ;;  %v6423_v38 = vadd.f32 %v4492_v6, %v2167_v50 }
 0x6ed   : > { %v1870_v22 = vpack.c.bf16 %v1840_v16, %v1838_v33  ;;  %v6443_v56 = vpop.eup %4801 }
 0x6ee   : > { %2194 = vmax.xlane.f32.xlu0 %v6411_v29 }
 0x6ef   : > { %4273 = vmatmul.msk.bf16.gmra.mxu2 %vm1149_vm5, %v1870_v22 }
 0x6f0   : > { %v2689_v36 = vpop.xlane.xlu1 %2688 }
 0x6f3   : > { %v2169_v13 = vpop.f32.mrf.mxu3 }
 0x6f4   : > { %v6433_v33 = vadd.f32 %v4493_v11, %v2169_v13 }
 0x6f6   : > { %2198 = vmax.xlane.f32.xlu0 %v6416_v59 }
 0x6fb   : > { %v2172_v55 = vpop.f32.mrf.mxu3  ;;  %v1752_v50 = vpop.xlane.xlu0 %1751 }
 0x6fd   : > { %v1843_v24 = vpop.f32.mrf.mxu0 }
 0x6fe   : > { %2204 = vmax.xlane.f32.xlu2 %v6423_v38  ;;  %2202 = vmax.xlane.f32.xlu0 %v6421_v26 }
 0x701   : > { %2196 = vmax.xlane.f32.xlu1 %v6428_v32 }
 0x703   : > { %v2174_v62 = vpop.f32.mrf.mxu3 }
 0x704   : > { %v6435_v23 = vadd.f32 %v4497_v5, %v2174_v62 }
 0x705   : > { %v1845_v54 = vpop.f32.mrf.mxu0 }
 0x706   : > { %v1871_v16 = vpack.c.bf16 %v1845_v54, %v1843_v24  ;;  %2210 = vmax.xlane.f32.xlu2 %v6435_v23  ;;  %2206 = vmax.xlane.f32.xlu0 %v6433_v33  ;;  %v6451_v24 = vpop.xlane.xlu1 %2692 }
 0x708   : > { %4274 = vmatmul.msk.bf16.gmra.mxu2 %vm1149_vm5, %v1871_v16 }
 0x709   : > { %2200 = vmax.xlane.f32.xlu1 %v6439_v28 }
 0x70e   : > { %2762 = vadd.xlane.f32.xlu0 %v6443_v56  ;;  %v2845_v22 = vpop.permute.xlu0 %2844 }
 0x70f   : > { %2857 = vmatpush.bf16.msrb.mxu3 %v2845_v22  ;;  %v4562_v22 = vld [vmem:[%s5837_s28 + $0xa8] sm:$0xff]  }
 0x713   : > { %2858 = vmatpush.bf16.msrb.mxu3 %v6381_v0 }
 0x716   : > { %v2839_v13 = vpop.permute.xlu0 %2838 }
 0x717   : > { %2859 = vmatpush.bf16.msrb.mxu3 %v6384_v42 }
 0x71b   : > { %2860 = vmatpush.bf16.msrb.mxu3 %v2839_v13 }
 0x71f   : > { %2861 = vmatpush.bf16.msrb.mxu3 %v2837_v15  ;;  %v2177_v15 = vpop.f32.mrf.mxu3 }
 0x720   : > { %v2681_v57 = vpop.xlane.xlu2 %2680  ;;  %v1848_v44 = vpop.f32.mrf.mxu0 }
 0x721   : > { %v2712_v48 = vsub.f32 %v6282_v8, %v2681_v57  ;;  %v4496_v8 = vunpack.c.l.bf16 %v4561_v1 }
 0x723   : > { %v2728_v6 = vmul.f32 1.442695, %v2712_v48  ;;  %2862 = vmatpush.bf16.msrb.mxu3 %v2835_v27  ;;  %v6458_v62 = vadd.f32 %v4496_v8, %v2172_v55  ;;  %v4501_v27 = vunpack.c.h.bf16 %v4562_v22  ;;  %v6473_v48 = vpop.f32.mrf.mxu1 }
 0x725   : > { %4803 = vpow2.f32 %v2728_v6  ;;  %v4500_v6 = vunpack.c.l.bf16 %v4562_v22 }
 0x727   : > { %v2179_v13 = vpop.f32.mrf.mxu3 }
 0x728   : > { %v2685_v7 = vpop.xlane.xlu2 %2684  ;;  %v1850_v30 = vpop.f32.mrf.mxu0  ;;  %v6466_v55 = vadd.f32 %v4501_v27, %v2179_v13 }
 0x729   : > { %v2714_v0 = vsub.f32 %v6300_v63, %v2685_v7  ;;  %v1872_v39 = vpack.c.bf16 %v1850_v30, %v1848_v44  ;;  %v6475_v30 = vadd.f32 %v4500_v6, %v2177_v15 }
 0x72b   : > { %v6454_v42 = vpop.eup %4803  ;;  %v2732_v11 = vmul.f32 1.442695, %v2714_v0  ;;  %4275 = vmatmul.msk.bf16.gmra.mxu2 %vm1149_vm5, %v1872_v39  ;;  %v4570_v39 = vld [vmem:[%s5837_s28 + $0xe8] sm:$0xff]  }
 0x72c   : > { %2760 = vadd.xlane.f32.xlu1 %v6454_v42  ;;  %v4533_v8 = vunpack.c.h.bf16 %v4570_v39 }
 0x72d   : > { %4805 = vpow2.f32 %v2732_v11  ;;  %v2716_v11 = vsub.f32 %v6317_v34, %v2689_v36 }
 0x72f   : > { %v2736_v27 = vmul.f32 1.442695, %v2716_v11  ;;  %v6487_v34 = vpop.f32.mrf.mxu3 }
 0x730   : > { %v2695_v5 = vpop.xlane.xlu2 %2694  ;;  %v1853_v41 = vpop.f32.mrf.mxu0 }
 0x731   : > { %v2193_v46 = vpop.xlane.xlu1 %2192 }
 0x732   : > { %v2224_v54 = vsub.f32 %v6377_v49, %v2193_v46  ;;  %v2667_v46 = vpop.f32.mrf.mxu1 }
 0x733   : > { %v6461_v63 = vpop.eup %4805  ;;  %v6484_v15 = vadd.f32 %v4533_v8, %v2667_v46 }
 0x734   : > { %v2240_v16 = vmul.f32 1.442695, %v2224_v54  ;;  %2208 = vmax.xlane.f32.xlu1 %v6458_v62  ;;  %2764 = vadd.xlane.f32.xlu0 %v6461_v63 }
 0x736   : > { %4807 = vpow2.f32 %v2240_v16 }
 0x737   : > { %4809 = vrcp.f32 %v1752_v50 }
 0x738   : > { %v2833_v57 = vpop.permute.xlu2 %2832  ;;  %v1855_v1 = vpop.f32.mrf.mxu0 }
 0x739   : > { %v1873_v44 = vpack.c.bf16 %v1855_v1, %v1853_v41  ;;  %2863 = vmatpush.bf16.msrb.mxu3 %v2833_v57 }
 0x73b   : > { %4276 = vmatmul.msk.bf16.gmra.mxu2 %vm1149_vm5, %v1873_v44  ;;  %v2184_v44 = vpop.f32.mrf.mxu3 }
 0x73c   : > { %v6469_v49 = vpop.eup %4807  ;;  %2214 = vmax.xlane.f32.xlu0 %v6466_v55 }
 0x73d   : > { %2272 = vadd.xlane.f32.xlu2 %v6469_v49  ;;  %v4810_v0 = vpop.eup %4809 }
 0x73e   : > { %v1785_v22 = vmul.f32 %v4810_v0, %v6332_v60  ;;  %v4563_v60 = vld [vmem:[%s5837_s28 + $0xb0] sm:$0xff]  }
 0x73f   : > { %v4505_v1 = vunpack.c.h.bf16 %v4563_v60 }
 0x741   : > { %v1754_v7 = vpop.xlane.xlu0 %1753  ;;  %v6498_v0 = vadd.f32 %v4505_v1, %v2184_v44 }
 0x742   : > { %4811 = vrcp.f32 %v1754_v7 }
 0x743   : > { %4813 = vpow2.f32 %v2736_v27  ;;  %v6509_v27 = vpop.f32.mrf.mxu1 }
 0x745   : > { %2212 = vmax.xlane.f32.xlu2 %v6475_v30 }
 0x748   : > { %v4812_v41 = vpop.eup %4811 }
 0x749   : > { %v2345_v54 = vpop.permute.xlu1 %2344  ;;  %v6480_v16 = vpop.xlane.xlu0 %2690  ;;  %v1786_v50 = vmul.f32 %v4812_v41, %v6388_v61  ;;  %v2719_v61 = vsub.f32 %v6375_v4, %v2695_v5  ;;  %v2715_v4 = vsub.f32 %v6304_v12, %v6447_v19 }
 0x74a   : > { %2375 = vmatpush.bf16.msra.mxu0 %v2345_v54  ;;  %v6491_v57 = vpop.eup %4813 }
 0x74b   : > { %v1794_v13 = vpack.c.bf16 %v1786_v50, %v1785_v22  ;;  %v2742_v7 = vmul.f32 1.442695, %v2719_v61  ;;  %v2734_v5 = vmul.f32 1.442695, %v2715_v4 }
 0x74d   : > { %2702 = vmax.xlane.f32.xlu2 %v6484_v15  ;;  %1862 = vmatmul.bf16.gmra.mxu0 %v1794_v13  ;;  %4815 = vpow2.f32 %v2742_v7 }
 0x751   : > { %v6489_v36 = vpop.xlane.xlu0 %2696 }
 0x753   : > { %v6502_v46 = vpop.eup %4815 }
 0x755   : > { %2768 = vadd.xlane.f32.xlu2 %v6491_v57 }
 0x759   : > { %v6496_v6 = vpop.xlane.xlu0 %2698 }
 0x75d   : > { %2218 = vmax.xlane.f32.xlu2 %v6498_v0 }
 0x761   : > { %v2195_v11 = vpop.xlane.xlu0 %2194 }
 0x762   : > { %v2225_v8 = vsub.f32 %v6411_v29, %v2195_v11  ;;  %v2672_v11 = vpop.f32.mrf.mxu1 }
 0x763   : > { %v1858_v41 = vpop.f32.mrf.mxu0 }
 0x764   : > { %v2242_v54 = vmul.f32 1.442695, %v2225_v8  ;;  %v4532_v8 = vunpack.c.l.bf16 %v4570_v39 }
 0x765   : > { %2774 = vadd.xlane.f32.xlu2 %v6502_v46 }
 0x766   : > { %4817 = vpow2.f32 %v2242_v54 }
 0x767   : > { %4819 = vpow2.f32 %v2734_v5  ;;  %v6520_v5 = vadd.f32 %v4532_v8, %v6473_v48  ;;  %v4504_v48 = vunpack.c.l.bf16 %v4563_v60 }
 0x769   : > { %v2199_v29 = vpop.xlane.xlu0 %2198  ;;  %v6540_v8 = vadd.f32 %v4504_v48, %v6487_v34  ;;  %v2187_v48 = vpop.f32.mrf.mxu3 }
 0x76a   : > { %v2227_v54 = vsub.f32 %v6416_v59, %v2199_v29 }
 0x76b   : > { %v1860_v22 = vpop.f32.mrf.mxu0 }
 0x76c   : > { %v6507_v50 = vpop.eup %4817  ;;  %v1874_v13 = vpack.c.bf16 %v1860_v22, %v1858_v41 }
 0x76d   : > { %2274 = vadd.xlane.f32.xlu1 %v6507_v50  ;;  %v6514_v44 = vpop.eup %4819 }
 0x76e   : > { %4277 = vmatmul.msk.bf16.gmra.mxu2 %vm1149_vm5, %v1874_v13  ;;  %v6525_v13 = vld [vmem:[%s5837_s28 + $0xf8] sm:$0xff]  }
 0x76f   : > { %v4540_v29 = vunpack.c.l.bf16 %v6525_v13 }
 0x771   : > { %v2205_v61 = vpop.xlane.xlu2 %2204  ;;  %v2203_v4 = vpop.xlane.xlu0 %2202 }
 0x772   : > { %v2230_v1 = vsub.f32 %v6423_v38, %v2205_v61  ;;  %v2246_v61 = vmul.f32 1.442695, %v2227_v54 }
 0x774   : > { %v2252_v12 = vmul.f32 1.442695, %v2230_v1  ;;  %v2197_v19 = vpop.xlane.xlu1 %2196  ;;  %v2675_v1 = vpop.f32.mrf.mxu1 }
 0x775   : > { %v2226_v7 = vsub.f32 %v6428_v32, %v2197_v19  ;;  %2766 = vadd.xlane.f32.xlu1 %v6514_v44  ;;  %v2229_v32 = vsub.f32 %v6421_v26, %v2203_v4  ;;  %v4571_v4 = vld [vmem:[%s5837_s28 + $0xf0] sm:$0xff]  }
 0x776   : > { %4821 = vpow2.f32 %v2252_v12  ;;  %v2717_v12 = vsub.f32 %v6393_v9, %v6480_v16 }
 0x777   : > { %v2244_v41 = vmul.f32 1.442695, %v2226_v7  ;;  %v2250_v19 = vmul.f32 1.442695, %v2229_v32  ;;  %v6537_v7 = vadd.f32 %v4540_v29, %v2675_v1  ;;  %v4537_v32 = vunpack.c.h.bf16 %v4571_v4 }
 0x779   : > { %4823 = vpow2.f32 %v2244_v41  ;;  %v2211_v38 = vpop.xlane.xlu2 %2210  ;;  %v6560_v29 = vadd.f32 %v4537_v32, %v2672_v11 }
 0x77a   : > { %v2233_v39 = vsub.f32 %v6435_v23, %v2211_v38  ;;  %4825 = vpow2.f32 %v2246_v61  ;;  %v2738_v23 = vmul.f32 1.442695, %v2717_v12  ;;  %v2718_v38 = vsub.f32 %v6343_v37, %v6451_v24 }
 0x77b   : > { %4827 = vpow2.f32 %v2250_v19  ;;  %v4536_v24 = vunpack.c.l.bf16 %v4571_v4 }
 0x77c   : > { %v6522_v22 = vpop.eup %4821  ;;  %v2258_v26 = vmul.f32 1.442695, %v2233_v39  ;;  %v2201_v60 = vpop.xlane.xlu1 %2200 }
 0x77d   : > { %2284 = vadd.xlane.f32.xlu2 %v6522_v22  ;;  %2700 = vmax.xlane.f32.xlu1 %v6520_v5  ;;  %v2228_v9 = vsub.f32 %v6439_v28, %v2201_v60  ;;  %v2207_v39 = vpop.xlane.xlu0 %2206  ;;  %v2740_v28 = vmul.f32 1.442695, %v2718_v38  ;;  %v6571_v11 = vadd.f32 %v4536_v24, %v6509_v27 }
 0x77e   : > { %4829 = vpow2.f32 %v2258_v26  ;;  %v2231_v37 = vsub.f32 %v6433_v33, %v2207_v39 }
 0x77f   : > { %v6531_v59 = vpop.eup %4823  ;;  %4831 = vpow2.f32 %v2738_v23  ;;  %v2248_v54 = vmul.f32 1.442695, %v2228_v9  ;;  %v4564_v23 = vld [vmem:[%s5837_s28 + $0xb8] sm:$0xff]  }
 0x780   : > { %2276 = vadd.xlane.f32.xlu0 %v6531_v59  ;;  %v6544_v41 = vpop.eup %4825  ;;  %v2254_v26 = vmul.f32 1.442695, %v2231_v37  ;;  %v4509_v60 = vunpack.c.h.bf16 %v4564_v23 }
 0x781   : > { %v6548_v16 = vpop.eup %4827  ;;  %4833 = vpow2.f32 %v2248_v54  ;;  %v2189_v54 = vpop.f32.mrf.mxu3 }
 0x782   : > { %4835 = vpow2.f32 %v2740_v28  ;;  %v6575_v33 = vadd.f32 %v4509_v60, %v2189_v54  ;;  %v2721_v60 = vsub.f32 %v6407_v14, %v6496_v6 }
 0x784   : > { %v6550_v34 = vpop.eup %4829  ;;  %v2746_v43 = vmul.f32 1.442695, %v2721_v60 }
 0x785   : > { %2708 = vmax.xlane.f32.xlu2 %v6537_v7  ;;  %2216 = vmax.xlane.f32.xlu1 %v6540_v8  ;;  %v6557_v61 = vpop.eup %4831  ;;  %v2763_v12 = vpop.xlane.xlu0 %2762 }
 0x786   : > { %4837 = vrcp.f32 %v2763_v12  ;;  %v4508_v12 = vunpack.c.l.bf16 %v4564_v23  ;;  %v4541_v23 = vunpack.c.h.bf16 %v6525_v13 }
 0x787   : > { %v6563_v1 = vpop.eup %4833 }
 0x788   : > { %2278 = vadd.xlane.f32.xlu0 %v6544_v41  ;;  %v6567_v19 = vpop.eup %4835  ;;  %v6586_v54 = vadd.f32 %v4508_v12, %v2187_v48 }
 0x78c   : > { %v4838_v4 = vpop.eup %4837 }
 0x78d   : > { %2290 = vadd.xlane.f32.xlu2 %v6550_v34  ;;  %2282 = vadd.xlane.f32.xlu1 %v6548_v16  ;;  %v2809_v27 = vmul.f32 %v4838_v4, %v6443_v56  ;;  %v2677_v4 = vpop.f32.mrf.mxu1 }
 0x78e   : > { %v6595_v6 = vadd.f32 %v4541_v23, %v2677_v4 }
 0x790   : > { %2770 = vadd.xlane.f32.xlu0 %v6557_v61 }
 0x795   : > { %2706 = vmax.xlane.f32.xlu1 %v6560_v29 }
 0x798   : > { %2280 = vadd.xlane.f32.xlu0 %v6563_v1 }
 0x79d   : > { %2772 = vadd.xlane.f32.xlu1 %v6567_v19 }
 0x79f   : > { %v2761_v9 = vpop.xlane.xlu1 %2760 }
 0x7a0   : > { %4839 = vrcp.f32 %v2761_v9  ;;  %2704 = vmax.xlane.f32.xlu0 %v6571_v11 }
 0x7a1   : > { %4841 = vpow2.f32 %v2254_v26 }
 0x7a5   : > { %2222 = vmax.xlane.f32.xlu1 %v6575_v33 }
 0x7a6   : > { %v4840_v38 = vpop.eup %4839 }
 0x7a7   : > { %v6578_v32 = vpop.eup %4841  ;;  %v2808_v39 = vmul.f32 %v4840_v38, %v6454_v42  ;;  %v2209_v28 = vpop.xlane.xlu1 %2208  ;;  %v2720_v42 = vsub.f32 %v6401_v53, %v6489_v36 }
 0x7a8   : > { %v2232_v37 = vsub.f32 %v6458_v62, %v2209_v28  ;;  %2286 = vadd.xlane.f32.xlu0 %v6578_v32  ;;  %v2765_v9 = vpop.xlane.xlu0 %2764 }
 0x7a9   : > { %v2824_v24 = vpack.c.bf16 %v2809_v27, %v2808_v39  ;;  %v2744_v14 = vmul.f32 1.442695, %v2720_v42 }
 0x7aa   : > { %v2256_v26 = vmul.f32 1.442695, %v2232_v37 }
 0x7ab   : > { %2864 = vmatmul.bf16.vlgmr.msrb.gmra.mxu3 %v2824_v24 }
 0x7ac   : > { %4843 = vpow2.f32 %v2256_v26 }
 0x7ad   : > { %4845 = vpow2.f32 %v2746_v43 }
 0x7ae   : > { %4847 = vpow2.f32 %v2744_v14 }
 0x7b0   : > { %v2273_v56 = vpop.xlane.xlu2 %2272  ;;  %2220 = vmax.xlane.f32.xlu0 %v6586_v54  ;;  %v2215_v48 = vpop.xlane.xlu0 %2214 }
 0x7b1   : > { %v2235_v27 = vsub.f32 %v6466_v55, %v2215_v48 }
 0x7b2   : > { %v6591_v62 = vpop.eup %4843 }
 0x7b3   : > { %2288 = vadd.xlane.f32.xlu1 %v6591_v62  ;;  %v6600_v36 = vpop.eup %4845  ;;  %v2262_v13 = vmul.f32 1.442695, %v2235_v27 }
 0x7b4   : > { %v6603_v43 = vpop.eup %4847 }
 0x7b8   : > { %v2213_v38 = vpop.xlane.xlu2 %2212  ;;  %2710 = vmax.xlane.f32.xlu0 %v6595_v6 }
 0x7b9   : > { %v2234_v53 = vsub.f32 %v6475_v30, %v2213_v38 }
 0x7bb   : > { %v2260_v39 = vmul.f32 1.442695, %v2234_v53  ;;  %2778 = vadd.xlane.f32.xlu1 %v6600_v36 }
 0x7bd   : > { %4849 = vpow2.f32 %v2260_v39 }
 0x7be   : > { %4851 = vpow2.f32 %v2262_v13 }
 0x7c0   : > { %v2703_v28 = vpop.xlane.xlu2 %2702  ;;  %2776 = vadd.xlane.f32.xlu0 %v6603_v43 }
 0x7c1   : > { %v2723_v37 = vsub.f32 %v6484_v15, %v2703_v28 }
 0x7c3   : > { %v6607_v24 = vpop.eup %4849  ;;  %v2750_v55 = vmul.f32 1.442695, %v2723_v37 }
 0x7c4   : > { %2292 = vadd.xlane.f32.xlu2 %v6607_v24  ;;  %v6610_v30 = vpop.eup %4851 }
 0x7c5   : > { %4853 = vpow2.f32 %v2750_v55 }
 0x7c6   : > { %4855 = vrcp.f32 %v2273_v56 }
 0x7c8   : > { %2294 = vadd.xlane.f32.xlu0 %v6610_v30  ;;  %v2769_v23 = vpop.xlane.xlu2 %2768 }
 0x7ca   : > { %v1863_v12 = vpop.f32.mrf.mxu0 }
 0x7cb   : > { %v6613_v26 = vpop.eup %4853 }
 0x7cc   : > { %2782 = vadd.xlane.f32.xlu2 %v6613_v26  ;;  %v4856_v4 = vpop.eup %4855 }
 0x7cd   : > { %v2320_v48 = vmul.f32 %v4856_v4, %v6469_v49 }
 0x7d0   : > { %v2219_v13 = vpop.xlane.xlu2 %2218 }
 0x7d1   : > { %v2237_v49 = vsub.f32 %v6498_v0, %v2219_v13 }
 0x7d2   : > { %v1865_v60 = vpop.f32.mrf.mxu0 }
 0x7d3   : > { %v1875_v42 = vpack.c.bf16 %v1865_v60, %v1863_v12  ;;  %v2266_v4 = vmul.f32 1.442695, %v2237_v49 }
 0x7d5   : > { %4278 = vmatmul.msk.bf16.gmra.mxu2 %vm1149_vm5, %v1875_v42 }
 0x7e0   : > { %v2275_v15 = vpop.xlane.xlu1 %2274 }
 0x7e1   : > { %4857 = vrcp.f32 %v2275_v15 }
 0x7e2   : > { %4859 = vrcp.f32 %v2765_v9 }
 0x7e7   : > { %v4858_v14 = vpop.eup %4857 }
 0x7e8   : > { %v2321_v38 = vmul.f32 %v4858_v14, %v6507_v50  ;;  %v2767_v27 = vpop.xlane.xlu1 %2766  ;;  %v4860_v39 = vpop.eup %4859 }
 0x7e9   : > { %4861 = vrcp.f32 %v2767_v27  ;;  %v2810_v56 = vmul.f32 %v4860_v39, %v6461_v63  ;;  %v2775_v50 = vpop.xlane.xlu2 %2774 }
 0x7ea   : > { %v2336_v53 = vpack.c.bf16 %v2321_v38, %v2320_v48 }
 0x7ec   : > { %2376 = vmatmul.bf16.vlgmr.msra.gmra.mxu0 %v2336_v53 }
 0x7ef   : > { %v4862_v28 = vpop.eup %4861 }
 0x7f0   : > { %v2701_v37 = vpop.xlane.xlu1 %2700  ;;  %v2811_v55 = vmul.f32 %v4862_v28, %v6514_v44 }
 0x7f1   : > { %v2722_v12 = vsub.f32 %v6520_v5, %v2701_v37  ;;  %v2285_v5 = vpop.xlane.xlu2 %2284 }
 0x7f2   : > { %v2825_v60 = vpack.c.bf16 %v2811_v55, %v2810_v56 }
 0x7f3   : > { %v2748_v9 = vmul.f32 1.442695, %v2722_v12  ;;  %v2277_v42 = vpop.xlane.xlu0 %2276 }
 0x7f4   : > { %2869 = vmatmul.bf16.gmra.mxu3 %v2825_v60 }
 0x7f5   : > { %4863 = vpow2.f32 %v2748_v9 }
 0x7f6   : > { %4865 = vrcp.f32 %v2277_v42 }
 0x7f8   : > { %v2217_v15 = vpop.xlane.xlu1 %2216 }
 0x7f9   : > { %v2236_v14 = vsub.f32 %v6540_v8, %v2217_v15  ;;  %v2709_v60 = vpop.xlane.xlu2 %2708 }
 0x7fa   : > { %v2726_v49 = vsub.f32 %v6537_v7, %v2709_v60  ;;  %v2425_v7 = vld [vmem:[%s7423_s4 + $0x8] sm:$0xf] }
 0x7fb   : > { %v6624_v48 = vpop.eup %4863  ;;  %v2264_v63 = vmul.f32 1.442695, %v2236_v14  ;;  %v2279_v38 = vpop.xlane.xlu0 %2278 }
 0x7fc   : > { %4867 = vrcp.f32 %v2279_v38  ;;  %2780 = vadd.xlane.f32.xlu1 %v6624_v48  ;;  %v4866_v44 = vpop.eup %4865 }
 0x7fd   : > { %4869 = vpow2.f32 %v2266_v4  ;;  %v2322_v8 = vmul.f32 %v4866_v44, %v6531_v59 }
 0x7fe   : > { %4871 = vpow2.f32 %v2264_v63  ;;  %v2756_v63 = vmul.f32 1.442695, %v2726_v49 }
 0x7ff   : > { %4873 = vrcp.f32 %v2769_v23 }
 0x800   : > { %v2283_v27 = vpop.xlane.xlu1 %2282 }
 0x802   : > { %v4868_v0 = vpop.eup %4867 }
 0x803   : > { %v6627_v53 = vpop.eup %4869  ;;  %v2771_v39 = vpop.xlane.xlu0 %2770  ;;  %v2323_v13 = vmul.f32 %v4868_v0, %v6544_v41 }
 0x804   : > { %v6631_v28 = vpop.eup %4871  ;;  %4875 = vrcp.f32 %v2771_v39  ;;  %2298 = vadd.xlane.f32.xlu1 %v6627_v53  ;;  %v2451_v39 = vsel %vm1901_vm6, %v2425_v7, 0 }
 0x805   : > { %2296 = vadd.xlane.f32.xlu0 %v6631_v28  ;;  %v2337_v37 = vpack.c.bf16 %v2323_v13, %v2322_v8  ;;  %v4874_v56 = vpop.eup %4873  ;;  %4877 = vrcp.f32 %v2283_v27  ;;  %2460 = vmatpush.bf16.msra.mxu2 %v2451_v39 }
 0x806   : > { %v2812_v41 = vmul.f32 %v4874_v56, %v6491_v57 }
 0x807   : > { %2381 = vmatmul.bf16.gmra.mxu0 %v2337_v37 }
 0x808   : > { %v2707_v55 = vpop.xlane.xlu1 %2706 }
 0x809   : > { %v2725_v23 = vsub.f32 %v6560_v29, %v2707_v55 }
 0x80a   : > { %v4876_v12 = vpop.eup %4875 }
 0x80b   : > { %v2754_v9 = vmul.f32 1.442695, %v2725_v23  ;;  %v2281_v59 = vpop.xlane.xlu0 %2280  ;;  %v2813_v42 = vmul.f32 %v4876_v12, %v6557_v61  ;;  %v4878_v4 = vpop.eup %4877  ;;  %v2913_v12 = vld [vmem:[%s7423_s4 + $0xc] sm:$0xf] }
 0x80c   : > { %4879 = vrcp.f32 %v2281_v59  ;;  %v2325_v57 = vmul.f32 %v4878_v4, %v6548_v16 }
 0x80d   : > { %4881 = vpow2.f32 %v2754_v9  ;;  %v2826_v15 = vpack.c.bf16 %v2813_v42, %v2812_v41  ;;  %v2939_v9 = vsel %vm1901_vm6, %v2913_v12, 0 }
 0x80e   : > { %2948 = vmatpush.bf16.msrb.mxu0 %v2939_v9 }
 0x80f   : > { %2874 = vmatmul.bf16.gmra.mxu3 %v2826_v15 }
 0x810   : > { %v2773_v14 = vpop.xlane.xlu1 %2772 }
 0x811   : > { %4883 = vrcp.f32 %v2773_v14 }
 0x812   : > { %v4880_v29 = vpop.eup %4879  ;;  %4885 = vrcp.f32 %v2775_v50 }
 0x813   : > { %v6639_v38 = vpop.eup %4881  ;;  %v2705_v44 = vpop.xlane.xlu0 %2704  ;;  %v2324_v27 = vmul.f32 %v4880_v29, %v6563_v1  ;;  %4887 = vpow2.f32 %v2756_v63 }
 0x814   : > { %v2724_v61 = vsub.f32 %v6571_v11, %v2705_v44  ;;  %2786 = vadd.xlane.f32.xlu0 %v6639_v38  ;;  %v2291_v63 = vpop.xlane.xlu2 %2290 }
 0x815   : > { %v2338_v0 = vpack.c.bf16 %v2325_v57, %v2324_v27 }
 0x816   : > { %v2752_v50 = vmul.f32 1.442695, %v2724_v61 }
 0x817   : > { %v4884_v8 = vpop.eup %4883  ;;  %2386 = vmatmul.bf16.gmra.mxu0 %v2338_v0 }
 0x818   : > { %v4886_v13 = vpop.eup %4885  ;;  %4889 = vpow2.f32 %v2752_v50  ;;  %v2223_v1 = vpop.xlane.xlu1 %2222  ;;  %v2814_v11 = vmul.f32 %v4884_v8, %v6567_v19 }
 0x819   : > { %v2239_v16 = vsub.f32 %v6575_v33, %v2223_v1  ;;  %4891 = vrcp.f32 %v2285_v5  ;;  %v6651_v37 = vpop.eup %4887  ;;  %v2815_v55 = vmul.f32 %v4886_v13, %v6502_v46 }
 0x81b   : > { %v2287_v56 = vpop.xlane.xlu0 %2286  ;;  %v2270_v23 = vmul.f32 1.442695, %v2239_v16  ;;  %v2827_v60 = vpack.c.bf16 %v2815_v55, %v2814_v11 }
 0x81c   : > { %4893 = vrcp.f32 %v2287_v56  ;;  %2788 = vadd.xlane.f32.xlu0 %v6651_v37 }
 0x81d   : > { %4895 = vpow2.f32 %v2270_v23 }
 0x81e   : > { %v6659_v33 = vpop.eup %4889 }
 0x81f   : > { %2879 = vmatmul.bf16.gmra.mxu3 %v2827_v60  ;;  %2784 = vadd.xlane.f32.xlu2 %v6659_v33  ;;  %v4892_v19 = vpop.eup %4891 }
 0x820   : > { %v2326_v59 = vmul.f32 %v4892_v19, %v6522_v22 }
 0x822   : > { %v4894_v46 = vpop.eup %4893 }
 0x823   : > { %v2221_v5 = vpop.xlane.xlu0 %2220  ;;  %v2327_v41 = vmul.f32 %v4894_v46, %v6578_v32  ;;  %v6665_v15 = vpop.eup %4895 }
 0x824   : > { %v2238_v42 = vsub.f32 %v6586_v54, %v2221_v5 }
 0x825   : > { %v2339_v49 = vpack.c.bf16 %v2327_v41, %v2326_v59 }
 0x826   : > { %v2268_v4 = vmul.f32 1.442695, %v2238_v42  ;;  %v2289_v14 = vpop.xlane.xlu1 %2288 }
 0x827   : > { %4897 = vrcp.f32 %v2289_v14  ;;  %2302 = vadd.xlane.f32.xlu2 %v6665_v15  ;;  %2391 = vmatmul.bf16.gmra.mxu0 %v2339_v49 }
 0x828   : > { %4899 = vpow2.f32 %v2268_v4 }
 0x829   : > { %4901 = vrcp.f32 %v2291_v63 }
 0x82b   : > { %v2711_v29 = vpop.xlane.xlu0 %2710 }
 0x82c   : > { %v2727_v44 = vsub.f32 %v6595_v6, %v2711_v29 }
 0x82d   : > { %v4898_v22 = vpop.eup %4897 }
 0x82e   : > { %v6669_v27 = vpop.eup %4899  ;;  %v2758_v32 = vmul.f32 1.442695, %v2727_v44  ;;  %v2779_v54 = vpop.xlane.xlu1 %2778  ;;  %v2328_v61 = vmul.f32 %v4898_v22, %v6591_v62 }
 0x82f   : > { %2300 = vadd.xlane.f32.xlu1 %v6669_v27  ;;  %v4902_v57 = vpop.eup %4901 }
 0x830   : > { %4903 = vpow2.f32 %v2758_v32  ;;  %v2329_v0 = vmul.f32 %v4902_v57, %v6550_v34 }
 0x831   : > { %4905 = vrcp.f32 %v2779_v54 }
 0x832   : > { %v2340_v39 = vpack.c.bf16 %v2329_v0, %v2328_v61  ;;  %v6687_v61 = vpop.f32.mrf.mxu2 }
 0x833   : > { %v2777_v7 = vpop.xlane.xlu0 %2776 }
 0x834   : > { %4907 = vrcp.f32 %v2777_v7 }
 0x836   : > { %v6674_v50 = vpop.eup %4903 }
 0x837   : > { %v2293_v6 = vpop.xlane.xlu2 %2292  ;;  %2396 = vmatmul.bf16.gmra.mxu0 %v2340_v39  ;;  %2790 = vadd.xlane.f32.xlu1 %v6674_v50  ;;  %v4906_v8 = vpop.eup %4905 }
 0x838   : > { %4909 = vrcp.f32 %v2293_v6  ;;  %v2817_v62 = vmul.f32 %v4906_v8, %v6600_v36 }
 0x83a   : > { %v4908_v13 = vpop.eup %4907 }
 0x83b   : > { %v2295_v1 = vpop.xlane.xlu0 %2294  ;;  %v2816_v16 = vmul.f32 %v4908_v13, %v6603_v43  ;;  %v6692_v13 = vpop.f32.mrf.mxu2 }
 0x83c   : > { %4911 = vrcp.f32 %v2295_v1 }
 0x83d   : > { %v2828_v11 = vpack.c.bf16 %v2817_v62, %v2816_v16  ;;  %v2865_v16 = vpop.f32.mrf.mxu3 }
 0x83e   : > { %v4910_v34 = vpop.eup %4909 }
 0x83f   : > { %2884 = vmatmul.bf16.gmra.mxu3 %v2828_v11  ;;  %v2330_v55 = vmul.f32 %v4910_v34, %v6607_v24  ;;  %v2783_v9 = vpop.xlane.xlu2 %2782 }
 0x840   : > { %4913 = vrcp.f32 %v2783_v9 }
 0x842   : > { %v4912_v56 = vpop.eup %4911 }
 0x843   : > { %v2331_v23 = vmul.f32 %v4912_v56, %v6610_v30 }
 0x845   : > { %v2341_v12 = vpack.c.bf16 %v2331_v23, %v2330_v55  ;;  %v2867_v9 = vpop.f32.mrf.mxu3 }
 0x846   : > { %v4914_v5 = vpop.eup %4913 }
 0x847   : > { %2401 = vmatmul.bf16.gmra.mxu0 %v2341_v12  ;;  %v2819_v24 = vmul.f32 %v4914_v5, %v6613_v26 }
 0x869   : > { %v2377_v60 = vpop.f32.mrf.mxu0 }
 0x86f   : > { %v2781_v19 = vpop.xlane.xlu1 %2780 }
 0x870   : > { %4915 = vrcp.f32 %v2781_v19 }
 0x871   : > { %v2379_v46 = vpop.f32.mrf.mxu0 }
 0x872   : > { %v2417_v43 = vpack.c.bf16 %v2379_v46, %v2377_v60 }
 0x874   : > { %4311 = vmatmul.msk.bf16.vlgmr.msra.gmra.mxu2 %vm1149_vm5, %v2417_v43 }
 0x876   : > { %v4916_v36 = vpop.eup %4915 }
 0x877   : > { %v2299_v59 = vpop.xlane.xlu1 %2298  ;;  %v2818_v41 = vmul.f32 %v4916_v36, %v6624_v48 }
 0x878   : > { %4917 = vrcp.f32 %v2299_v59  ;;  %v2297_v30 = vpop.xlane.xlu0 %2296 }
 0x879   : > { %4919 = vrcp.f32 %v2297_v30  ;;  %v2829_v42 = vpack.c.bf16 %v2819_v24, %v2818_v41  ;;  %v2870_v24 = vpop.f32.mrf.mxu3 }
 0x87b   : > { %2889 = vmatmul.bf16.gmra.mxu3 %v2829_v42 }
 0x87e   : > { %v4918_v49 = vpop.eup %4917 }
 0x87f   : > { %v4920_v4 = vpop.eup %4919  ;;  %v2333_v14 = vmul.f32 %v4918_v49, %v6627_v53 }
 0x880   : > { %v2332_v63 = vmul.f32 %v4920_v4, %v6631_v28 }
 0x881   : > { %v2872_v4 = vpop.f32.mrf.mxu3 }
 0x882   : > { %v2342_v29 = vpack.c.bf16 %v2333_v14, %v2332_v63 }
 0x884   : > { %2406 = vmatmul.bf16.gmra.mxu0 %v2342_v29  ;;  %v2382_v44 = vpop.f32.mrf.mxu0 }
 0x887   : > { %v2787_v54 = vpop.xlane.xlu0 %2786 }
 0x888   : > { %4921 = vrcp.f32 %v2787_v54 }
 0x88c   : > { %v2384_v22 = vpop.f32.mrf.mxu0 }
 0x88d   : > { %v2418_v32 = vpack.c.bf16 %v2384_v22, %v2382_v44 }
 0x88e   : > { %v4922_v57 = vpop.eup %4921 }
 0x88f   : > { %4312 = vmatmul.msk.bf16.gmra.mxu2 %vm1149_vm5, %v2418_v32  ;;  %v2821_v28 = vmul.f32 %v4922_v57, %v6639_v38  ;;  %v2789_v11 = vpop.xlane.xlu0 %2788 }
 0x892   : > { %v2785_v26 = vpop.xlane.xlu2 %2784 }
 0x893   : > { %4923 = vrcp.f32 %v2785_v26 }
 0x894   : > { %v2387_v48 = vpop.f32.mrf.mxu0 }
 0x899   : > { %v4924_v7 = vpop.eup %4923 }
 0x89a   : > { %v2820_v53 = vmul.f32 %v4924_v7, %v6659_v33  ;;  %v2303_v8 = vpop.xlane.xlu2 %2302  ;;  %v6694_v33 = vpop.f32.mrf.mxu2 }
 0x89b   : > { %4925 = vrcp.f32 %v2303_v8 }
 0x89c   : > { %v2389_v0 = vpop.f32.mrf.mxu0  ;;  %v2830_v39 = vpack.c.bf16 %v2821_v28, %v2820_v53 }
 0x89d   : > { %v2419_v6 = vpack.c.bf16 %v2389_v0, %v2387_v48 }
 0x89e   : > { %2894 = vmatmul.bf16.gmra.mxu3 %v2830_v39 }
 0x89f   : > { %4313 = vmatmul.msk.bf16.gmra.mxu2 %vm1149_vm5, %v2419_v6 }
 0x8a1   : > { %v4926_v34 = vpop.eup %4925 }
 0x8a2   : > { %v2301_v1 = vpop.xlane.xlu1 %2300  ;;  %v2335_v23 = vmul.f32 %v4926_v34, %v6665_v15  ;;  %v6701_v59 = vpop.f32.mrf.mxu2  ;;  %v2905_v15 = vpack.c.bf16 %v2867_v9, %v2865_v16 }
 0x8a3   : > { %4927 = vrcp.f32 %v2301_v1 }
 0x8a4   : > { %v2392_v62 = vpop.f32.mrf.mxu0  ;;  %4929 = vrcp.f32 %v2789_v11 }
 0x8a9   : > { %v4928_v56 = vpop.eup %4927 }
 0x8aa   : > { %v2791_v38 = vpop.xlane.xlu1 %2790  ;;  %v2334_v55 = vmul.f32 %v4928_v56, %v6669_v27  ;;  %v4930_v46 = vpop.eup %4929 }
 0x8ab   : > { %4931 = vrcp.f32 %v2791_v38  ;;  %v2822_v5 = vmul.f32 %v4930_v46, %v6651_v37  ;;  %v6703_v49 = vpop.f32.mrf.mxu2  ;;  %v2875_v37 = vpop.f32.mrf.mxu3 }
 0x8ac   : > { %v2394_v12 = vpop.f32.mrf.mxu0  ;;  %v2343_v60 = vpack.c.bf16 %v2335_v23, %v2334_v55 }
 0x8ad   : > { %v2420_v19 = vpack.c.bf16 %v2394_v12, %v2392_v62 }
 0x8ae   : > { %2411 = vmatmul.bf16.gmra.mxu0 %v2343_v60 }
 0x8af   : > { %4314 = vmatmul.msk.bf16.gmra.mxu2 %vm1149_vm5, %v2420_v19 }
 0x8b1   : > { %v4932_v43 = vpop.eup %4931 }
 0x8b2   : > { %v2823_v36 = vmul.f32 %v4932_v43, %v6674_v50  ;;  %v2906_v50 = vpack.c.bf16 %v2872_v4, %v2870_v24  ;;  %v1991_v24 = vadd.f32 %v6226_v2, %v6687_v61 }
 0x8b3   : > { %v6707_v63 = vpop.f32.mrf.mxu2  ;;  %v2877_v32 = vpop.f32.mrf.mxu3 }
 0x8b4   : > { %v2397_v41 = vpop.f32.mrf.mxu0  ;;  %v2831_v27 = vpack.c.bf16 %v2823_v36, %v2822_v5  ;;  %v2907_v48 = vpack.c.bf16 %v2877_v32, %v2875_v37  ;;  %v5029_v37 = vld [vmem:[%s5215_s26] sm:$0xff] }
 0x8b6   : > { %2899 = vmatmul.bf16.gmra.mxu3 %v2831_v27 }
 0x8bb   : > { %v6711_v22 = vpop.f32.mrf.mxu2  ;;  %v2880_v26 = vpop.f32.mrf.mxu3 }
 0x8bc   : > { %v2399_v30 = vpop.f32.mrf.mxu0 }
 0x8bd   : > { %v2421_v42 = vpack.c.bf16 %v2399_v30, %v2397_v41 }
 0x8be   : > { %4343 = vmatmul.msk.bf16.vlgmr.msrb.gmra.mxu0 %vm1149_vm5, %v2905_v15 }
 0x8bf   : > { %4315 = vmatmul.msk.bf16.gmra.mxu2 %vm1149_vm5, %v2421_v42 }
 0x8c3   : > { %v6713_v54 = vpop.f32.mrf.mxu2  ;;  %v2882_v7 = vpop.f32.mrf.mxu3 }
 0x8c4   : > { %v2402_v14 = vpop.f32.mrf.mxu0  ;;  %v2908_v28 = vpack.c.bf16 %v2882_v7, %v2880_v26 }
 0x8cb   : > { %v6716_v57 = vpop.f32.mrf.mxu2  ;;  %v2885_v0 = vpop.f32.mrf.mxu3 }
 0x8cc   : > { %v2404_v29 = vpop.f32.mrf.mxu0 }
 0x8cd   : > { %v2422_v44 = vpack.c.bf16 %v2404_v29, %v2402_v14  ;;  %v6743_v14 = vld [vmem:[%s7424_s5] ss:$0 sm:$0xff] }
 0x8ce   : > { %4344 = vmatmul.msk.bf16.gmra.mxu0 %vm1149_vm5, %v2906_v50 }
 0x8cf   : > { %4316 = vmatmul.msk.bf16.gmra.mxu2 %vm1149_vm5, %v2422_v44  ;;  %v1993_v44 = vadd.f32 %v6237_v10, %v6692_v13  ;;  %v1996_v10 = vadd.f32 %v6244_v45, %v6694_v33 }
 0x8d3   : > { %v6718_v53 = vpop.f32.mrf.mxu2  ;;  %v2887_v6 = vpop.f32.mrf.mxu3 }
 0x8d4   : > { %v2909_v8 = vpack.c.bf16 %v2887_v6, %v2885_v0  ;;  %v5030_v0 = vld [vmem:[%s5215_s26 + $0x8] sm:$0xff] }
 0x8db   : > { %v6721_v39 = vpop.f32.mrf.mxu2 }
 0x8de   : > { %4345 = vmatmul.msk.bf16.gmra.mxu0 %vm1149_vm5, %v2907_v48 }
 0x8e3   : > { %v6724_v16 = vpop.f32.mrf.mxu2 }
 0x8eb   : > { %v6726_v11 = vpop.f32.mrf.mxu2 }
 0x8ee   : > { %4346 = vmatmul.msk.bf16.gmra.mxu0 %vm1149_vm5, %v2908_v28 }
 0x8f3   : > { %v6730_v23 = vpop.f32.mrf.mxu2 }
 0x8fb   : > { %v6732_v12 = vpop.f32.mrf.mxu2 }
 0x8fe   : > { %4347 = vmatmul.msk.bf16.gmra.mxu0 %vm1149_vm5, %v2909_v8  ;;  %v2890_v1 = vpop.f32.mrf.mxu3 }
 0x901   : > { %v2407_v62 = vpop.f32.mrf.mxu0 }
 0x903   : > { %v6734_v9 = vpop.f32.mrf.mxu2 }
 0x906   : > { %v2892_v34 = vpop.f32.mrf.mxu3 }
 0x907   : > { %v2910_v55 = vpack.c.bf16 %v2892_v34, %v2890_v1 }
 0x909   : > { %v2409_v56 = vpop.f32.mrf.mxu0 }
 0x90a   : > { %v2423_v38 = vpack.c.bf16 %v2409_v56, %v2407_v62 }
 0x90b   : > { %v2462_v5 = vpop.f32.mrf.mxu2 }
 0x90c   : > { %4317 = vmatmul.msk.bf16.gmra.mxu2 %vm1149_vm5, %v2423_v38  ;;  %v2502_v30 = vadd.f32 %v2462_v5, %v1991_v24  ;;  %v5031_v38 = vld [vmem:[%s5215_s26 + $0x10] sm:$0xff] }
 0x90e   : > { %4348 = vmatmul.msk.bf16.gmra.mxu0 %vm1149_vm5, %v2910_v55 }
 0x913   : > { %v2464_v27 = vpop.f32.mrf.mxu2 }
 0x914   : > { %v2503_v61 = vadd.f32 %v2464_v27, %v1993_v44  ;;  %v2001_v27 = vadd.f32 %v6257_v47, %v6703_v49 }
 0x91b   : > { %v2467_v29 = vpop.f32.mrf.mxu2 }
 0x91c   : > { %v2504_v1 = vadd.f32 %v2467_v29, %v1996_v10  ;;  %v5035_v10 = vld [vmem:[%s5215_s26 + $0x30] sm:$0xff] }
 0x921   : > { %v2895_v60 = vpop.f32.mrf.mxu3 }
 0x923   : > { %v2469_v8 = vpop.f32.mrf.mxu2 }
 0x929   : > { %v2897_v19 = vpop.f32.mrf.mxu3 }
 0x92a   : > { %v2911_v46 = vpack.c.bf16 %v2897_v19, %v2895_v60  ;;  %v1998_v60 = vadd.f32 %v6253_v35, %v6701_v59 }
 0x92b   : > { %v2412_v43 = vpop.f32.mrf.mxu0 }
 0x92c   : > { %4349 = vmatmul.msk.bf16.gmra.mxu0 %vm1149_vm5, %v2911_v46  ;;  %v2505_v45 = vadd.f32 %v2469_v8, %v1998_v60  ;;  %v2472_v46 = vpop.f32.mrf.mxu2 }
 0x92d   : > { %v2506_v35 = vadd.f32 %v2472_v46, %v2001_v27 }
 0x933   : > { %v2414_v36 = vpop.f32.mrf.mxu0 }
 0x934   : > { %v2424_v41 = vpack.c.bf16 %v2414_v36, %v2412_v43  ;;  %v5032_v36 = vld [vmem:[%s5215_s26 + $0x18] sm:$0xff] }
 0x936   : > { %4318 = vmatmul.msk.bf16.gmra.mxu2 %vm1149_vm5, %v2424_v41 }
 0x939   : > { %v2900_v15 = vpop.f32.mrf.mxu3 }
 0x93b   : > { %v2950_v42 = vpop.f32.mrf.mxu0 }
 0x93c   : > { %v2990_v4 = vadd.f32 %v2950_v42, %v2502_v30  ;;  %v2474_v42 = vpop.f32.mrf.mxu2 }
 0x93e   : > { %v3006_v50 = vadd.f32 %v5029_v37, %v2990_v4  ;;  %v5033_v4 = vld [vmem:[%s5215_s26 + $0x20] sm:$0xff] }
 0x940   : > { %v6749_v32 = vadd.f32 %v6743_v14, %v3006_v50  ;;  %v2003_v50 = vadd.f32 %v6264_v31, %v6707_v63 }
 0x941   : > { %v2902_v2 = vpop.f32.mrf.mxu3 }
 0x942   : > { %v2912_v26 = vpack.c.bf16 %v2902_v2, %v2900_v15  ;;  %v3044_v48 = vsel %vm546_vm0, %v6749_v32, 0.0  ;;  %v2507_v47 = vadd.f32 %v2474_v42, %v2003_v50 }
 0x943   : > { %3045 = vadd.xlane.f32.xlu2 %v3044_v48  ;;  %v2952_v7 = vpop.f32.mrf.mxu0 }
 0x944   : > { %v2991_v28 = vadd.f32 %v2952_v7, %v2503_v61  ;;  %4350 = vmatmul.msk.bf16.gmra.mxu0 %vm1149_vm5, %v2912_v26  ;;  %v5034_v61 = vld [vmem:[%s5215_s26 + $0x28] sm:$0xff]  ;;  %v2477_v48 = vpop.f32.mrf.mxu2  ;;  %v2006_v7 = vadd.f32 %v6269_v18, %v6711_v22 }
 0x946   : > { %v3007_v6 = vadd.f32 %v5030_v0, %v2991_v28  ;;  %v2508_v31 = vadd.f32 %v2477_v48, %v2006_v7 }
 0x948   : > { %v6758_v13 = vadd.f32 %v6743_v14, %v3007_v6 }
 0x94a   : > { %v3047_v62 = vsel %vm546_vm0, %v6758_v13, 0.0 }
 0x94b   : > { %3048 = vadd.xlane.f32.xlu0 %v3047_v62  ;;  %v2955_v34 = vpop.f32.mrf.mxu0 }
 0x94c   : > { %v2992_v56 = vadd.f32 %v2955_v34, %v2504_v1  ;;  %v2479_v18 = vpop.f32.mrf.mxu2 }
 0x94e   : > { %v3008_v55 = vadd.f32 %v5031_v38, %v2992_v56  ;;  %v2008_v56 = vadd.f32 %v6273_v3, %v6713_v54 }
 0x950   : > { %v6766_v19 = vadd.f32 %v6743_v14, %v3008_v55  ;;  %v2509_v60 = vadd.f32 %v2479_v18, %v2008_v56 }
 0x952   : > { %v3050_v33 = vsel %vm546_vm0, %v6766_v19, 0.0 }
 0x953   : > { %3051 = vadd.xlane.f32.xlu1 %v3050_v33  ;;  %v2957_v43 = vpop.f32.mrf.mxu0 }
 0x954   : > { %v2993_v5 = vadd.f32 %v2957_v43, %v2505_v45  ;;  %v2482_v34 = vpop.f32.mrf.mxu2 }
 0x956   : > { %v3009_v41 = vadd.f32 %v5032_v36, %v2993_v5  ;;  %v2011_v5 = vadd.f32 %v6311_v40, %v6716_v57  ;;  %v5036_v36 = vld [vmem:[%s5215_s26 + $0x38] sm:$0xff]  ;;  %v2013_v57 = vadd.f32 %v6325_v21, %v6718_v53 }
 0x958   : > { %v6774_v24 = vadd.f32 %v6743_v14, %v3009_v41 }
 0x95a   : > { %v3053_v59 = vsel %vm546_vm0, %v6774_v24, 0.0 }
 0x95b   : > { %3054 = vadd.xlane.f32.xlu2 %v3053_v59  ;;  %v2960_v15 = vpop.f32.mrf.mxu0 }
 0x95c   : > { %v2994_v30 = vadd.f32 %v2960_v15, %v2506_v35  ;;  %v2484_v54 = vpop.f32.mrf.mxu2  ;;  %v2510_v35 = vadd.f32 %v2482_v34, %v2011_v5 }
 0x95e   : > { %v3010_v37 = vadd.f32 %v5033_v4, %v2994_v30 }
 0x960   : > { %v6782_v29 = vadd.f32 %v6743_v14, %v3010_v37  ;;  %v5037_v37 = vld [vmem:[%s5215_s26 + $0x40] sm:$0xff] }
 0x962   : > { %v3056_v49 = vsel %vm546_vm0, %v6782_v29, 0.0 }
 0x963   : > { %3057 = vadd.xlane.f32.xlu0 %v3056_v49  ;;  %v2962_v44 = vpop.f32.mrf.mxu0 }
 0x964   : > { %v2995_v2 = vadd.f32 %v2962_v44, %v2507_v47 }
 0x966   : > { %v3011_v26 = vadd.f32 %v5034_v61, %v2995_v2  ;;  %v2511_v2 = vadd.f32 %v2484_v54, %v2013_v57 }
 0x968   : > { %v6790_v28 = vadd.f32 %v6743_v14, %v3011_v26  ;;  %v2487_v26 = vpop.f32.mrf.mxu2 }
 0x96a   : > { %v3059_v63 = vsel %vm546_vm0, %v6790_v28, 0.0 }
 0x96b   : > { %3060 = vadd.xlane.f32.xlu1 %v3059_v63  ;;  %v2965_v0 = vpop.f32.mrf.mxu0  ;;  %v2016_v63 = vadd.f32 %v6337_v51, %v6721_v39 }
 0x96c   : > { %v2996_v6 = vadd.f32 %v2965_v0, %v2508_v31  ;;  %v5038_v0 = vld [vmem:[%s5215_s26 + $0x48] sm:$0xff] }
 0x96d   : > { %v2512_v18 = vadd.f32 %v2487_v26, %v2016_v63  ;;  %v2023_v26 = vadd.f32 %v6356_v58, %v6730_v23 }
 0x96e   : > { %v3012_v8 = vadd.f32 %v5035_v10, %v2996_v6 }
 0x970   : > { %v6796_v1 = vadd.f32 %v6743_v14, %v3012_v8  ;;  %v2489_v39 = vpop.f32.mrf.mxu2 }
 0x972   : > { %v3062_v62 = vsel %vm546_vm0, %v6796_v1, 0.0 }
 0x973   : > { %3063 = vadd.xlane.f32.xlu1 %v3062_v62  ;;  %v2967_v22 = vpop.f32.mrf.mxu0 }
 0x974   : > { %v2997_v33 = vadd.f32 %v2967_v22, %v2509_v60  ;;  %v2018_v60 = vadd.f32 %v6346_v25, %v6724_v16 }
 0x976   : > { %v3013_v41 = vadd.f32 %v5036_v36, %v2997_v33 }
 0x978   : > { %v6814_v30 = vadd.f32 %v6743_v14, %v3013_v41  ;;  %v2513_v41 = vadd.f32 %v2489_v39, %v2018_v60  ;;  %v5042_v39 = vld [vmem:[%s5215_s26 + $0x68] sm:$0xff] }
 0x97a   : > { %v3065_v47 = vsel %vm546_vm0, %v6814_v30, 0.0 }
 0x97b   : > { %v2970_v38 = vpop.f32.mrf.mxu0 }
 0x97c   : > { %v2998_v42 = vadd.f32 %v2970_v38, %v2510_v35 }
 0x97e   : > { %v3014_v50 = vadd.f32 %v5037_v37, %v2998_v42  ;;  %v5040_v42 = vld [vmem:[%s5215_s26 + $0x58] sm:$0xff] }
 0x980   : > { %v6829_v48 = vadd.f32 %v6743_v14, %v3014_v50 }
 0x982   : > { %v3068_v10 = vsel %vm546_vm0, %v6829_v48, 0.0 }
 0x983   : > { %v2972_v15 = vpop.f32.mrf.mxu0 }
 0x984   : > { %v2999_v7 = vadd.f32 %v2972_v15, %v2511_v2  ;;  %v2021_v15 = vadd.f32 %v6350_v52, %v6726_v11 }
 0x986   : > { %v3015_v6 = vadd.f32 %v5038_v0, %v2999_v7  ;;  %v5041_v7 = vld [vmem:[%s5215_s26 + $0x60] sm:$0xff] }
 0x988   : > { %v6844_v34 = vadd.f32 %v6743_v14, %v3015_v6 }
 0x98a   : > { %v3071_v5 = vsel %vm546_vm0, %v6844_v34, 0.0 }
 0x98b   : > { %v2975_v53 = vpop.f32.mrf.mxu0 }
 0x98c   : > { %v3000_v56 = vadd.f32 %v2975_v53, %v2512_v18 }
 0x98f   : > { %v2492_v16 = vpop.f32.mrf.mxu2 }
 0x9b6   : > { %v3046_v55 = vpop.xlane.xlu2 %3045 }
 0x9b7   : > { %v3092_v45 = vmul.f32 %v3046_v55, %v5231_v20  ;;  %v2977_v55 = vpop.f32.mrf.mxu0 }
 0x9b9   : > { %v6804_v46 = vsub.f32 %v6749_v32, %v3092_v45  ;;  %v5039_v45 = vld [vmem:[%s5215_s26 + $0x50] sm:$0xff] }
 0x9ba   : > { %v3016_v33 = vadd.f32 %v5039_v45, %v3000_v56  ;;  %v2026_v56 = vadd.f32 %v6362_v17, %v6732_v12 }
 0x9bb   : > { %v3124_v43 = vmul.f32 %v6804_v46, %v6804_v46 }
 0x9bc   : > { %v6859_v54 = vadd.f32 %v6743_v14, %v3016_v33 }
 0x9bd   : > { %v3140_v3 = vsel %vm546_vm0, %v3124_v43, 0.0 }
 0x9be   : > { %3141 = vadd.xlane.f32.xlu2 %v3140_v3  ;;  %v3049_v27 = vpop.xlane.xlu0 %3048  ;;  %v3074_v57 = vsel %vm546_vm0, %v6859_v54, 0.0 }
 0x9bf   : > { %v3093_v59 = vmul.f32 %v3049_v27, %v5231_v20  ;;  %v3001_v27 = vadd.f32 %v2977_v55, %v2513_v41 }
 0x9c1   : > { %v6817_v4 = vsub.f32 %v6758_v13, %v3093_v59  ;;  %v2980_v59 = vpop.f32.mrf.mxu0 }
 0x9c3   : > { %v3125_v40 = vmul.f32 %v6817_v4, %v6817_v4 }
 0x9c5   : > { %v3143_v49 = vsel %vm546_vm0, %v3125_v40, 0.0  ;;  %v3017_v40 = vadd.f32 %v5040_v42, %v3001_v27 }
 0x9c6   : > { %v3052_v44 = vpop.xlane.xlu1 %3051  ;;  %3066 = vadd.xlane.f32.xlu2 %v3065_v47  ;;  %3144 = vadd.xlane.f32.xlu0 %v3143_v49  ;;  %v2514_v47 = vadd.f32 %v2492_v16, %v2021_v15  ;;  %v4405_v16 = vld [vmem:[%s7429_s10 + $0x8] sm:$0xff]  ;;  %v4404_v15 = vld [vmem:[%s7429_s10] sm:$0xff] }
 0x9c7   : > { %v3094_v61 = vmul.f32 %v3052_v44, %v5231_v20  ;;  %v6874_v44 = vadd.f32 %v6743_v14, %v3017_v40  ;;  %3492 = vmatpush.bf16.msrb.mxu2 %v4405_v16 }
 0x9c8   : > { %v3002_v2 = vadd.f32 %v2980_v59, %v2514_v47 }
 0x9c9   : > { %v6832_v21 = vsub.f32 %v6766_v19, %v3094_v61  ;;  %v2494_v61 = vpop.f32.mrf.mxu2  ;;  %v3077_v63 = vsel %vm546_vm0, %v6874_v44, 0.0  ;;  %v2982_v0 = vpop.f32.mrf.mxu0 }
 0x9ca   : > { %v3018_v53 = vadd.f32 %v5041_v7, %v3002_v2  ;;  %v7446_v7 = vld [vmem:[#allocation2_spill] sm:$0xff] }
 0x9cb   : > { %v3126_v31 = vmul.f32 %v6832_v21, %v6832_v21  ;;  %3493 = vmatpush.bf16.msrb.mxu2 %v4404_v15 }
 0x9cd   : > { %v3146_v8 = vsel %vm546_vm0, %v3126_v31, 0.0 }
 0x9ce   : > { %v3055_v62 = vpop.xlane.xlu2 %3054  ;;  %3069 = vadd.xlane.f32.xlu2 %v3068_v10  ;;  %3147 = vadd.xlane.f32.xlu0 %v3146_v8  ;;  %v2515_v10 = vadd.f32 %v2494_v61, %v2023_v26 }
 0x9cf   : > { %v3095_v22 = vmul.f32 %v3055_v62, %v5231_v20  ;;  %v6889_v62 = vadd.f32 %v6743_v14, %v3018_v53  ;;  %v2028_v53 = vadd.f32 %v7446_v7, %v6734_v9 }
 0x9d0   : > { %v3003_v58 = vadd.f32 %v2982_v0, %v2515_v10 }
 0x9d1   : > { %v6847_v51 = vsub.f32 %v6774_v24, %v3095_v22  ;;  %v2497_v22 = vpop.f32.mrf.mxu2  ;;  %v3080_v60 = vsel %vm546_vm0, %v6889_v62, 0.0  ;;  %v2985_v45 = vpop.f32.mrf.mxu0 }
 0x9d2   : > { %v2516_v33 = vadd.f32 %v2497_v22, %v2026_v56 }
 0x9d3   : > { %v3127_v38 = vmul.f32 %v6847_v51, %v6847_v51 }
 0x9d5   : > { %v3149_v43 = vsel %vm546_vm0, %v3127_v38, 0.0  ;;  %v3019_v38 = vadd.f32 %v5042_v39, %v3003_v58 }
 0x9d6   : > { %3150 = vadd.xlane.f32.xlu1 %v3149_v43  ;;  %3072 = vadd.xlane.f32.xlu0 %v3071_v5  ;;  %v3058_v36 = vpop.xlane.xlu0 %3057  ;;  %v3004_v5 = vadd.f32 %v2985_v45, %v2516_v33 }
 0x9d7   : > { %v3096_v3 = vmul.f32 %v3058_v36, %v5231_v20  ;;  %v6903_v43 = vadd.f32 %v6743_v14, %v3019_v38  ;;  %v5043_v36 = vld [vmem:[%s5215_s26 + $0x70] sm:$0xff] }
 0x9d8   : > { %v3020_v41 = vadd.f32 %v5043_v36, %v3004_v5  ;;  %v5044_v5 = vld [vmem:[%s5215_s26 + $0x78] sm:$0xff] }
 0x9d9   : > { %v6862_v25 = vsub.f32 %v6782_v29, %v3096_v3  ;;  %v3083_v17 = vsel %vm546_vm0, %v6903_v43, 0.0  ;;  %v2499_v61 = vpop.f32.mrf.mxu2 }
 0x9da   : > { %v6909_v12 = vadd.f32 %v6743_v14, %v3020_v41 }
 0x9db   : > { %v3128_v35 = vmul.f32 %v6862_v25, %v6862_v25 }
 0x9dc   : > { %v3086_v3 = vsel %vm546_vm0, %v6909_v12, 0.0 }
 0x9dd   : > { %v3152_v37 = vsel %vm546_vm0, %v3128_v35, 0.0 }
 0x9de   : > { %v3061_v50 = vpop.xlane.xlu1 %3060  ;;  %3075 = vadd.xlane.f32.xlu0 %v3074_v57  ;;  %3153 = vadd.xlane.f32.xlu1 %v3152_v37 }
 0x9df   : > { %v3097_v49 = vmul.f32 %v3061_v50, %v5231_v20 }
 0x9e1   : > { %v6877_v52 = vsub.f32 %v6790_v28, %v3097_v49 }
 0x9e3   : > { %v3129_v11 = vmul.f32 %v6877_v52, %v6877_v52 }
 0x9e5   : > { %v3155_v31 = vsel %vm546_vm0, %v3129_v11, 0.0 }
 0x9e6   : > { %v3064_v6 = vpop.xlane.xlu1 %3063  ;;  %3156 = vadd.xlane.f32.xlu2 %v3155_v31  ;;  %3078 = vadd.xlane.f32.xlu1 %v3077_v63  ;;  %v2987_v31 = vpop.f32.mrf.mxu0 }
 0x9e7   : > { %v3098_v8 = vmul.f32 %v3064_v6, %v5231_v20 }
 0x9e9   : > { %v6892_v23 = vsub.f32 %v6796_v1, %v3098_v8  ;;  %v2517_v8 = vadd.f32 %v2499_v61, %v2028_v53  ;;  %v6958_v53 = vld [vmem:[%s7428_s9] ss:$0 sm:$0xff] }
 0x9eb   : > { %v3130_v18 = vmul.f32 %v6892_v23, %v6892_v23  ;;  %v3005_v39 = vadd.f32 %v2987_v31, %v2517_v8 }
 0x9ed   : > { %v3158_v55 = vsel %vm546_vm0, %v3130_v18, 0.0  ;;  %v3021_v36 = vadd.f32 %v5044_v5, %v3005_v39 }
 0x9ee   : > { %3159 = vadd.xlane.f32.xlu2 %v3158_v55  ;;  %3081 = vadd.xlane.f32.xlu1 %v3080_v60 }
 0x9f6   : > { %3084 = vadd.xlane.f32.xlu2 %v3083_v17 }
 0x9fe   : > { %3087 = vadd.xlane.f32.xlu2 %v3086_v3 }
 0xa31   : > { %v3142_v27 = vpop.xlane.xlu2 %3141 }
 0xa32   : > { %v3188_v35 = vmul.f32 %v3142_v27, %v5231_v20 }
 0xa34   : > { %v3204_v59 = vadd.f32 1e-05, %v3188_v35 }
 0xa36   : > { %4933 = vrsqrt.f32 %v3204_v59  ;;  %vm3226_vm8 = vweird.f32 %v3204_v59 }
 0xa39   : > { %v3067_v42 = vpop.xlane.xlu2 %3066  ;;  %v3145_v40 = vpop.xlane.xlu0 %3144 }
 0xa3a   : > { %v3099_v57 = vmul.f32 %v3067_v42, %v5231_v20  ;;  %v3189_v37 = vmul.f32 %v3145_v40, %v5231_v20 }
 0xa3c   : > { %v4934_v50 = vpop.eup %4933  ;;  %v6923_v47 = vsub.f32 %v6814_v30, %v3099_v57  ;;  %v3205_v49 = vadd.f32 1e-05, %v3189_v37  ;;  %v6947_v57 = vld [vmem:[%s7427_s8] ss:$0 sm:$0xff] }
 0xa3d   : > { %v3221_v2 = vmul.f32 %v4934_v50, %v3204_v59  ;;  %vm3227_vm7 = vweird.f32 %v4934_v50  ;;  %v6942_v59 = vadd.f32 %v6743_v14, %v3021_v36 }
 0xa3e   : > { %4935 = vrsqrt.f32 %v3205_v49  ;;  %v3131_v11 = vmul.f32 %v6923_v47, %v6923_v47  ;;  %vm3228_vm9 = vmor %vm3226_vm8, %vm3227_vm7  ;;  %vm3236_vm11 = vweird.f32 %v3205_v49 }
 0xa3f   : > { %v3222_v26 = vmul.f32 %v4934_v50, %v3221_v2 }
 0xa40   : > { %v3161_v63 = vsel %vm546_vm0, %v3131_v11, 0.0 }
 0xa41   : > { %v3223_v0 = vmul.f32 0.5, %v3222_v26  ;;  %v3070_v6 = vpop.xlane.xlu2 %3069  ;;  %3162 = vadd.xlane.f32.xlu0 %v3161_v63  ;;  %v3148_v10 = vpop.xlane.xlu0 %3147 }
 0xa42   : > { %v3100_v58 = vmul.f32 %v3070_v6, %v5231_v20  ;;  %v3190_v18 = vmul.f32 %v3148_v10, %v5231_v20 }
 0xa43   : > { %v3224_v22 = vsub.f32 1.5, %v3223_v0 }
 0xa44   : > { %v4936_v56 = vpop.eup %4935  ;;  %v6933_v38 = vsub.f32 %v6829_v48, %v3100_v58  ;;  %v3206_v9 = vadd.f32 1e-05, %v3190_v18 }
 0xa45   : > { %v3225_v55 = vmul.f32 %v4934_v50, %v3224_v22  ;;  %v3231_v60 = vmul.f32 %v4936_v56, %v3205_v49  ;;  %vm3237_vm10 = vweird.f32 %v4936_v56  ;;  %v3089_v49 = vsel %vm546_vm0, %v6942_v59, 0.0 }
 0xa46   : > { %4937 = vrsqrt.f32 %v3206_v9  ;;  %v3132_v45 = vmul.f32 %v6933_v38, %v6933_v38  ;;  %vm3238_vm12 = vmor %vm3236_vm11, %vm3237_vm10  ;;  %vm3246_vm14 = vweird.f32 %v3206_v9 }
 0xa47   : > { %v3232_v33 = vmul.f32 %v4936_v56, %v3231_v60  ;;  %v3229_v17 = vsel %vm3228_vm9, %v4934_v50, %v3225_v55 }
 0xa48   : > { %v3164_v41 = vsel %vm546_vm0, %v3132_v45, 0.0  ;;  %v3380_v37 = vmul.f32 %v3229_v17, %v6804_v46 }
 0xa49   : > { %v3233_v3 = vmul.f32 0.5, %v3232_v33  ;;  %v3151_v27 = vpop.xlane.xlu1 %3150  ;;  %3165 = vadd.xlane.f32.xlu0 %v3164_v41  ;;  %v3073_v16 = vpop.xlane.xlu0 %3072 }
 0xa4a   : > { %v3191_v35 = vmul.f32 %v3151_v27, %v5231_v20  ;;  %v3101_v15 = vmul.f32 %v3073_v16, %v5231_v20  ;;  %v3399_v46 = vmul.f32 %v6947_v57, %v3380_v37 }
 0xa4b   : > { %v3234_v42 = vsub.f32 1.5, %v3233_v3 }
 0xa4c   : > { %v4938_v40 = vpop.eup %4937  ;;  %v3207_v50 = vadd.f32 1e-05, %v3191_v35  ;;  %v6951_v2 = vsub.f32 %v6844_v34, %v3101_v15 }
 0xa4d   : > { %v3235_v11 = vmul.f32 %v4936_v56, %v3234_v42  ;;  %v3241_v61 = vmul.f32 %v4938_v40, %v3206_v9  ;;  %vm3247_vm13 = vweird.f32 %v4938_v40 }
 0xa4e   : > { %4939 = vrsqrt.f32 %v3207_v50  ;;  %v3133_v14 = vmul.f32 %v6951_v2, %v6951_v2  ;;  %vm3248_vm15 = vmor %vm3246_vm14, %vm3247_vm13  ;;  %vm3256_vm2 = vweird.f32 %v3207_v50 }
 0xa4f   : > { %v3239_v26 = vsel %vm3238_vm12, %v4936_v56, %v3235_v11  ;;  %v3242_v7 = vmul.f32 %v4938_v40, %v3241_v61 }
 0xa50   : > { %v3381_v31 = vmul.f32 %v3239_v26, %v6817_v4  ;;  %v3167_v63 = vsel %vm546_vm0, %v3133_v14, 0.0  ;;  %v3418_v4 = vadd.f32 %v6958_v53, %v3399_v46 }
 0xa51   : > { %v3243_v0 = vmul.f32 0.5, %v3242_v7  ;;  %3090 = vadd.xlane.f32.xlu0 %v3089_v49  ;;  %v3154_v6 = vpop.xlane.xlu1 %3153  ;;  %3168 = vadd.xlane.f32.xlu1 %v3167_v63  ;;  %v3076_v10 = vpop.xlane.xlu0 %3075 }
 0xa52   : > { %v3400_v8 = vmul.f32 %v6947_v57, %v3381_v31  ;;  %v3192_v58 = vmul.f32 %v3154_v6, %v5231_v20  ;;  %v3102_v18 = vmul.f32 %v3076_v10, %v5231_v20 }
 0xa53   : > { %v3244_v22 = vsub.f32 1.5, %v3243_v0 }
 0xa54   : > { %v4940_v56 = vpop.eup %4939  ;;  %v3419_v39 = vadd.f32 %v6958_v53, %v3400_v8  ;;  %v3208_v55 = vadd.f32 1e-05, %v3192_v58  ;;  %v6971_v60 = vsub.f32 %v6859_v54, %v3102_v18 }
 0xa55   : > { %v3245_v45 = vmul.f32 %v4938_v40, %v3244_v22  ;;  %v3251_v33 = vmul.f32 %v4940_v56, %v3207_v50  ;;  %vm3257_vm1 = vweird.f32 %v4940_v56 }
 0xa56   : > { %v3434_v5 = vpack.c.bf16 %v3419_v39, %v3418_v4  ;;  %4941 = vrsqrt.f32 %v3208_v55  ;;  %v3134_v36 = vmul.f32 %v6971_v60, %v6971_v60  ;;  %vm3258_vm3 = vmor %vm3256_vm2, %vm3257_vm1  ;;  %vm3266_vm5 = vweird.f32 %v3208_v55 }
 0xa57   : > { %v3252_v41 = vmul.f32 %v4940_v56, %v3251_v33  ;;  %v3249_v3 = vsel %vm3248_vm15, %v4938_v40, %v3245_v45 }
 0xa58   : > { %4359 = vmatmul.msk.bf16.vlgmr.msrb.gmra.mxu2 %vm546_vm0, %v3434_v5  ;;  %v3170_v17 = vsel %vm546_vm0, %v3134_v36, 0.0  ;;  %v3382_v9 = vmul.f32 %v3249_v3, %v6832_v21 }
 0xa59   : > { %v3253_v27 = vmul.f32 0.5, %v3252_v41  ;;  %v3157_v16 = vpop.xlane.xlu2 %3156  ;;  %v3079_v35 = vpop.xlane.xlu1 %3078  ;;  %3171 = vadd.xlane.f32.xlu1 %v3170_v17 }
 0xa5a   : > { %v3193_v15 = vmul.f32 %v3157_v16, %v5231_v20  ;;  %v3103_v42 = vmul.f32 %v3079_v35, %v5231_v20  ;;  %v3401_v21 = vmul.f32 %v6947_v57, %v3382_v9 }
 0xa5b   : > { %v3254_v37 = vsub.f32 1.5, %v3253_v27 }
 0xa5c   : > { %v4942_v11 = vpop.eup %4941  ;;  %v3209_v61 = vadd.f32 1e-05, %v3193_v15  ;;  %v6981_v14 = vsub.f32 %v6874_v44, %v3103_v42 }
 0xa5d   : > { %v3255_v26 = vmul.f32 %v4940_v56, %v3254_v37  ;;  %v3261_v40 = vmul.f32 %v4942_v11, %v3208_v55  ;;  %vm3267_vm4 = vweird.f32 %v4942_v11 }
 0xa5e   : > { %4943 = vrsqrt.f32 %v3209_v61  ;;  %v3135_v7 = vmul.f32 %v6981_v14, %v6981_v14  ;;  %vm3268_vm6 = vmor %vm3266_vm5, %vm3267_vm4  ;;  %vm3276_vm8 = vweird.f32 %v3209_v61 }
 0xa5f   : > { %v3259_v46 = vsel %vm3258_vm3, %v4940_v56, %v3255_v26  ;;  %v3262_v31 = vmul.f32 %v4942_v11, %v3261_v40  ;;  %v3420_v56 = vadd.f32 %v6958_v53, %v3401_v21 }
 0xa60   : > { %v3383_v49 = vmul.f32 %v3259_v46, %v6847_v51  ;;  %v3173_v63 = vsel %vm546_vm0, %v3135_v7, 0.0 }
 0xa61   : > { %v3263_v0 = vmul.f32 0.5, %v3262_v31  ;;  %v3160_v6 = vpop.xlane.xlu2 %3159  ;;  %3174 = vadd.xlane.f32.xlu2 %v3173_v63  ;;  %v3082_v10 = vpop.xlane.xlu1 %3081 }
 0xa62   : > { %v3104_v50 = vmul.f32 %v3082_v10, %v5231_v20  ;;  %v3402_v8 = vmul.f32 %v6947_v57, %v3383_v49  ;;  %v3194_v21 = vmul.f32 %v3160_v6, %v5231_v20 }
 0xa63   : > { %v3264_v58 = vsub.f32 1.5, %v3263_v0 }
 0xa64   : > { %v4944_v18 = vpop.eup %4943  ;;  %v6991_v22 = vsub.f32 %v6889_v62, %v3104_v50  ;;  %v3421_v51 = vadd.f32 %v6958_v53, %v3402_v8  ;;  %v3210_v0 = vadd.f32 1e-05, %v3194_v21 }
 0xa65   : > { %v3265_v4 = vmul.f32 %v4942_v11, %v3264_v58  ;;  %v3271_v39 = vmul.f32 %v4944_v18, %v3209_v61  ;;  %vm3277_vm7 = vweird.f32 %v4944_v18 }
 0xa66   : > { %v3435_v45 = vpack.c.bf16 %v3421_v51, %v3420_v56  ;;  %v3136_v33 = vmul.f32 %v6991_v22, %v6991_v22  ;;  %vm3278_vm9 = vmor %vm3276_vm8, %vm3277_vm7  ;;  %4945 = vrsqrt.f32 %v3210_v0  ;;  %vm3286_vm11 = vweird.f32 %v3210_v0 }
 0xa67   : > { %v3272_v5 = vmul.f32 %v4944_v18, %v3271_v39  ;;  %v3269_v41 = vsel %vm3268_vm6, %v4942_v11, %v3265_v4 }
 0xa68   : > { %4360 = vmatmul.msk.bf16.gmra.mxu2 %vm546_vm0, %v3435_v45  ;;  %v3176_v36 = vsel %vm546_vm0, %v3136_v33, 0.0  ;;  %v3384_v35 = vmul.f32 %v3269_v41, %v6862_v25 }
 0xa69   : > { %v3273_v17 = vmul.f32 0.5, %v3272_v5  ;;  %v3085_v3 = vpop.xlane.xlu2 %3084  ;;  %3177 = vadd.xlane.f32.xlu0 %v3176_v36 }
 0xa6a   : > { %v3105_v27 = vmul.f32 %v3085_v3, %v5231_v20  ;;  %v3403_v26 = vmul.f32 %v6947_v57, %v3384_v35 }
 0xa6b   : > { %v3274_v16 = vsub.f32 1.5, %v3273_v17 }
 0xa6c   : > { %v7002_v15 = vsub.f32 %v6903_v43, %v3105_v27  ;;  %v3422_v61 = vadd.f32 %v6958_v53, %v3403_v26  ;;  %v4946_v10 = vpop.eup %4945 }
 0xa6d   : > { %v3275_v55 = vmul.f32 %v4944_v18, %v3274_v16  ;;  %v3281_v50 = vmul.f32 %v4946_v10, %v3210_v0  ;;  %vm3287_vm10 = vweird.f32 %v4946_v10 }
 0xa6e   : > { %v3137_v42 = vmul.f32 %v7002_v15, %v7002_v15  ;;  %vm3288_vm12 = vmor %vm3286_vm11, %vm3287_vm10 }
 0xa6f   : > { %v3279_v37 = vsel %vm3278_vm9, %v4944_v18, %v3275_v55  ;;  %v3282_v8 = vmul.f32 %v4946_v10, %v3281_v50 }
 0xa70   : > { %v3385_v11 = vmul.f32 %v3279_v37, %v6877_v52  ;;  %v3179_v9 = vsel %vm546_vm0, %v3137_v42, 0.0 }
 0xa71   : > { %v3088_v40 = vpop.xlane.xlu2 %3087  ;;  %3180 = vadd.xlane.f32.xlu1 %v3179_v9  ;;  %v3283_v51 = vmul.f32 0.5, %v3282_v8 }
 0xa72   : > { %v3106_v25 = vmul.f32 %v3088_v40, %v5231_v20  ;;  %v3404_v7 = vmul.f32 %v6947_v57, %v3385_v11 }
 0xa73   : > { %v3284_v4 = vsub.f32 1.5, %v3283_v51 }
 0xa74   : > { %v7012_v46 = vsub.f32 %v6909_v12, %v3106_v25  ;;  %v3423_v31 = vadd.f32 %v6958_v53, %v3404_v7 }
 0xa75   : > { %v3285_v36 = vmul.f32 %v4946_v10, %v3284_v4 }
 0xa76   : > { %v3436_v49 = vpack.c.bf16 %v3423_v31, %v3422_v61  ;;  %v3138_v52 = vmul.f32 %v7012_v46, %v7012_v46 }
 0xa77   : > { %v3289_v17 = vsel %vm3288_vm12, %v4946_v10, %v3285_v36 }
 0xa78   : > { %4361 = vmatmul.msk.bf16.gmra.mxu2 %vm546_vm0, %v3436_v49  ;;  %v3182_v63 = vsel %vm546_vm0, %v3138_v52, 0.0  ;;  %v3386_v11 = vmul.f32 %v3289_v17, %v6892_v23  ;;  %v4413_v17 = vld [vmem:[%s7431_s12 + $0x38] sm:$0xff] }
 0xa79   : > { %3183 = vadd.xlane.f32.xlu2 %v3182_v63  ;;  %4027 = vmatpush.bf16.msra.mxu1 %v4413_v17 }
 0xa7a   : > { %v3405_v23 = vmul.f32 %v6947_v57, %v3386_v11 }
 0xab4   : > { %v3163_v58 = vpop.xlane.xlu0 %3162 }
 0xab5   : > { %v3195_v18 = vmul.f32 %v3163_v58, %v5231_v20 }
 0xab7   : > { %v3211_v56 = vadd.f32 1e-05, %v3195_v18  ;;  %v3424_v18 = vadd.f32 %v6958_v53, %v3405_v23 }
 0xab9   : > { %4947 = vrsqrt.f32 %v3211_v56  ;;  %vm3296_vm14 = vweird.f32 %v3211_v56 }
 0xabc   : > { %v3166_v39 = vpop.xlane.xlu0 %3165 }
 0xabd   : > { %v3196_v45 = vmul.f32 %v3166_v39, %v5231_v20 }
 0xabf   : > { %v4948_v33 = vpop.eup %4947  ;;  %v3212_v5 = vadd.f32 1e-05, %v3196_v45 }
 0xac0   : > { %v3291_v6 = vmul.f32 %v4948_v33, %v3211_v56  ;;  %vm3297_vm13 = vweird.f32 %v4948_v33 }
 0xac1   : > { %4949 = vrsqrt.f32 %v3212_v5  ;;  %vm3298_vm15 = vmor %vm3296_vm14, %vm3297_vm13  ;;  %vm3306_vm2 = vweird.f32 %v3212_v5 }
 0xac2   : > { %v3292_v41 = vmul.f32 %v4948_v33, %v3291_v6 }
 0xac4   : > { %v3293_v3 = vmul.f32 0.5, %v3292_v41  ;;  %v3169_v27 = vpop.xlane.xlu1 %3168  ;;  %v3091_v16 = vpop.xlane.xlu0 %3090 }
 0xac5   : > { %v3197_v35 = vmul.f32 %v3169_v27, %v5231_v20  ;;  %v3107_v55 = vmul.f32 %v3091_v16, %v5231_v20 }
 0xac6   : > { %v3294_v42 = vsub.f32 1.5, %v3293_v3 }
 0xac7   : > { %v4950_v37 = vpop.eup %4949  ;;  %v3213_v9 = vadd.f32 1e-05, %v3197_v35  ;;  %v7027_v26 = vsub.f32 %v6942_v59, %v3107_v55  ;;  %v7054_v55 = vld [vmem:[%s7430_s11] ss:$0 sm:$0xff] }
 0xac8   : > { %v3295_v40 = vmul.f32 %v4948_v33, %v3294_v42  ;;  %v3301_v25 = vmul.f32 %v4950_v37, %v3212_v5  ;;  %vm3307_vm1 = vweird.f32 %v4950_v37 }
 0xac9   : > { %4951 = vrsqrt.f32 %v3213_v9  ;;  %v3139_v7 = vmul.f32 %v7027_v26, %v7027_v26  ;;  %vm3308_vm3 = vmor %vm3306_vm2, %vm3307_vm1  ;;  %vm3316_vm5 = vweird.f32 %v3213_v9 }
 0xaca   : > { %v3299_v61 = vsel %vm3298_vm15, %v4948_v33, %v3295_v40  ;;  %v3302_v31 = vmul.f32 %v4950_v37, %v3301_v25 }
 0xacb   : > { %v3387_v49 = vmul.f32 %v3299_v61, %v6923_v47  ;;  %v3185_v52 = vsel %vm546_vm0, %v3139_v7, 0.0 }
 0xacc   : > { %v3303_v63 = vmul.f32 0.5, %v3302_v31  ;;  %v3172_v21 = vpop.xlane.xlu1 %3171  ;;  %3186 = vadd.xlane.f32.xlu0 %v3185_v52 }
 0xacd   : > { %v3198_v0 = vmul.f32 %v3172_v21, %v5231_v20  ;;  %v3406_v10 = vmul.f32 %v6947_v57, %v3387_v49 }
 0xace   : > { %v3304_v50 = vsub.f32 1.5, %v3303_v63 }
 0xacf   : > { %v4952_v8 = vpop.eup %4951  ;;  %v7036_v58 = vadd.f32 1e-05, %v3198_v0  ;;  %v3425_v56 = vadd.f32 %v6958_v53, %v3406_v10 }
 0xad0   : > { %v3311_v47 = vmul.f32 %v4952_v8, %v3213_v9  ;;  %v3305_v51 = vmul.f32 %v4950_v37, %v3304_v50  ;;  %vm3317_vm4 = vweird.f32 %v4952_v8 }
 0xad1   : > { %4953 = vrsqrt.f32 %v7036_v58  ;;  %v3437_v4 = vpack.c.bf16 %v3425_v56, %v3424_v18  ;;  %vm3318_vm6 = vmor %vm3316_vm5, %vm3317_vm4  ;;  %vm3326_vm8 = vweird.f32 %v7036_v58 }
 0xad2   : > { %v3312_v39 = vmul.f32 %v4952_v8, %v3311_v47  ;;  %v3309_v36 = vsel %vm3308_vm3, %v4950_v37, %v3305_v51  ;;  %v4410_v47 = vld [vmem:[%s7431_s12 + $0x20] sm:$0xff] }
 0xad3   : > { %4362 = vmatmul.msk.bf16.gmra.mxu2 %vm546_vm0, %v3437_v4  ;;  %v3388_v16 = vmul.f32 %v3309_v36, %v6933_v38  ;;  %v4412_v38 = vld [vmem:[%s7431_s12 + $0x30] sm:$0xff] }
 0xad4   : > { %v3313_v45 = vmul.f32 0.5, %v3312_v39  ;;  %v3175_v33 = vpop.xlane.xlu2 %3174  ;;  %4028 = vmatpush.bf16.msra.mxu1 %v4412_v38 }
 0xad5   : > { %v3199_v6 = vmul.f32 %v3175_v33, %v5231_v20  ;;  %v3407_v61 = vmul.f32 %v6947_v57, %v3388_v16 }
 0xad6   : > { %v3314_v41 = vsub.f32 1.5, %v3313_v45 }
 0xad7   : > { %v7046_v3 = vpop.eup %4953  ;;  %v3215_v27 = vadd.f32 1e-05, %v3199_v6  ;;  %v3426_v50 = vadd.f32 %v6958_v53, %v3407_v61 }
 0xad8   : > { %v3315_v5 = vmul.f32 %v4952_v8, %v3314_v41  ;;  %v3321_v35 = vmul.f32 %v7046_v3, %v7036_v58  ;;  %vm3327_vm7 = vweird.f32 %v7046_v3 }
 0xad9   : > { %4955 = vrsqrt.f32 %v3215_v27  ;;  %vm3328_vm10 = vmor %vm3326_vm8, %vm3327_vm7  ;;  %vm3336_vm11 = vweird.f32 %v3215_v27 }
 0xada   : > { %v3319_v42 = vsel %vm3318_vm6, %v4952_v8, %v3315_v5  ;;  %v3322_v37 = vmul.f32 %v7046_v3, %v3321_v35  ;;  %v4409_v5 = vld [vmem:[%s7431_s12 + $0x18] sm:$0xff] }
 0xadb   : > { %v3389_v11 = vmul.f32 %v3319_v42, %v6951_v2  ;;  %v3495_v9 = vpop.f32.mrf.mxu2  ;;  %v4411_v2 = vld [vmem:[%s7431_s12 + $0x28] sm:$0xff] }
 0xadc   : > { %v3323_v40 = vmul.f32 0.5, %v3322_v37  ;;  %v7062_v25 = vadd.f32 %v7054_v55, %v3495_v9  ;;  %v3178_v7 = vpop.xlane.xlu0 %3177  ;;  %4029 = vmatpush.bf16.msra.mxu1 %v4411_v2 }
 0xadd   : > { %v3200_v31 = vmul.f32 %v3178_v7, %v5231_v20  ;;  %v3408_v49 = vmul.f32 %v6947_v57, %v3389_v11  ;;  %v4408_v7 = vld [vmem:[%s7431_s12 + $0x10] sm:$0xff] }
 0xade   : > { %v7068_v52 = vmul.f32 0.70710677, %v7062_v25  ;;  %v3324_v0 = vsub.f32 1.5, %v3323_v40 }
 0xadf   : > { %v4956_v23 = vpop.eup %4955  ;;  %v7073_v63 = vadd.f32 1e-05, %v3200_v31  ;;  %v3427_v21 = vadd.f32 %v6958_v53, %v3408_v49 }
 0xae0   : > { %v3331_v10 = vmul.f32 %v4956_v23, %v3215_v27  ;;  %v3599_v8 = vand.u32 2147483647, %v7068_v52  ;;  %v3325_v39 = vmul.f32 %v7046_v3, %v3324_v0  ;;  %4030 = vmatpush.bf16.msra.mxu1 %v4410_v47  ;;  %vm3337_vm9 = vweird.f32 %v4956_v23 }
 0xae1   : > { %4957 = vrsqrt.f32 %v7073_v63  ;;  %v3438_v56 = vpack.c.bf16 %v3427_v21, %v3426_v50  ;;  %vm3338_vm12 = vmor %vm3336_vm11, %vm3337_vm9  ;;  %vm3346_vm14 = vweird.f32 %v7073_v63  ;;  %vm3567_vm4 = vcmp.ge.f32.partialorder %v7068_v52, 0.0 }
 0xae2   : > { %v3332_v18 = vmul.f32 %v4956_v23, %v3331_v10  ;;  %v3615_v51 = vmul.f32 0.3275911, %v3599_v8  ;;  %v3329_v37 = vsel %vm3328_vm10, %v7046_v3, %v3325_v39  ;;  %v3807_v49 = vsub.f32 0.0, %v3599_v8 }
 0xae3   : > { %v3497_v4 = vpop.f32.mrf.mxu2  ;;  %4363 = vmatmul.msk.bf16.gmra.mxu2 %vm546_vm0, %v3438_v56  ;;  %v3390_v3 = vmul.f32 %v3329_v37, %v6971_v60  ;;  %v4407_v56 = vld [vmem:[%s7431_s12 + $0x8] sm:$0xff] }
 0xae4   : > { %v3333_v45 = vmul.f32 0.5, %v3332_v18  ;;  %v7085_v33 = vadd.f32 %v7054_v55, %v3497_v4  ;;  %v3181_v36 = vpop.xlane.xlu1 %3180  ;;  %v3631_v6 = vadd.f32 1.0, %v3615_v51  ;;  %4031 = vmatpush.bf16.msra.mxu1 %v4409_v5  ;;  %v3823_v4 = vmul.f32 %v3807_v49, %v3599_v8  ;;  %v4406_v8 = vld [vmem:[%s7431_s12] sm:$0xff] }
 0xae5   : > { %v3201_v41 = vmul.f32 %v3181_v36, %v5231_v20 }
 0xae6   : > { %v3334_v17 = vsub.f32 1.5, %v3333_v45  ;;  %v7091_v16 = vmul.f32 0.70710677, %v7085_v33  ;;  %4959 = vrcp.f32 %v3631_v6 }
 0xae7   : > { %v7096_v35 = vpop.eup %4957  ;;  %v7098_v42 = vadd.f32 1e-05, %v3201_v41 }
 0xae8   : > { %v3335_v38 = vmul.f32 %v4956_v23, %v3334_v17  ;;  %v3341_v58 = vmul.f32 %v7096_v35, %v7073_v63  ;;  %v3600_v11 = vand.u32 2147483647, %v7091_v16  ;;  %4032 = vmatpush.bf16.msra.mxu1 %v4408_v7  ;;  %vm3347_vm13 = vweird.f32 %v7096_v35 }
 0xae9   : > { %4961 = vrsqrt.f32 %v7098_v42  ;;  %vm7144_vm15 = vmor %vm3346_vm14, %vm3347_vm13  ;;  %vm3356_vm2 = vweird.f32 %v7098_v42  ;;  %vm3568_vm5 = vcmp.ge.f32.partialorder %v7091_v16, 0.0  ;;  %v3535_v16 = vmul.f32 0.5, %v7062_v25 }
 0xaea   : > { %v3339_v9 = vsel %vm3338_vm12, %v4956_v23, %v3335_v38  ;;  %v3342_v40 = vmul.f32 %v7096_v35, %v3341_v58  ;;  %v3616_v61 = vmul.f32 0.3275911, %v3600_v11  ;;  %v3808_v5 = vsub.f32 0.0, %v3600_v11 }
 0xaeb   : > { %v3391_v27 = vmul.f32 %v3339_v9, %v6981_v14  ;;  %v3500_v31 = vpop.f32.mrf.mxu2  ;;  %v3409_v14 = vmul.f32 %v6947_v57, %v3390_v3 }
 0xaec   : > { %v3343_v2 = vmul.f32 0.5, %v3342_v40  ;;  %v7112_v21 = vadd.f32 %v7054_v55, %v3500_v31  ;;  %v7114_v23 = vpop.eup %4959  ;;  %v3632_v0 = vadd.f32 1.0, %v3616_v61  ;;  %4033 = vmatpush.bf16.msra.mxu1 %v4407_v56  ;;  %v3839_v40 = vmul.f32 1.442695, %v3823_v4 }
 0xaed   : > { %v3410_v10 = vmul.f32 %v6947_v57, %v3391_v27  ;;  %v3663_v50 = vmul.f32 1.0614054, %v7114_v23  ;;  %v3428_v58 = vadd.f32 %v6958_v53, %v3409_v14 }
 0xaee   : > { %v3344_v18 = vsub.f32 1.5, %v3343_v2  ;;  %v7119_v60 = vmul.f32 0.70710677, %v7112_v21  ;;  %4963 = vrcp.f32 %v3632_v0 }
 0xaef   : > { %v4962_v47 = vpop.eup %4961  ;;  %v3679_v51 = vadd.f32 -1.4531521, %v3663_v50  ;;  %v3429_v36 = vadd.f32 %v6958_v53, %v3410_v10  ;;  %v3824_v10 = vmul.f32 %v3808_v5, %v3600_v11 }
 0xaf0   : > { %v7126_v39 = vand.u32 2147483647, %v7119_v60  ;;  %v3351_v45 = vmul.f32 %v4962_v47, %v7098_v42  ;;  %v3345_v41 = vmul.f32 %v7096_v35, %v3344_v18  ;;  %4034 = vmatpush.bf16.msra.mxu1 %v4406_v8  ;;  %vm3357_vm1 = vweird.f32 %v4962_v47 }
 0xaf1   : > { %v3695_v6 = vmul.f32 %v7114_v23, %v3679_v51  ;;  %v3439_v49 = vpack.c.bf16 %v3429_v36, %v3428_v58  ;;  %vm3358_vm3 = vmor %vm3356_vm2, %vm3357_vm1  ;;  %v3841_v36 = vmul.f32 1.442695, %v3824_v10  ;;  %vm3569_vm6 = vcmp.ge.f32.partialorder %v7119_v60, 0.0 }
 0xaf2   : > { %v3617_v17 = vmul.f32 0.3275911, %v7126_v39  ;;  %v3352_v37 = vmul.f32 %v4962_v47, %v3351_v45  ;;  %v3349_v2 = vsel %vm7144_vm15, %v7096_v35, %v3345_v41 }
 0xaf3   : > { %v3502_v38 = vpop.f32.mrf.mxu2  ;;  %v3711_v9 = vadd.f32 1.4214138, %v3695_v6  ;;  %4364 = vmatmul.msk.bf16.gmra.mxu2 %vm546_vm0, %v3439_v49  ;;  %v3392_v51 = vmul.f32 %v3349_v2, %v6991_v22 }
 0xaf4   : > { %v3633_v7 = vadd.f32 1.0, %v3617_v17  ;;  %v7140_v3 = vadd.f32 %v7054_v55, %v3502_v38  ;;  %v7142_v27 = vpop.eup %4963  ;;  %v3353_v31 = vmul.f32 0.5, %v3352_v37  ;;  %v3809_v38 = vsub.f32 0.0, %v7126_v39 }
 0xaf5   : > { %v3727_v63 = vmul.f32 %v7114_v23, %v3711_v9  ;;  %v3664_v0 = vmul.f32 1.0614054, %v7142_v27 }
 0xaf6   : > { %4965 = vrcp.f32 %v3633_v7  ;;  %v3354_v50 = vsub.f32 1.5, %v3353_v31  ;;  %v7154_v18 = vmul.f32 0.70710677, %v7140_v3  ;;  %v3825_v2 = vmul.f32 %v3809_v38, %v7126_v39 }
 0xaf7   : > { %v3743_v14 = vadd.f32 -0.28449672, %v3727_v63  ;;  %4967 = vpow2.f32 %v3839_v40  ;;  %v3680_v56 = vadd.f32 -1.4531521, %v3664_v0  ;;  %v3411_v40 = vmul.f32 %v6947_v57, %v3392_v51 }
 0xaf8   : > { %v3355_v4 = vmul.f32 %v4962_v47, %v3354_v50  ;;  %v3602_v35 = vand.u32 2147483647, %v7154_v18  ;;  %vm3570_vm7 = vcmp.ge.f32.partialorder %v7154_v18, 0.0 }
 0xaf9   : > { %v3759_v45 = vmul.f32 %v7114_v23, %v3743_v14  ;;  %v3696_v11 = vmul.f32 %v7142_v27, %v3680_v56  ;;  %v3430_v50 = vadd.f32 %v6958_v53, %v3411_v40 }
 0xafa   : > { %v3359_v6 = vsel %vm3358_vm3, %v4962_v47, %v3355_v4  ;;  %v3618_v41 = vmul.f32 0.3275911, %v3602_v35 }
 0xafb   : > { %v3505_v17 = vpop.f32.mrf.mxu2  ;;  %v3775_v5 = vadd.f32 0.2548296, %v3759_v45  ;;  %v3712_v37 = vadd.f32 1.4214138, %v3696_v11  ;;  %v3393_v22 = vmul.f32 %v3359_v6, %v7002_v15  ;;  %v3843_v6 = vmul.f32 1.442695, %v3825_v2 }
 0xafc   : > { %v7162_v8 = vpop.eup %4965  ;;  %v3634_v58 = vadd.f32 1.0, %v3618_v41  ;;  %v7168_v9 = vadd.f32 %v7054_v55, %v3505_v17 }
 0xafd   : > { %v3665_v42 = vmul.f32 1.0614054, %v7162_v8  ;;  %v4968_v7 = vpop.eup %4967  ;;  %v3791_v47 = vmul.f32 %v7114_v23, %v3775_v5  ;;  %v3728_v61 = vmul.f32 %v7142_v27, %v3712_v37  ;;  %v3412_v31 = vmul.f32 %v6947_v57, %v3393_v22 }
 0xafe   : > { %4969 = vrcp.f32 %v3634_v58  ;;  %v7176_v0 = vmul.f32 0.70710677, %v7168_v9  ;;  %v3810_v5 = vsub.f32 0.0, %v3602_v35  ;;  %v5098_v22 = vmov -1.0  }
 0xaff   : > { %v3681_v49 = vadd.f32 -1.4531521, %v3665_v42  ;;  %v3871_v15 = vmul.f32 %v4968_v7, %v3791_v47  ;;  %v3744_v63 = vadd.f32 -0.28449672, %v3728_v61  ;;  %4971 = vpow2.f32 %v3841_v36 }
 0xb00   : > { %v3431_v23 = vadd.f32 %v6958_v53, %v3412_v31  ;;  %v3603_v4 = vand.u32 2147483647, %v7176_v0  ;;  %v3583_v52 = vsel %vm3567_vm4, 1.0, %v5098_v22  ;;  %4973 = vpow2.f32 %v3843_v6 }
 0xb01   : > { %v3697_v10 = vmul.f32 %v7162_v8, %v3681_v49  ;;  %v3760_v14 = vmul.f32 %v7142_v27, %v3744_v63  ;;  %v3887_v56 = vsub.f32 1.0, %v3871_v15  ;;  %v3826_v63 = vmul.f32 %v3810_v5, %v3602_v35 }
 0xb02   : > { %v3440_v39 = vpack.c.bf16 %v3431_v23, %v3430_v50  ;;  %v3619_v37 = vmul.f32 0.3275911, %v3603_v4  ;;  %v3584_v23 = vsel %vm3568_vm5, 1.0, %v5098_v22  ;;  %v3536_v35 = vmul.f32 0.5, %v7085_v33 }
 0xb03   : > { %v3713_v51 = vadd.f32 1.4214138, %v3697_v10  ;;  %v3507_v45 = vpop.f32.mrf.mxu2  ;;  %v3776_v11 = vadd.f32 0.2548296, %v3760_v14  ;;  %v3903_v40 = vmul.f32 %v3887_v56, %v3583_v52  ;;  %vm3571_vm8 = vcmp.ge.f32.partialorder %v7176_v0, 0.0 }
 0xb04   : > { %v7185_v36 = vadd.f32 %v7054_v55, %v3507_v45  ;;  %v4970_v41 = vpop.eup %4969  ;;  %v3635_v47 = vadd.f32 1.0, %v3619_v37  ;;  %4365 = vmatmul.msk.bf16.gmra.mxu2 %vm546_vm0, %v3440_v39  ;;  %v3539_v0 = vmul.f32 0.5, %v7168_v9 }
 0xb05   : > { %v3729_v17 = vmul.f32 %v7162_v8, %v3713_v51  ;;  %v3792_v38 = vmul.f32 %v7142_v27, %v3776_v11  ;;  %v3666_v42 = vmul.f32 1.0614054, %v4970_v41  ;;  %v4972_v58 = vpop.eup %4971  ;;  %v3919_v50 = vadd.f32 1.0, %v3903_v40 }
 0xb06   : > { %v7191_v61 = vmul.f32 0.70710677, %v7185_v36  ;;  %4975 = vrcp.f32 %v3635_v47  ;;  %v3845_v11 = vmul.f32 1.442695, %v3826_v63  ;;  %v4974_v6 = vpop.eup %4973 }
 0xb07   : > { %v3745_v7 = vadd.f32 -0.28449672, %v3729_v17  ;;  %v3872_v31 = vmul.f32 %v4972_v58, %v3792_v38  ;;  %v3682_v49 = vadd.f32 -1.4531521, %v3666_v42  ;;  %v3935_v38 = vmul.f32 %v3919_v50, %v3535_v16 }
 0xb08   : > { %v3604_v10 = vand.u32 2147483647, %v7191_v61  ;;  %v3811_v58 = vsub.f32 0.0, %v3603_v4  ;;  %vm3572_vm9 = vcmp.ge.f32.partialorder %v7191_v61, 0.0 }
 0xb09   : > { %v3761_v15 = vmul.f32 %v7162_v8, %v3745_v7  ;;  %v3888_v27 = vsub.f32 1.0, %v3872_v31  ;;  %v3698_v2 = vmul.f32 %v4970_v41, %v3682_v49 }
 0xb0a   : > { %v3620_v45 = vmul.f32 0.3275911, %v3604_v10 }
 0xb0b   : > { %v3777_v14 = vadd.f32 0.2548296, %v3761_v15  ;;  %v3904_v56 = vmul.f32 %v3888_v27, %v3584_v23  ;;  %v3714_v51 = vadd.f32 1.4214138, %v3698_v2  ;;  %v3812_v23 = vsub.f32 0.0, %v3604_v10 }
 0xb0c   : > { %v3636_v37 = vadd.f32 1.0, %v3620_v45  ;;  %v4976_v52 = vpop.eup %4975 }
 0xb0d   : > { %v3793_v39 = vmul.f32 %v7162_v8, %v3777_v14  ;;  %v3920_v17 = vadd.f32 1.0, %v3904_v56  ;;  %v3730_v5 = vmul.f32 %v4970_v41, %v3714_v51  ;;  %v3667_v47 = vmul.f32 1.0614054, %v4976_v52 }
 0xb0e   : > { %4977 = vrcp.f32 %v3636_v37  ;;  %v3827_v8 = vmul.f32 %v3811_v58, %v3603_v4  ;;  %v3585_v56 = vsel %vm3569_vm6, 1.0, %v5098_v22 }
 0xb0f   : > { %v3873_v42 = vmul.f32 %v4974_v6, %v3793_v39  ;;  %v3936_v40 = vmul.f32 %v3920_v17, %v3536_v35  ;;  %v3746_v7 = vadd.f32 -0.28449672, %v3730_v5  ;;  %4979 = vpow2.f32 %v3845_v11 }
 0xb10   : > { %v3683_v49 = vadd.f32 -1.4531521, %v3667_v47  ;;  %v3847_v51 = vmul.f32 1.442695, %v3827_v8  ;;  %v3828_v35 = vmul.f32 %v3812_v23, %v3604_v10  ;;  %v3586_v17 = vsel %vm3570_vm7, 1.0, %v5098_v22  ;;  %v3184_v23 = vpop.xlane.xlu2 %3183 }
 0xb11   : > { %v3951_v31 = vpack.c.bf16 %v3936_v40, %v3935_v38  ;;  %v3762_v25 = vmul.f32 %v4970_v41, %v3746_v7  ;;  %v3889_v15 = vsub.f32 1.0, %v3873_v42  ;;  %v3537_v42 = vmul.f32 0.5, %v7112_v21 }
 0xb12   : > { %v3699_v63 = vmul.f32 %v4976_v52, %v3683_v49  ;;  %4981 = vpow2.f32 %v3847_v51  ;;  %v3538_v40 = vmul.f32 0.5, %v7140_v3  ;;  %v3849_v47 = vmul.f32 1.442695, %v3828_v35 }
 0xb13   : > { %v3778_v33 = vadd.f32 0.2548296, %v3762_v25  ;;  %4035 = vmatmul.bf16.vlgmr.msra.gmra.mxu1 %v3951_v31  ;;  %v3905_v16 = vmul.f32 %v3889_v15, %v3585_v56  ;;  %v3587_v56 = vsel %vm3571_vm8, 1.0, %v5098_v22 }
 0xb14   : > { %v4978_v27 = vpop.eup %4977  ;;  %v3715_v50 = vadd.f32 1.4214138, %v3699_v63  ;;  %4983 = vpow2.f32 %v3849_v47 }
 0xb15   : > { %v3794_v2 = vmul.f32 %v4970_v41, %v3778_v33  ;;  %v4980_v14 = vpop.eup %4979  ;;  %v3668_v45 = vmul.f32 1.0614054, %v4978_v27  ;;  %v3921_v5 = vadd.f32 1.0, %v3905_v16 }
 0xb16   : > { %v3731_v4 = vmul.f32 %v4976_v52, %v3715_v50 }
 0xb17   : > { %v3874_v39 = vmul.f32 %v4980_v14, %v3794_v2  ;;  %v3684_v11 = vadd.f32 -1.4531521, %v3668_v45  ;;  %v3937_v25 = vmul.f32 %v3921_v5, %v3537_v42  ;;  %v3202_v45 = vmul.f32 %v3184_v23, %v5231_v20 }
 0xb18   : > { %v3747_v6 = vadd.f32 -0.28449672, %v3731_v4  ;;  %v4982_v10 = vpop.eup %4981 }
 0xb19   : > { %v3890_v60 = vsub.f32 1.0, %v3874_v39  ;;  %v3700_v41 = vmul.f32 %v4978_v27, %v3684_v11  ;;  %v3588_v39 = vsel %vm3572_vm9, 1.0, %v5098_v22 }
 0xb1a   : > { %v3763_v38 = vmul.f32 %v4976_v52, %v3747_v6  ;;  %v4984_v14 = vpop.eup %4983  ;;  %v3540_v6 = vmul.f32 0.5, %v7185_v36 }
 0xb1b   : > { %v3906_v37 = vmul.f32 %v3890_v60, %v3586_v17  ;;  %v3716_v58 = vadd.f32 1.4214138, %v3700_v41  ;;  %v3218_v60 = vadd.f32 1e-05, %v3202_v45 }
 0xb1c   : > { %v3779_v18 = vadd.f32 0.2548296, %v3763_v38 }
 0xb1d   : > { %v3922_v7 = vadd.f32 1.0, %v3906_v37  ;;  %v3732_v31 = vmul.f32 %v4978_v27, %v3716_v58  ;;  %4985 = vrsqrt.f32 %v3218_v60  ;;  %vm3366_vm11 = vweird.f32 %v3218_v60 }
 0xb1e   : > { %v3795_v8 = vmul.f32 %v4976_v52, %v3779_v18 }
 0xb1f   : > { %v3938_v49 = vmul.f32 %v3922_v7, %v3538_v40  ;;  %v3748_v15 = vadd.f32 -0.28449672, %v3732_v31 }
 0xb20   : > { %v3875_v33 = vmul.f32 %v4982_v10, %v3795_v8 }
 0xb21   : > { %v3952_v63 = vpack.c.bf16 %v3938_v49, %v3937_v25  ;;  %v3764_v2 = vmul.f32 %v4978_v27, %v3748_v15 }
 0xb22   : > { %v3891_v21 = vsub.f32 1.0, %v3875_v33 }
 0xb23   : > { %4040 = vmatmul.bf16.gmra.mxu1 %v3952_v63  ;;  %v3780_v50 = vadd.f32 0.2548296, %v3764_v2  ;;  %v4986_v61 = vpop.eup %4985 }
 0xb24   : > { %v3907_v51 = vmul.f32 %v3891_v21, %v3587_v56  ;;  %v3361_v5 = vmul.f32 %v4986_v61, %v3218_v60  ;;  %vm3367_vm10 = vweird.f32 %v4986_v61 }
 0xb25   : > { %v3796_v3 = vmul.f32 %v4978_v27, %v3780_v50  ;;  %vm3368_vm12 = vmor %vm3366_vm11, %vm3367_vm10 }
 0xb26   : > { %v3923_v4 = vadd.f32 1.0, %v3907_v51  ;;  %v3362_v37 = vmul.f32 %v4986_v61, %v3361_v5 }
 0xb27   : > { %v3876_v52 = vmul.f32 %v4984_v14, %v3796_v3 }
 0xb28   : > { %v3939_v35 = vmul.f32 %v3923_v4, %v3539_v0  ;;  %v3363_v40 = vmul.f32 0.5, %v3362_v37 }
 0xb29   : > { %v3892_v16 = vsub.f32 1.0, %v3876_v52 }
 0xb2a   : > { %v3364_v7 = vsub.f32 1.5, %v3363_v40 }
 0xb2b   : > { %v3908_v11 = vmul.f32 %v3892_v16, %v3588_v39 }
 0xb2c   : > { %v3365_v9 = vmul.f32 %v4986_v61, %v3364_v7 }
 0xb2d   : > { %v3924_v27 = vadd.f32 1.0, %v3908_v11 }
 0xb2e   : > { %v3369_v31 = vsel %vm3368_vm12, %v4986_v61, %v3365_v9 }
 0xb2f   : > { %v3940_v17 = vmul.f32 %v3924_v27, %v3540_v6  ;;  %v3394_v8 = vmul.f32 %v3369_v31, %v7012_v46 }
 0xb31   : > { %v3953_v41 = vpack.c.bf16 %v3940_v17, %v3939_v35  ;;  %v3413_v63 = vmul.f32 %v6947_v57, %v3394_v8 }
 0xb33   : > { %4045 = vmatmul.bf16.gmra.mxu1 %v3953_v41  ;;  %v3432_v23 = vadd.f32 %v6958_v53, %v3413_v63 }
 0xb3f   : > { %v3187_v38 = vpop.xlane.xlu0 %3186 }
 0xb40   : > { %v3203_v42 = vmul.f32 %v3187_v38, %v5231_v20 }
 0xb42   : > { %v3219_v58 = vadd.f32 1e-05, %v3203_v42 }
 0xb44   : > { %4987 = vrsqrt.f32 %v3219_v58  ;;  %vm3376_vm14 = vweird.f32 %v3219_v58 }
 0xb4a   : > { %v4988_v18 = vpop.eup %4987 }
 0xb4b   : > { %v3371_v36 = vmul.f32 %v4988_v18, %v3219_v58  ;;  %vm3377_vm13 = vweird.f32 %v4988_v18 }
 0xb4c   : > { %vm3378_vm15 = vmor %vm3376_vm14, %vm3377_vm13 }
 0xb4d   : > { %v3372_v47 = vmul.f32 %v4988_v18, %v3371_v36 }
 0xb4f   : > { %v3373_v25 = vmul.f32 0.5, %v3372_v47 }
 0xb51   : > { %v3374_v49 = vsub.f32 1.5, %v3373_v25 }
 0xb53   : > { %v3375_v10 = vmul.f32 %v4988_v18, %v3374_v49 }
 0xb55   : > { %v3379_v20 = vsel %vm3378_vm15, %v4988_v18, %v3375_v10 }
 0xb56   : > { %v3395_v15 = vmul.f32 %v3379_v20, %v7027_v26  ;;  %v3510_v33 = vpop.f32.mrf.mxu2 }
 0xb57   : > { %v7219_v2 = vadd.f32 %v7054_v55, %v3510_v33 }
 0xb58   : > { %v3414_v21 = vmul.f32 %v6947_v57, %v3395_v15 }
 0xb59   : > { %v7223_v50 = vmul.f32 0.70710677, %v7219_v2 }
 0xb5a   : > { %v3433_v46 = vadd.f32 %v6958_v53, %v3414_v21 }
 0xb5b   : > { %v3605_v3 = vand.u32 2147483647, %v7223_v50  ;;  %vm3573_vm1 = vcmp.ge.f32.partialorder %v7223_v50, 0.0 }
 0xb5c   : > { %v3441_v14 = vpack.c.bf16 %v3433_v46, %v3432_v23 }
 0xb5d   : > { %v3621_v56 = vmul.f32 0.3275911, %v3605_v3  ;;  %v3813_v60 = vsub.f32 0.0, %v3605_v3 }
 0xb5e   : > { %v3512_v26 = vpop.f32.mrf.mxu2  ;;  %4366 = vmatmul.msk.bf16.gmra.mxu2 %vm546_vm0, %v3441_v14 }
 0xb5f   : > { %v3637_v51 = vadd.f32 1.0, %v3621_v56  ;;  %v7230_v52 = vadd.f32 %v7054_v55, %v3512_v26  ;;  %v3829_v17 = vmul.f32 %v3813_v60, %v3605_v3 }
 0xb61   : > { %4989 = vrcp.f32 %v3637_v51  ;;  %v7233_v57 = vmul.f32 0.70710677, %v7230_v52  ;;  %v3851_v40 = vmul.f32 1.442695, %v3829_v17 }
 0xb63   : > { %v3606_v45 = vand.u32 2147483647, %v7233_v57  ;;  %vm3574_vm2 = vcmp.ge.f32.partialorder %v7233_v57, 0.0 }
 0xb65   : > { %v3622_v16 = vmul.f32 0.3275911, %v3606_v45  ;;  %v3814_v5 = vsub.f32 0.0, %v3606_v45 }
 0xb66   : > { %v3515_v4 = vpop.f32.mrf.mxu2 }
 0xb67   : > { %v4990_v39 = vpop.eup %4989  ;;  %v3638_v53 = vadd.f32 1.0, %v3622_v16  ;;  %v7237_v0 = vadd.f32 %v7054_v55, %v3515_v4  ;;  %v3830_v31 = vmul.f32 %v3814_v5, %v3606_v45 }
 0xb68   : > { %v3669_v11 = vmul.f32 1.0614054, %v4990_v39 }
 0xb69   : > { %4991 = vrcp.f32 %v3638_v53  ;;  %v7240_v27 = vmul.f32 0.70710677, %v7237_v0  ;;  %v3853_v33 = vmul.f32 1.442695, %v3830_v31 }
 0xb6a   : > { %v3685_v6 = vadd.f32 -1.4531521, %v3669_v11 }
 0xb6b   : > { %v3607_v41 = vand.u32 2147483647, %v7240_v27  ;;  %vm3575_vm3 = vcmp.ge.f32.partialorder %v7240_v27, 0.0 }
 0xb6c   : > { %v3701_v35 = vmul.f32 %v4990_v39, %v3685_v6 }
 0xb6d   : > { %v3623_v37 = vmul.f32 0.3275911, %v3607_v41  ;;  %v3815_v3 = vsub.f32 0.0, %v3607_v41 }
 0xb6e   : > { %v3717_v61 = vadd.f32 1.4214138, %v3701_v35  ;;  %v3517_v42 = vpop.f32.mrf.mxu2 }
 0xb6f   : > { %v4992_v38 = vpop.eup %4991  ;;  %v3639_v18 = vadd.f32 1.0, %v3623_v37  ;;  %v7244_v9 = vadd.f32 %v7054_v55, %v3517_v42  ;;  %v3831_v60 = vmul.f32 %v3815_v3, %v3607_v41  ;;  %v3589_v41 = vsel %vm3573_vm1, 1.0, %v5098_v22 }
 0xb70   : > { %v3733_v58 = vmul.f32 %v4990_v39, %v3717_v61  ;;  %v3670_v7 = vmul.f32 1.0614054, %v4992_v38 }
 0xb71   : > { %4993 = vrcp.f32 %v3639_v18  ;;  %v7247_v25 = vmul.f32 0.70710677, %v7244_v9 }
 0xb72   : > { %v3749_v36 = vadd.f32 -0.28449672, %v3733_v58  ;;  %v3686_v47 = vadd.f32 -1.4531521, %v3670_v7  ;;  %4995 = vpow2.f32 %v3851_v40  ;;  %v3855_v58 = vmul.f32 1.442695, %v3831_v60 }
 0xb73   : > { %v3608_v10 = vand.u32 2147483647, %v7247_v25  ;;  %4997 = vpow2.f32 %v3853_v33  ;;  %vm3576_vm4 = vcmp.ge.f32.partialorder %v7247_v25, 0.0 }
 0xb74   : > { %v3765_v49 = vmul.f32 %v4990_v39, %v3749_v36  ;;  %v3702_v8 = vmul.f32 %v4992_v38, %v3686_v47 }
 0xb75   : > { %v3624_v63 = vmul.f32 0.3275911, %v3608_v10  ;;  %v3816_v18 = vsub.f32 0.0, %v3608_v10 }
 0xb76   : > { %v3781_v20 = vadd.f32 0.2548296, %v3765_v49  ;;  %v3718_v15 = vadd.f32 1.4214138, %v3702_v8  ;;  %v3520_v45 = vpop.f32.mrf.mxu2 }
 0xb77   : > { %v4994_v21 = vpop.eup %4993  ;;  %v3640_v56 = vadd.f32 1.0, %v3624_v63  ;;  %v7251_v4 = vadd.f32 %v7054_v55, %v3520_v45  ;;  %v3590_v63 = vsel %vm3574_vm2, 1.0, %v5098_v22 }
 0xb78   : > { %v3797_v23 = vmul.f32 %v4990_v39, %v3781_v20  ;;  %v3734_v46 = vmul.f32 %v4992_v38, %v3718_v15  ;;  %v3671_v14 = vmul.f32 1.0614054, %v4994_v21  ;;  %v4996_v26 = vpop.eup %4995 }
 0xb79   : > { %4999 = vrcp.f32 %v3640_v56  ;;  %v7254_v35 = vmul.f32 0.70710677, %v7251_v4  ;;  %v4998_v37 = vpop.eup %4997 }
 0xb7a   : > { %v3750_v51 = vadd.f32 -0.28449672, %v3734_v46  ;;  %v3877_v16 = vmul.f32 %v4996_v26, %v3797_v23  ;;  %v3687_v53 = vadd.f32 -1.4531521, %v3671_v14  ;;  %5001 = vpow2.f32 %v3855_v58 }
 0xb7b   : > { %v3609_v5 = vand.u32 2147483647, %v7254_v35  ;;  %v3832_v46 = vmul.f32 %v3816_v18, %v3608_v10  ;;  %vm3577_vm5 = vcmp.ge.f32.partialorder %v7254_v35, 0.0 }
 0xb7c   : > { %v3766_v11 = vmul.f32 %v4992_v38, %v3750_v51  ;;  %v3703_v6 = vmul.f32 %v4994_v21, %v3687_v53  ;;  %v3893_v17 = vsub.f32 1.0, %v3877_v16  ;;  %v3542_v51 = vmul.f32 0.5, %v7230_v52 }
 0xb7d   : > { %v3625_v36 = vmul.f32 0.3275911, %v3609_v5 }
 0xb7e   : > { %v3782_v39 = vadd.f32 0.2548296, %v3766_v11  ;;  %v3719_v61 = vadd.f32 1.4214138, %v3703_v6  ;;  %v3522_v50 = vpop.f32.mrf.mxu2  ;;  %v3909_v49 = vmul.f32 %v3893_v17, %v3589_v41  ;;  %v3541_v11 = vmul.f32 0.5, %v7219_v2 }
 0xb7f   : > { %v7258_v40 = vpop.eup %4999  ;;  %v3641_v20 = vadd.f32 1.0, %v3625_v36  ;;  %v7264_v15 = vadd.f32 %v7054_v55, %v3522_v50  ;;  %v3857_v6 = vmul.f32 1.442695, %v3832_v46  ;;  %v3817_v41 = vsub.f32 0.0, %v3609_v5 }
 0xb80   : > { %v3798_v42 = vmul.f32 %v4992_v38, %v3782_v39  ;;  %v3735_v7 = vmul.f32 %v4994_v21, %v3719_v61  ;;  %v3672_v31 = vmul.f32 1.0614054, %v7258_v40  ;;  %v3925_v56 = vadd.f32 1.0, %v3909_v49  ;;  %v5002_v10 = vpop.eup %5001  ;;  %v7288_v49 = vld [vmem:[%s7432_s13] ss:$0 sm:$0xff] }
 0xb81   : > { %5003 = vrcp.f32 %v3641_v20  ;;  %v7269_v14 = vmul.f32 0.70710677, %v7264_v15 }
 0xb82   : > { %v3878_v47 = vmul.f32 %v4998_v37, %v3798_v42  ;;  %v3751_v8 = vadd.f32 -0.28449672, %v3735_v7  ;;  %v3688_v33 = vadd.f32 -1.4531521, %v3672_v31  ;;  %v3941_v58 = vmul.f32 %v3925_v56, %v3541_v11 }
 0xb83   : > { %v3610_v53 = vand.u32 2147483647, %v7269_v14  ;;  %5005 = vpow2.f32 %v3857_v6  ;;  %vm3578_vm6 = vcmp.ge.f32.partialorder %v7269_v14, 0.0 }
 0xb84   : > { %v3894_v38 = vsub.f32 1.0, %v3878_v47  ;;  %v3767_v23 = vmul.f32 %v4994_v21, %v3751_v8  ;;  %v3704_v57 = vmul.f32 %v7258_v40, %v3688_v33 }
 0xb85   : > { %v3626_v61 = vmul.f32 0.3275911, %v3610_v53 }
 0xb86   : > { %v3910_v3 = vmul.f32 %v3894_v38, %v3590_v63  ;;  %v3783_v26 = vadd.f32 0.2548296, %v3767_v23  ;;  %v3720_v16 = vadd.f32 1.4214138, %v3704_v57  ;;  %v3833_v63 = vmul.f32 %v3817_v41, %v3609_v5 }
 0xb87   : > { %v3525_v37 = vpop.f32.mrf.mxu2  ;;  %v7275_v42 = vpop.eup %5003  ;;  %v3642_v2 = vadd.f32 1.0, %v3626_v61  ;;  %v3818_v23 = vsub.f32 0.0, %v3610_v53  ;;  %v3591_v57 = vsel %vm3575_vm3, 1.0, %v5098_v22 }
 0xb88   : > { %v3926_v45 = vadd.f32 1.0, %v3910_v3  ;;  %v3799_v60 = vmul.f32 %v4994_v21, %v3783_v26  ;;  %v3736_v17 = vmul.f32 %v7258_v40, %v3720_v16  ;;  %v7278_v52 = vadd.f32 %v7054_v55, %v3525_v37 }
 0xb89   : > { %v3673_v36 = vmul.f32 1.0614054, %v7275_v42  ;;  %5007 = vrcp.f32 %v3642_v2  ;;  %v3834_v61 = vmul.f32 %v3818_v23, %v3610_v53  ;;  %v3543_v53 = vmul.f32 0.5, %v7237_v0 }
 0xb8a   : > { %v3942_v39 = vmul.f32 %v3926_v45, %v3542_v51  ;;  %v3879_v7 = vmul.f32 %v5002_v10, %v3799_v60  ;;  %v3752_v18 = vadd.f32 -0.28449672, %v3736_v17  ;;  %v7282_v21 = vmul.f32 0.70710677, %v7278_v52  ;;  %v5006_v45 = vpop.eup %5005 }
 0xb8b   : > { %v3689_v50 = vadd.f32 -1.4531521, %v3673_v36  ;;  %v3859_v10 = vmul.f32 1.442695, %v3833_v63 }
 0xb8c   : > { %v3954_v47 = vpack.c.bf16 %v3942_v39, %v3941_v58  ;;  %v3768_v31 = vmul.f32 %v7258_v40, %v3752_v18  ;;  %v3895_v8 = vsub.f32 1.0, %v3879_v7  ;;  %v7292_v20 = vand.u32 2147483647, %v7282_v21 }
 0xb8d   : > { %v3705_v33 = vmul.f32 %v7275_v42, %v3689_v50  ;;  %vm3579_vm7 = vcmp.ge.f32.partialorder %v7282_v21, 0.0 }
 0xb8e   : > { %4050 = vmatmul.bf16.gmra.mxu1 %v3954_v47  ;;  %v3784_v38 = vadd.f32 0.2548296, %v3768_v31  ;;  %v3627_v46 = vmul.f32 0.3275911, %v7292_v20  ;;  %v3911_v5 = vmul.f32 %v3895_v8, %v3591_v57  ;;  %v3861_v31 = vmul.f32 1.442695, %v3834_v61 }
 0xb8f   : > { %v3721_v26 = vadd.f32 1.4214138, %v3705_v33  ;;  %v3527_v27 = vpop.f32.mrf.mxu2  ;;  %v3544_v8 = vmul.f32 0.5, %v7244_v9 }
 0xb90   : > { %v4036_v3 = vpop.f32.mrf.mxu1  ;;  %v3800_v56 = vmul.f32 %v7258_v40, %v3784_v38  ;;  %v3643_v16 = vadd.f32 1.0, %v3627_v46  ;;  %v7308_v11 = vadd.f32 %v7054_v55, %v3527_v27  ;;  %v5008_v40 = vpop.eup %5007  ;;  %v3927_v18 = vadd.f32 1.0, %v3911_v5 }
 0xb91   : > { %v4037_v51 = vadd.f32 %v7288_v49, %v4036_v3  ;;  %v3737_v6 = vmul.f32 %v7275_v42, %v3721_v26  ;;  %v3674_v17 = vmul.f32 1.0614054, %v5008_v40  ;;  %v3592_v55 = vsel %vm3576_vm4, 1.0, %v5098_v22 }
 0xb92   : > { %v3880_v60 = vmul.f32 %v5006_v45, %v3800_v56  ;;  %5009 = vrcp.f32 %v3643_v16  ;;  %v7313_v7 = vmul.f32 0.70710677, %v7308_v11  ;;  %v3943_v25 = vmul.f32 %v3927_v18, %v3543_v53 }
 0xb93   : > { %v4076_v39 = vadd.f32 %v4037_v51, %v6749_v32  ;;  %v3753_v58 = vadd.f32 -0.28449672, %v3737_v6  ;;  %v3690_v36 = vadd.f32 -1.4531521, %v3674_v17  ;;  %5011 = vpow2.f32 %v3859_v10 }
 0xb94   : > { %v3896_v37 = vsub.f32 1.0, %v3880_v60  ;;  %v3612_v32 = vand.u32 2147483647, %v7313_v7  ;;  %v3819_v3 = vsub.f32 0.0, %v7292_v20  ;;  %vm3580_vm8 = vcmp.ge.f32.partialorder %v7313_v7, 0.0 }
 0xb95   : > { %4092 = vst.msk [vmem:[%s7304_s20] sm:$0xff] %vm546_vm0, %v4076_v39  ;;  %v3769_v2 = vmul.f32 %v7275_v42, %v3753_v58  ;;  %v3706_v47 = vmul.f32 %v5008_v40, %v3690_v36  ;;  %v3596_v21 = vsel %vm3580_vm8, 1.0, %v5098_v22 }
 0xb96   : > { %v3912_v41 = vmul.f32 %v3896_v37, %v3592_v55  ;;  %v3628_v63 = vmul.f32 0.3275911, %v3612_v32  ;;  %v3835_v39 = vmul.f32 %v3819_v3, %v7292_v20 }
 0xb97   : > { %v3785_v33 = vadd.f32 0.2548296, %v3769_v2  ;;  %v3722_v46 = vadd.f32 1.4214138, %v3706_v47 }
 0xb98   : > { %v4038_v50 = vpop.f32.mrf.mxu1  ;;  %v3928_v38 = vadd.f32 1.0, %v3912_v41  ;;  %v5010_v23 = vpop.eup %5009  ;;  %v3644_v27 = vadd.f32 1.0, %v3628_v63  ;;  %v3863_v36 = vmul.f32 1.442695, %v3835_v39  ;;  %v3820_v41 = vsub.f32 0.0, %v3612_v32 }
 0xb99   : > { %v4039_v57 = vadd.f32 %v7288_v49, %v4038_v50  ;;  %v3801_v26 = vmul.f32 %v7275_v42, %v3785_v33  ;;  %v3675_v0 = vmul.f32 1.0614054, %v5010_v23  ;;  %v3738_v51 = vmul.f32 %v5008_v40, %v3722_v46  ;;  %v5012_v9 = vpop.eup %5011 }
 0xb9a   : > { %v3944_v56 = vmul.f32 %v3928_v38, %v3544_v8  ;;  %5013 = vrcp.f32 %v3644_v27  ;;  %v3836_v63 = vmul.f32 %v3820_v41, %v3612_v32  ;;  %v3546_v32 = vmul.f32 0.5, %v7264_v15 }
 0xb9b   : > { %v4077_v45 = vadd.f32 %v4039_v57, %v6758_v13  ;;  %v3691_v5 = vadd.f32 -1.4531521, %v3675_v0  ;;  %v3881_v60 = vmul.f32 %v5012_v9, %v3801_v26  ;;  %v3754_v6 = vadd.f32 -0.28449672, %v3738_v51 }
 0xb9c   : > { %v3955_v16 = vpack.c.bf16 %v3944_v56, %v3943_v25  ;;  %5015 = vpow2.f32 %v3861_v31  ;;  %v3593_v31 = vsel %vm3577_vm5, 1.0, %v5098_v22  ;;  %v3865_v51 = vmul.f32 1.442695, %v3836_v63 }
 0xb9d   : > { %4093 = vst.msk [vmem:[%s7304_s20 + $0x8] sm:$0xff] %vm546_vm0, %v4077_v45  ;;  %v3707_v10 = vmul.f32 %v5010_v23, %v3691_v5  ;;  %v3770_v17 = vmul.f32 %v5008_v40, %v3754_v6  ;;  %v3897_v13 = vsub.f32 1.0, %v3881_v60  ;;  %5017 = vpow2.f32 %v3863_v36 }
 0xb9e   : > { %4055 = vmatmul.bf16.gmra.mxu1 %v3955_v16  ;;  %v3545_v45 = vmul.f32 0.5, %v7251_v4  ;;  %5019 = vpow2.f32 %v3865_v51 }
 0xb9f   : > { %v3723_v61 = vadd.f32 1.4214138, %v3707_v10  ;;  %v3786_v58 = vadd.f32 0.2548296, %v3770_v17  ;;  %v3913_v8 = vmul.f32 %v3897_v13, %v3593_v31 }
 0xba0   : > { %v4041_v42 = vpop.f32.mrf.mxu1  ;;  %v5014_v18 = vpop.eup %5013 }
 0xba1   : > { %v4042_v37 = vadd.f32 %v7288_v49, %v4041_v42  ;;  %v3739_v55 = vmul.f32 %v5010_v23, %v3723_v61  ;;  %v3802_v53 = vmul.f32 %v5008_v40, %v3786_v58  ;;  %v3676_v47 = vmul.f32 1.0614054, %v5014_v18 }
 0xba2   : > { %v5016_v20 = vpop.eup %5015  ;;  %v3594_v40 = vsel %vm3578_vm6, 1.0, %v5098_v22  ;;  %v3929_v56 = vadd.f32 1.0, %v3913_v8  ;;  %v3595_v58 = vsel %vm3579_vm7, 1.0, %v5098_v22 }
 0xba3   : > { %v4078_v2 = vadd.f32 %v4042_v37, %v6766_v19  ;;  %v3755_v50 = vadd.f32 -0.28449672, %v3739_v55  ;;  %v3882_v35 = vmul.f32 %v5016_v20, %v3802_v53  ;;  %v3692_v38 = vadd.f32 -1.4531521, %v3676_v47  ;;  %v5018_v16 = vpop.eup %5017 }
 0xba4   : > { %v3945_v60 = vmul.f32 %v3929_v56, %v3545_v45  ;;  %v5020_v13 = vpop.eup %5019  ;;  %v3548_v20 = vmul.f32 0.5, %v7308_v11 }
 0xba5   : > { %4094 = vst.msk [vmem:[%s7304_s20 + $0x10] sm:$0xff] %vm546_vm0, %v4078_v2  ;;  %v3771_v33 = vmul.f32 %v5010_v23, %v3755_v50  ;;  %v3898_v25 = vsub.f32 1.0, %v3882_v35  ;;  %v3708_v46 = vmul.f32 %v5014_v18, %v3692_v38 }
 0xba7   : > { %v3787_v3 = vadd.f32 0.2548296, %v3771_v33  ;;  %v3914_v26 = vmul.f32 %v3898_v25, %v3594_v40  ;;  %v3724_v0 = vadd.f32 1.4214138, %v3708_v46  ;;  %v5045_v33 = vld [vmem:[%s7430_s11] ss:$0 sm:$0xff] }
 0xba8   : > { %v4043_v19 = vpop.f32.mrf.mxu1 }
 0xba9   : > { %v4044_v57 = vadd.f32 %v7288_v49, %v4043_v19  ;;  %v3803_v27 = vmul.f32 %v5010_v23, %v3787_v3  ;;  %v3930_v9 = vadd.f32 1.0, %v3914_v26  ;;  %v3740_v5 = vmul.f32 %v5014_v18, %v3724_v0 }
 0xbab   : > { %v4079_v14 = vadd.f32 %v4044_v57, %v6774_v24  ;;  %v3946_v6 = vmul.f32 %v3930_v9, %v3546_v32  ;;  %v3883_v10 = vmul.f32 %v5018_v16, %v3803_v27  ;;  %v3756_v39 = vadd.f32 -0.28449672, %v3740_v5 }
 0xbad   : > { %4095 = vst.msk [vmem:[%s7304_s20 + $0x18] sm:$0xff] %vm546_vm0, %v4079_v14  ;;  %v3772_v17 = vmul.f32 %v5014_v18, %v3756_v39  ;;  %v3956_v23 = vpack.c.bf16 %v3946_v6, %v3945_v60  ;;  %v3899_v24 = vsub.f32 1.0, %v3883_v10 }
 0xbaf   : > { %v3788_v4 = vadd.f32 0.2548296, %v3772_v17  ;;  %4060 = vmatmul.bf16.gmra.mxu1 %v3956_v23  ;;  %v3915_v55 = vmul.f32 %v3899_v24, %v3595_v58 }
 0xbb0   : > { %v4046_v42 = vpop.f32.mrf.mxu1 }
 0xbb1   : > { %v4047_v15 = vadd.f32 %v7288_v49, %v4046_v42  ;;  %v3804_v61 = vmul.f32 %v5014_v18, %v3788_v4  ;;  %v3931_v53 = vadd.f32 1.0, %v3915_v55 }
 0xbb3   : > { %v4080_v37 = vadd.f32 %v4047_v15, %v6782_v29  ;;  %v3884_v36 = vmul.f32 %v5020_v13, %v3804_v61  ;;  %v3547_v29 = vmul.f32 0.5, %v7278_v52 }
 0xbb5   : > { %4096 = vst.msk [vmem:[%s7304_s20 + $0x20] sm:$0xff] %vm546_vm0, %v4080_v37  ;;  %v3900_v41 = vsub.f32 1.0, %v3884_v36  ;;  %v3947_v8 = vmul.f32 %v3931_v53, %v3547_v29 }
 0xbb7   : > { %v3916_v47 = vmul.f32 %v3900_v41, %v3596_v21 }
 0xbb8   : > { %v4048_v2 = vpop.f32.mrf.mxu1 }
 0xbb9   : > { %v4049_v18 = vadd.f32 %v7288_v49, %v4048_v2  ;;  %v3932_v31 = vadd.f32 1.0, %v3916_v47 }
 0xbbb   : > { %v4081_v50 = vadd.f32 %v4049_v18, %v6790_v28  ;;  %v3948_v7 = vmul.f32 %v3932_v31, %v3548_v20 }
 0xbbd   : > { %4097 = vst.msk [vmem:[%s7304_s20 + $0x28] sm:$0xff] %vm546_vm0, %v4081_v50  ;;  %v3957_v35 = vpack.c.bf16 %v3948_v7, %v3947_v8 }
 0xbbf   : > { %4065 = vmatmul.bf16.gmra.mxu1 %v3957_v35 }
 0xbe1   : > { %v3530_v38 = vpop.f32.mrf.mxu2 }
 0xbe2   : > { %v3531_v63 = vadd.f32 %v5045_v33, %v3530_v38 }
 0xbe4   : > { %v3565_v25 = vmul.f32 0.70710677, %v3531_v63 }
 0xbe6   : > { %v3613_v46 = vand.u32 2147483647, %v3565_v25  ;;  %vm3581_vm9 = vcmp.ge.f32.partialorder %v3565_v25, 0.0 }
 0xbe7   : > { %v3597_v47 = vsel %vm3581_vm9, 1.0, %v5098_v22 }
 0xbe8   : > { %v3629_v52 = vmul.f32 0.3275911, %v3613_v46  ;;  %v3821_v26 = vsub.f32 0.0, %v3613_v46 }
 0xbe9   : > { %v3532_v19 = vpop.f32.mrf.mxu2 }
 0xbea   : > { %v3645_v11 = vadd.f32 1.0, %v3629_v52  ;;  %v3533_v40 = vadd.f32 %v5045_v33, %v3532_v19  ;;  %v3837_v14 = vmul.f32 %v3821_v26, %v3613_v46  ;;  %v3549_v33 = vmul.f32 0.5, %v3531_v63 }
 0xbec   : > { %5021 = vrcp.f32 %v3645_v11  ;;  %v3566_v28 = vmul.f32 0.70710677, %v3533_v40  ;;  %v3867_v5 = vmul.f32 1.442695, %v3837_v14  ;;  %v3550_v25 = vmul.f32 0.5, %v3533_v40 }
 0xbee   : > { %v3614_v3 = vand.u32 2147483647, %v3566_v28  ;;  %vm3582_vm10 = vcmp.ge.f32.partialorder %v3566_v28, 0.0 }
 0xbef   : > { %v3598_v7 = vsel %vm3582_vm10, 1.0, %v5098_v22 }
 0xbf0   : > { %v3630_v57 = vmul.f32 0.3275911, %v3614_v3  ;;  %v3822_v16 = vsub.f32 0.0, %v3614_v3 }
 0xbf2   : > { %v5022_v56 = vpop.eup %5021  ;;  %v3646_v0 = vadd.f32 1.0, %v3630_v57  ;;  %v3838_v17 = vmul.f32 %v3822_v16, %v3614_v3 }
 0xbf3   : > { %v3677_v27 = vmul.f32 1.0614054, %v5022_v56 }
 0xbf4   : > { %5023 = vrcp.f32 %v3646_v0  ;;  %v3869_v15 = vmul.f32 1.442695, %v3838_v17 }
 0xbf5   : > { %v3693_v51 = vadd.f32 -1.4531521, %v3677_v27  ;;  %5025 = vpow2.f32 %v3867_v5 }
 0xbf6   : > { %5027 = vpow2.f32 %v3869_v15 }
 0xbf7   : > { %v3709_v45 = vmul.f32 %v5022_v56, %v3693_v51 }
 0xbf9   : > { %v3725_v32 = vadd.f32 1.4214138, %v3709_v45 }
 0xbfa   : > { %v5024_v9 = vpop.eup %5023 }
 0xbfb   : > { %v3741_v60 = vmul.f32 %v5022_v56, %v3725_v32  ;;  %v3678_v6 = vmul.f32 1.0614054, %v5024_v9  ;;  %v5026_v13 = vpop.eup %5025 }
 0xbfc   : > { %v5028_v53 = vpop.eup %5027 }
 0xbfd   : > { %v3757_v10 = vadd.f32 -0.28449672, %v3741_v60  ;;  %v3694_v39 = vadd.f32 -1.4531521, %v3678_v6 }
 0xbff   : > { %v3773_v23 = vmul.f32 %v5022_v56, %v3757_v10  ;;  %v3710_v42 = vmul.f32 %v5024_v9, %v3694_v39 }
 0xc01   : > { %v3789_v24 = vadd.f32 0.2548296, %v3773_v23  ;;  %v3726_v4 = vadd.f32 1.4214138, %v3710_v42 }
 0xc03   : > { %v3805_v61 = vmul.f32 %v5022_v56, %v3789_v24  ;;  %v3742_v37 = vmul.f32 %v5024_v9, %v3726_v4 }
 0xc05   : > { %v3885_v58 = vmul.f32 %v5026_v13, %v3805_v61  ;;  %v3758_v55 = vadd.f32 -0.28449672, %v3742_v37 }
 0xc07   : > { %v3774_v36 = vmul.f32 %v5024_v9, %v3758_v55  ;;  %v3901_v41 = vsub.f32 1.0, %v3885_v58 }
 0xc09   : > { %v3790_v21 = vadd.f32 0.2548296, %v3774_v36  ;;  %v3917_v29 = vmul.f32 %v3901_v41, %v3597_v47 }
 0xc0b   : > { %v3806_v2 = vmul.f32 %v5024_v9, %v3790_v21  ;;  %v4051_v18 = vpop.f32.mrf.mxu1  ;;  %v3933_v35 = vadd.f32 1.0, %v3917_v29 }
 0xc0c   : > { %v4052_v31 = vadd.f32 %v7288_v49, %v4051_v18 }
 0xc0d   : > { %v3886_v20 = vmul.f32 %v5028_v53, %v3806_v2  ;;  %v3949_v19 = vmul.f32 %v3933_v35, %v3549_v33 }
 0xc0e   : > { %v4082_v8 = vadd.f32 %v4052_v31, %v6796_v1 }
 0xc0f   : > { %v3902_v50 = vsub.f32 1.0, %v3886_v20 }
 0xc10   : > { %4098 = vst.msk [vmem:[%s7304_s20 + $0x30] sm:$0xff] %vm546_vm0, %v4082_v8 }
 0xc11   : > { %v3918_v38 = vmul.f32 %v3902_v50, %v3598_v7 }
 0xc13   : > { %v3934_v46 = vadd.f32 1.0, %v3918_v38  ;;  %v4053_v52 = vpop.f32.mrf.mxu1 }
 0xc14   : > { %v4054_v28 = vadd.f32 %v7288_v49, %v4053_v52 }
 0xc15   : > { %v3950_v11 = vmul.f32 %v3934_v46, %v3550_v25 }
 0xc16   : > { %v4083_v3 = vadd.f32 %v4054_v28, %v6814_v30 }
 0xc17   : > { %v3958_v1 = vpack.c.bf16 %v3950_v11, %v3949_v19 }
 0xc18   : > { %4099 = vst.msk [vmem:[%s7304_s20 + $0x38] sm:$0xff] %vm546_vm0, %v4083_v3 }
 0xc19   : > { %4070 = vmatmul.bf16.gmra.mxu1 %v3958_v1 }
 0xc1b   : > { %v4056_v22 = vpop.f32.mrf.mxu1 }
 0xc1c   : > { %v4057_v57 = vadd.f32 %v7288_v49, %v4056_v22 }
 0xc1e   : > { %v4084_v63 = vadd.f32 %v4057_v57, %v6829_v48 }
 0xc20   : > { %4100 = vst.msk [vmem:[%s7304_s20 + $0x40] sm:$0xff] %vm546_vm0, %v4084_v63 }
 0xc23   : > { %v4058_v40 = vpop.f32.mrf.mxu1 }
 0xc24   : > { %v4059_v56 = vadd.f32 %v7288_v49, %v4058_v40 }
 0xc26   : > { %v4085_v26 = vadd.f32 %v4059_v56, %v6844_v34 }
 0xc28   : > { %4101 = vst.msk [vmem:[%s7304_s20 + $0x48] sm:$0xff] %vm546_vm0, %v4085_v26 }
 0xc2c   : > { %v4061_v30 = vpop.f32.mrf.mxu1 }
 0xc2d   : > { %v4062_v0 = vadd.f32 %v7288_v49, %v4061_v30 }
 0xc2f   : > { %v4086_v27 = vadd.f32 %v4062_v0, %v6859_v54 }
 0xc31   : > { %4102 = vst.msk [vmem:[%s7304_s20 + $0x50] sm:$0xff] %vm546_vm0, %v4086_v27 }
 0xc34   : > { %v4063_v48 = vpop.f32.mrf.mxu1 }
 0xc35   : > { %v4064_v51 = vadd.f32 %v7288_v49, %v4063_v48 }
 0xc37   : > { %v4087_v14 = vadd.f32 %v4064_v51, %v6874_v44 }
 0xc39   : > { %4103 = vst.msk [vmem:[%s7304_s20 + $0x58] sm:$0xff] %vm546_vm0, %v4087_v14 }
 0xc3c   : > { %v4066_v34 = vpop.f32.mrf.mxu1 }
 0xc3d   : > { %v4067_v45 = vadd.f32 %v7288_v49, %v4066_v34 }
 0xc3f   : > { %v4088_v32 = vadd.f32 %v4067_v45, %v6889_v62 }
 0xc41   : > { %4104 = vst.msk [vmem:[%s7304_s20 + $0x60] sm:$0xff] %vm546_vm0, %v4088_v32 }
 0xc44   : > { %v4068_v9 = vpop.f32.mrf.mxu1 }
 0xc45   : > { %v4069_v54 = vadd.f32 %v7288_v49, %v4068_v9 }
 0xc47   : > { %v4089_v5 = vadd.f32 %v4069_v54, %v6903_v43 }
 0xc49   : > { %4105 = vst.msk [vmem:[%s7304_s20 + $0x68] sm:$0xff] %vm546_vm0, %v4089_v5 }
 0xc96   : > { %v4071_v16 = vpop.f32.mrf.mxu1 }
 0xc97   : > { %v4072_v44 = vadd.f32 %v7288_v49, %v4071_v16 }
 0xc99   : > { %v4090_v60 = vadd.f32 %v4072_v44, %v6909_v12 }
 0xc9b   : > { %4106 = vst.msk [vmem:[%s7304_s20 + $0x70] sm:$0xff] %vm546_vm0, %v4090_v60 }
 0xc9e   : > { %v4073_v6 = vpop.f32.mrf.mxu1 }
 0xc9f   : > { %v4074_v10 = vadd.f32 %v7288_v49, %v4073_v6 }
 0xca1   : > { %v4091_v62 = vadd.f32 %v4074_v10, %v6942_v59 }
 0xca3   : > { %4107 = vst.msk [vmem:[%s7304_s20 + $0x78] sm:$0xff] %vm546_vm0, %v4091_v62 }
 0xca4 PF: > { %s24_s17 = sadd.s32 1, %s5084_s17   ;;  %s7450_s29 = smov %s5076_s15 }
 0xca5   : > { %p21_p8 = scmp.ge.s32.totalorder %s24_s17, 6   ;;  %s7451_s30 = smov %s5080_s16 }
 0xca6   : > { %s7452_s15 = smov %s7455_s18  ;;  %s7453_s16 = smov %s7459_s19 }
 0xca7   :  { %23 = sbr.rel (!%p21_p8) target bundleno = 3 (0x3), region = 112 }

</bundles_post_ra>
